<compile_context>
chip_gen: v7x
topology: tpu7x:2x2x1
jax: 0.10.0
libtpu: 0.0.40
codegen_flags: <defaults>
</compile_context>

<pallas_src>
import functools

import jax
import jax.numpy as jnp
from jax import lax
from jax.experimental import pallas as pl
from jax.experimental.pallas import tpu as pltpu


def _round_up(x, m):
    return (x + m - 1) // m * m


# ---------------------------------------------------------------------------
# Tiled linear:  y = relu?(x @ w + b)      x:(M,K)  w:(K,N)  b:(N,)
# ---------------------------------------------------------------------------
def _linear_kernel(x_ref, w_ref, b_ref, o_ref, acc_ref, *, relu):
    k = pl.program_id(2)

    @pl.when(k == 0)
    def _init():
        acc_ref[...] = jnp.zeros_like(acc_ref)

    acc_ref[...] += jnp.dot(x_ref[...], w_ref[...],
                            preferred_element_type=jnp.float32)

    @pl.when(k == pl.num_programs(2) - 1)
    def _finalize():
        y = acc_ref[...] + b_ref[...]
        if relu:
            y = jnp.maximum(y, 0.0)
        o_ref[...] = y.astype(o_ref.dtype)


def pallas_linear(x, w, b, *, relu, out_dtype=jnp.float32):
    M, K = x.shape
    Kw, N = w.shape
    assert K == Kw, (K, Kw)

    # fc1 is HBM-weight-streaming bound: big K tiles amortise the ~0.35us/step
    # pipeline overhead; tn=256 gives two "parallel" N tiles (v7x megacore).
    tm = min(_round_up(M, 16), 256)        # 16: bf16 sublane packing
    tn = min(_round_up(N, 128), 256)
    tk = min(_round_up(K, 128), 4096)      # 2 MB bf16 weight tile (4 MB dbl-buf)
    Mp, Np, Kp = _round_up(M, tm), _round_up(N, tn), _round_up(K, tk)

    xp = jnp.pad(x.astype(jnp.bfloat16), ((0, Mp - M), (0, Kp - K)))
    wp = jnp.pad(w.astype(jnp.bfloat16), ((0, Kp - K), (0, Np - N)))
    bp = jnp.pad(b.astype(jnp.float32), (0, Np - N)).reshape(1, Np)

    out_bytes = Mp * Np * jnp.dtype(out_dtype).itemsize
    out = pl.pallas_call(
        functools.partial(_linear_kernel, relu=relu),
        out_shape=jax.ShapeDtypeStruct((Mp, Np), out_dtype),
        grid=(Mp // tm, Np // tn, Kp // tk),
        in_specs=[
            pl.BlockSpec((tm, tk), lambda i, j, k: (i, k)),
            pl.BlockSpec((tk, tn), lambda i, j, k: (k, j)),
            pl.BlockSpec((1, tn), lambda i, j, k: (0, j)),
        ],
        out_specs=pl.BlockSpec((tm, tn), lambda i, j, k: (i, j)),
        scratch_shapes=[pltpu.VMEM((tm, tn), jnp.float32)],
        compiler_params=pltpu.CompilerParams(
            dimension_semantics=("parallel", "parallel", "arbitrary"),
            vmem_limit_bytes=32 * 1024 * 1024,
        ),
        cost_estimate=pl.CostEstimate(
            flops=2 * Mp * Np * Kp, transcendentals=0,
            bytes_accessed=(Mp * Kp + Kp * Np) * 2 + out_bytes + Np * 4),
    )(xp, wp, bp)
    return out[:M, :N]


# ---------------------------------------------------------------------------
# Fused conv3x3 (stride 1, pad 1) + bias + ReLU + 2x2 maxpool, per row band
# ---------------------------------------------------------------------------
def _conv3x3_relu_pool_kernel(x_ref, w_ref, b_ref, o_ref, patch_ref,
                              *, rb, W, Cin, Cout):
    # x_ref     : (rb+2, W+2, Cin)   bf16  halo'd, zero-padded input row band
    # w_ref     : (9*Cin, Cout)      bf16  taps stacked (ky, kx, cin) row-major
    # b_ref     : (1, Cout)          f32
    # o_ref     : (rb//2, W//2, Cout) bf16 pooled output band
    # patch_ref : (rb, W, 9*Cin)     bf16  im2col patch scratch
    #
    # Build the patch once (9 shifted slices), then ONE MXU dot over K=9*Cin.
    for t in range(9):
        dy, dx = divmod(t, 3)
        patch_ref[:, :, t * Cin:(t + 1) * Cin] = x_ref[dy:dy + rb, dx:dx + W, :]

    lhs = patch_ref[...].reshape(rb * W, 9 * Cin)
    y = jnp.dot(lhs, w_ref[...], preferred_element_type=jnp.float32)
    y = jnp.maximum(y + b_ref[...], 0.0)               # bias + ReLU (f32)

    # 2x2 max-pool: vertical max via contiguous sublane slices, horizontal max
    # via a pair split; the minor (channel) dim is never touched.
    y = y.reshape(rb // 2, 2 * W, Cout)
    v = jnp.maximum(y[:, :W, :], y[:, W:, :])           # rows 2r vs 2r+1
    v = v.reshape(rb // 2, W // 2, 2, Cout)
    p = jnp.maximum(v[:, :, 0, :], v[:, :, 1, :])       # cols 2c vs 2c+1
    o_ref[...] = p.astype(o_ref.dtype)


def _pick_band_rows(h, cap=16):
    """Largest even divisor of h that is <= cap (whole image if none)."""
    for rb in range(min(h, cap), 1, -1):
        if h % rb == 0 and rb % 2 == 0:
            return rb
    return h


def conv3x3_relu_maxpool(x_nhwc, w, b2d):
    """relu(conv3x3(x)+b) -> 2x2 maxpool.  (B,H,W,Cin) -> (B,H/2,W/2,Cout) bf16."""
    B, H, W, Cin = x_nhwc.shape
    Cout = w.shape[-1]
    assert H % 2 == 0 and W % 2 == 0, (H, W)
    rb = _pick_band_rows(H)          # output-row band per grid step
    n_bands = H // rb

    # Pad + cast once, then materialise halo'd row bands so a plain Blocked
    # BlockSpec can pipeline them.  Halo duplication is 2/rb of a small
    # activation — negligible next to fc1's weight stream.
    xp = jnp.pad(x_nhwc.astype(jnp.bfloat16), ((0, 0), (1, 1), (1, 1), (0, 0)))
    bands = jnp.stack([xp[:, n * rb:n * rb + rb + 2] for n in range(n_bands)],
                      axis=1)
    bands = bands.reshape(B * n_bands, rb + 2, W + 2, Cin)

    kern = functools.partial(_conv3x3_relu_pool_kernel,
                             rb=rb, W=W, Cin=Cin, Cout=Cout)
    out = pl.pallas_call(
        kern,
        out_shape=jax.ShapeDtypeStruct(
            (B * n_bands, rb // 2, W // 2, Cout), jnp.bfloat16),
        grid=(B * n_bands,),
        in_specs=[
            pl.BlockSpec((None, rb + 2, W + 2, Cin), lambda i: (i, 0, 0, 0)),
            pl.BlockSpec((9 * Cin, Cout), lambda i: (0, 0)),
            pl.BlockSpec((1, Cout), lambda i: (0, 0)),
        ],
        out_specs=pl.BlockSpec((None, rb // 2, W // 2, Cout),
                               lambda i: (i, 0, 0, 0)),
        scratch_shapes=[pltpu.VMEM((rb, W, 9 * Cin), jnp.bfloat16)],
        compiler_params=pltpu.CompilerParams(
            dimension_semantics=("parallel",),
            vmem_limit_bytes=32 * 1024 * 1024,
        ),
        cost_estimate=pl.CostEstimate(
            flops=2 * B * H * W * 9 * Cin * Cout, transcendentals=0,
            bytes_accessed=(bands.size * 2 + w.size * 2
                            + B * (H // 2) * (W // 2) * Cout * 2)),
    )(bands, w, b2d)
    return out.reshape(B, H // 2, W // 2, Cout)


# ---------------------------------------------------------------------------
# Full forward pass (NCHW input, PyTorch semantics)
# ---------------------------------------------------------------------------
def tomato_forward(x_nchw, kp):
    x = jnp.transpose(x_nchw, (0, 2, 3, 1))                       # NCHW -> NHWC
    x = conv3x3_relu_maxpool(x, kp["conv1_w"], kp["conv1_b"])      # bf16
    x = conv3x3_relu_maxpool(x, kp["conv2_w"], kp["conv2_b"])      # bf16
    B = x.shape[0]
    # NHWC flatten; fc1's in-features were permuted at init to match torch's
    # channel-major flatten, so no runtime transpose of the activation.
    x = x.reshape(B, -1)
    x = pallas_linear(x, kp["fc1_w"], kp["fc1_b"], relu=True,
                      out_dtype=jnp.bfloat16)
    x = pallas_linear(x, kp["fc2_w"], kp["fc2_b"], relu=False,
                      out_dtype=jnp.float32)
    return x


# ---------------------------------------------------------------------------
# Deterministic PyTorch-layout init + one-time conversion to kernel layout
# ---------------------------------------------------------------------------
def init_params(key, H, W, num_classes=5):
    ks = jax.random.split(key, 8)
    feat = 64 * (H // 4) * (W // 4)

    def u(k, shape, fan_in):
        bound = 1.0 / float(fan_in) ** 0.5
        return jax.random.uniform(k, shape, jnp.float32, -bound, bound)

    return {
        "conv1_w": u(ks[0], (32, 3, 3, 3), 3 * 9),
        "conv1_b": u(ks[1], (32,), 3 * 9),
        "conv2_w": u(ks[2], (64, 32, 3, 3), 32 * 9),
        "conv2_b": u(ks[3], (64,), 32 * 9),
        "fc1_w": u(ks[4], (512, feat), feat),
        "fc1_b": u(ks[5], (512,), feat),
        "fc2_w": u(ks[6], (num_classes, 512), 512),
        "fc2_b": u(ks[7], (num_classes,), 512),
    }


def convert_params(p, H, W):
    """PyTorch layout -> kernel layout.  Done ONCE (not per forward call)."""
    Hq, Wq = H // 4, W // 4
    # conv: (Cout,Cin,ky,kx) -> (ky,kx,Cin,Cout) -> (9*Cin, Cout), bf16
    conv1_w = jnp.transpose(p["conv1_w"], (2, 3, 1, 0)).reshape(9 * 3, 32)
    conv2_w = jnp.transpose(p["conv2_w"], (2, 3, 1, 0)).reshape(9 * 32, 64)
    # fc1: permute in-features from torch's channel-major (NCHW) flatten to our
    # NHWC flatten, then store as (K, N).
    fc1_w = p["fc1_w"].reshape(512, 64, Hq, Wq)
    fc1_w = jnp.transpose(fc1_w, (0, 2, 3, 1)).reshape(512, 64 * Hq * Wq)
    fc1_w = jnp.transpose(fc1_w, (1, 0))
    fc2_w = jnp.transpose(p["fc2_w"], (1, 0))
    return {
        "conv1_w": conv1_w.astype(jnp.bfloat16),
        "conv1_b": p["conv1_b"].reshape(1, 32).astype(jnp.float32),
        "conv2_w": conv2_w.astype(jnp.bfloat16),
        "conv2_b": p["conv2_b"].reshape(1, 64).astype(jnp.float32),
        "fc1_w": fc1_w.astype(jnp.bfloat16),
        "fc1_b": p["fc1_b"].astype(jnp.float32),
        "fc2_w": fc2_w.astype(jnp.bfloat16),
        "fc2_b": p["fc2_b"].astype(jnp.float32),
    }


# ---------------------------------------------------------------------------
# Pure-JAX (XLA) reference with PyTorch semantics, for a tolerance check
# ---------------------------------------------------------------------------
def reference_forward(x_nchw, p):
    def conv(x, w, b):
        y = lax.conv_general_dilated(x, w, (1, 1), ((1, 1), (1, 1)),
                                     dimension_numbers=("NCHW", "OIHW", "NCHW"))
        return jax.nn.relu(y + b[None, :, None, None])

    def pool(x):
        return lax.reduce_window(x, -jnp.inf, lax.max,
                                 (1, 1, 2, 2), (1, 1, 2, 2), "VALID")

    x = pool(conv(x_nchw, p["conv1_w"], p["conv1_b"]))
    x = pool(conv(x, p["conv2_w"], p["conv2_b"]))
    x = x.reshape(x.shape[0], -1)                 # NCHW flatten == torch
    x = jax.nn.relu(x @ p["fc1_w"].T + p["fc1_b"])
    return x @ p["fc2_w"].T + p["fc2_b"]


if __name__ == "__main__":
    key = jax.random.PRNGKey(0)
    kx, kparam = jax.random.split(key)
    # Small self-test shapes (nominal module input is 3x224x224; same structure).
    B, C, H, W = 2, 3, 16, 16
    x = jax.random.normal(kx, (B, C, H, W), jnp.float32)
    torch_params = init_params(kparam, H, W, num_classes=5)
    kparams = convert_params(torch_params, H, W)

    out = jax.jit(tomato_forward)(x, kparams)
    jax.block_until_ready(out)
    assert out.shape == (B, 5), out.shape

    ref = reference_forward(x, torch_params)
    err = float(jnp.max(jnp.abs(out - ref)))
    assert err < 5e-2, f"max abs err vs reference: {err}"  # bf16 tolerance
    print("KERNEL_OK")
</pallas_src>

<mosaic_0001>
module attributes {stable_mosaic.version = 11 : i64} {
  func.func @_conv3x3_relu_pool_kernel(%arg0: i32, %arg1: memref<1x18x18x3xbf16, #tpu.memory_space<vmem>>, %arg2: memref<27x32xbf16, #tpu.memory_space<vmem>>, %arg3: memref<1x32xf32, #tpu.memory_space<vmem>>, %arg4: memref<1x8x8x32xbf16, #tpu.memory_space<vmem>>, %arg5: memref<16x16x27xbf16, #tpu.memory_space<vmem>>) attributes {dimension_semantics = [#tpu.dimension_semantics<parallel>], iteration_bounds = array<i64: 2>, scalar_prefetch = 0 : i64, scratch_operands = 1 : i64, tpu.core_type = #tpu.core_type<tc>, window_params = [{transform_indices = @transform_0, window_bounds = array<i64: 1, 18, 18, 3>}, {pipeline_mode = #tpu.pipeline_mode<synchronous>, transform_indices = @transform_1, window_bounds = array<i64: 27, 32>}, {pipeline_mode = #tpu.pipeline_mode<synchronous>, transform_indices = @transform_2, window_bounds = array<i64: 1, 32>}, {transform_indices = @transform_3, window_bounds = array<i64: 1, 8, 8, 32>}]} {
    %c0 = arith.constant 0 : index
    %c0_0 = arith.constant 0 : index
    %c0_1 = arith.constant 0 : index
    %c0_2 = arith.constant 0 : index
    %0 = vector.load %arg1[%c0, %c0_0, %c0_1, %c0_2] : memref<1x18x18x3xbf16, #tpu.memory_space<vmem>>, vector<1x16x16x3xbf16>
    %1 = vector.shape_cast %0 : vector<1x16x16x3xbf16> to vector<16x16x3xbf16>
    %c0_3 = arith.constant 0 : index
    %c0_4 = arith.constant 0 : index
    %c0_5 = arith.constant 0 : index
    %2 = vector.load %arg5[%c0_3, %c0_4, %c0_5] : memref<16x16x27xbf16, #tpu.memory_space<vmem>>, vector<16x16x3xbf16>
    tpu.vector_store %arg5[%c0_3, %c0_4, %c0_5], %1 {strides = array<i32>} : memref<16x16x27xbf16, #tpu.memory_space<vmem>>, vector<16x16x3xbf16>,
    %c0_6 = arith.constant 0 : index
    %c0_7 = arith.constant 0 : index
    %c1 = arith.constant 1 : index
    %c0_8 = arith.constant 0 : index
    %3 = vector.load %arg1[%c0_6, %c0_7, %c1, %c0_8] : memref<1x18x18x3xbf16, #tpu.memory_space<vmem>>, vector<1x16x16x3xbf16>
    %4 = vector.shape_cast %3 : vector<1x16x16x3xbf16> to vector<16x16x3xbf16>
    %c0_9 = arith.constant 0 : index
    %c0_10 = arith.constant 0 : index
    %c3 = arith.constant 3 : index
    %5 = vector.load %arg5[%c0_9, %c0_10, %c3] : memref<16x16x27xbf16, #tpu.memory_space<vmem>>, vector<16x16x3xbf16>
    tpu.vector_store %arg5[%c0_9, %c0_10, %c3], %4 {strides = array<i32>} : memref<16x16x27xbf16, #tpu.memory_space<vmem>>, vector<16x16x3xbf16>,
    %c0_11 = arith.constant 0 : index
    %c0_12 = arith.constant 0 : index
    %c2 = arith.constant 2 : index
    %c0_13 = arith.constant 0 : index
    %6 = vector.load %arg1[%c0_11, %c0_12, %c2, %c0_13] : memref<1x18x18x3xbf16, #tpu.memory_space<vmem>>, vector<1x16x16x3xbf16>
    %7 = vector.shape_cast %6 : vector<1x16x16x3xbf16> to vector<16x16x3xbf16>
    %c0_14 = arith.constant 0 : index
    %c0_15 = arith.constant 0 : index
    %c6 = arith.constant 6 : index
    %8 = vector.load %arg5[%c0_14, %c0_15, %c6] : memref<16x16x27xbf16, #tpu.memory_space<vmem>>, vector<16x16x3xbf16>
    tpu.vector_store %arg5[%c0_14, %c0_15, %c6], %7 {strides = array<i32>} : memref<16x16x27xbf16, #tpu.memory_space<vmem>>, vector<16x16x3xbf16>,
    %c0_16 = arith.constant 0 : index
    %c1_17 = arith.constant 1 : index
    %c0_18 = arith.constant 0 : index
    %c0_19 = arith.constant 0 : index
    %9 = vector.load %arg1[%c0_16, %c1_17, %c0_18, %c0_19] : memref<1x18x18x3xbf16, #tpu.memory_space<vmem>>, vector<1x16x16x3xbf16>
    %10 = vector.shape_cast %9 : vector<1x16x16x3xbf16> to vector<16x16x3xbf16>
    %c0_20 = arith.constant 0 : index
    %c0_21 = arith.constant 0 : index
    %c9 = arith.constant 9 : index
    %11 = vector.load %arg5[%c0_20, %c0_21, %c9] : memref<16x16x27xbf16, #tpu.memory_space<vmem>>, vector<16x16x3xbf16>
    tpu.vector_store %arg5[%c0_20, %c0_21, %c9], %10 {strides = array<i32>} : memref<16x16x27xbf16, #tpu.memory_space<vmem>>, vector<16x16x3xbf16>,
    %c0_22 = arith.constant 0 : index
    %c1_23 = arith.constant 1 : index
    %c1_24 = arith.constant 1 : index
    %c0_25 = arith.constant 0 : index
    %12 = vector.load %arg1[%c0_22, %c1_23, %c1_24, %c0_25] : memref<1x18x18x3xbf16, #tpu.memory_space<vmem>>, vector<1x16x16x3xbf16>
    %13 = vector.shape_cast %12 : vector<1x16x16x3xbf16> to vector<16x16x3xbf16>
    %c0_26 = arith.constant 0 : index
    %c0_27 = arith.constant 0 : index
    %c12 = arith.constant 12 : index
    %14 = vector.load %arg5[%c0_26, %c0_27, %c12] : memref<16x16x27xbf16, #tpu.memory_space<vmem>>, vector<16x16x3xbf16>
    tpu.vector_store %arg5[%c0_26, %c0_27, %c12], %13 {strides = array<i32>} : memref<16x16x27xbf16, #tpu.memory_space<vmem>>, vector<16x16x3xbf16>,
    %c0_28 = arith.constant 0 : index
    %c1_29 = arith.constant 1 : index
    %c2_30 = arith.constant 2 : index
    %c0_31 = arith.constant 0 : index
    %15 = vector.load %arg1[%c0_28, %c1_29, %c2_30, %c0_31] : memref<1x18x18x3xbf16, #tpu.memory_space<vmem>>, vector<1x16x16x3xbf16>
    %16 = vector.shape_cast %15 : vector<1x16x16x3xbf16> to vector<16x16x3xbf16>
    %c0_32 = arith.constant 0 : index
    %c0_33 = arith.constant 0 : index
    %c15 = arith.constant 15 : index
    %17 = vector.load %arg5[%c0_32, %c0_33, %c15] : memref<16x16x27xbf16, #tpu.memory_space<vmem>>, vector<16x16x3xbf16>
    tpu.vector_store %arg5[%c0_32, %c0_33, %c15], %16 {strides = array<i32>} : memref<16x16x27xbf16, #tpu.memory_space<vmem>>, vector<16x16x3xbf16>,
    %c0_34 = arith.constant 0 : index
    %c2_35 = arith.constant 2 : index
    %c0_36 = arith.constant 0 : index
    %c0_37 = arith.constant 0 : index
    %18 = vector.load %arg1[%c0_34, %c2_35, %c0_36, %c0_37] : memref<1x18x18x3xbf16, #tpu.memory_space<vmem>>, vector<1x16x16x3xbf16>
    %19 = vector.shape_cast %18 : vector<1x16x16x3xbf16> to vector<16x16x3xbf16>
    %c0_38 = arith.constant 0 : index
    %c0_39 = arith.constant 0 : index
    %c18 = arith.constant 18 : index
    %20 = vector.load %arg5[%c0_38, %c0_39, %c18] : memref<16x16x27xbf16, #tpu.memory_space<vmem>>, vector<16x16x3xbf16>
    tpu.vector_store %arg5[%c0_38, %c0_39, %c18], %19 {strides = array<i32>} : memref<16x16x27xbf16, #tpu.memory_space<vmem>>, vector<16x16x3xbf16>,
    %c0_40 = arith.constant 0 : index
    %c2_41 = arith.constant 2 : index
    %c1_42 = arith.constant 1 : index
    %c0_43 = arith.constant 0 : index
    %21 = vector.load %arg1[%c0_40, %c2_41, %c1_42, %c0_43] : memref<1x18x18x3xbf16, #tpu.memory_space<vmem>>, vector<1x16x16x3xbf16>
    %22 = vector.shape_cast %21 : vector<1x16x16x3xbf16> to vector<16x16x3xbf16>
    %c0_44 = arith.constant 0 : index
    %c0_45 = arith.constant 0 : index
    %c21 = arith.constant 21 : index
    %23 = vector.load %arg5[%c0_44, %c0_45, %c21] : memref<16x16x27xbf16, #tpu.memory_space<vmem>>, vector<16x16x3xbf16>
    tpu.vector_store %arg5[%c0_44, %c0_45, %c21], %22 {strides = array<i32>} : memref<16x16x27xbf16, #tpu.memory_space<vmem>>, vector<16x16x3xbf16>,
    %c0_46 = arith.constant 0 : index
    %c2_47 = arith.constant 2 : index
    %c2_48 = arith.constant 2 : index
    %c0_49 = arith.constant 0 : index
    %24 = vector.load %arg1[%c0_46, %c2_47, %c2_48, %c0_49] : memref<1x18x18x3xbf16, #tpu.memory_space<vmem>>, vector<1x16x16x3xbf16>
    %25 = vector.shape_cast %24 : vector<1x16x16x3xbf16> to vector<16x16x3xbf16>
    %c0_50 = arith.constant 0 : index
    %c0_51 = arith.constant 0 : index
    %c24 = arith.constant 24 : index
    %26 = vector.load %arg5[%c0_50, %c0_51, %c24] : memref<16x16x27xbf16, #tpu.memory_space<vmem>>, vector<16x16x3xbf16>
    tpu.vector_store %arg5[%c0_50, %c0_51, %c24], %25 {strides = array<i32>} : memref<16x16x27xbf16, #tpu.memory_space<vmem>>, vector<16x16x3xbf16>,
    %c0_52 = arith.constant 0 : index
    %c0_53 = arith.constant 0 : index
    %c0_54 = arith.constant 0 : index
    %27 = vector.load %arg5[%c0_52, %c0_53, %c0_54] : memref<16x16x27xbf16, #tpu.memory_space<vmem>>, vector<16x16x27xbf16>
    %28 = vector.shape_cast %27 : vector<16x16x27xbf16> to vector<256x27xbf16>
    %c0_55 = arith.constant 0 : index
    %c0_56 = arith.constant 0 : index
    %29 = vector.load %arg2[%c0_55, %c0_56] : memref<27x32xbf16, #tpu.memory_space<vmem>>, vector<27x32xbf16>
    %cst = arith.constant dense<0.000000e+00> : vector<256x32xf32>
    %30 = tpu.matmul %28, %29, %cst {dimension_numbers = #tpu.dot_dimension_numbers<[1], [0], [0], [1], [0, 0, 1, 1], [], []>} : vector<256x27xbf16>, vector<27x32xbf16>, vector<256x32xf32> -> vector<256x32xf32>
    %c0_57 = arith.constant 0 : index
    %c0_58 = arith.constant 0 : index
    %31 = vector.load %arg3[%c0_57, %c0_58] : memref<1x32xf32, #tpu.memory_space<vmem>>, vector<1x32xf32>
    %32 = vector.broadcast %31 : vector<1x32xf32> to vector<256x32xf32>
    %33 = arith.addf %30, %32 : vector<256x32xf32>
    %cst_59 = arith.constant 0.000000e+00 : f32
    %34 = vector.broadcast %cst_59 : f32 to vector<256x32xf32>
    %35 = arith.maximumf %33, %34 : vector<256x32xf32>
    %36 = vector.shape_cast %35 : vector<256x32xf32> to vector<8x32x32xf32>
    %37 = vector.extract_strided_slice %36 {offsets = [0, 0, 0], sizes = [8, 16, 32], strides = [1, 1, 1]} : vector<8x32x32xf32> to vector<8x16x32xf32>
    %38 = vector.extract_strided_slice %36 {offsets = [0, 16, 0], sizes = [8, 16, 32], strides = [1, 1, 1]} : vector<8x32x32xf32> to vector<8x16x32xf32>
    %39 = arith.maximumf %37, %38 : vector<8x16x32xf32>
    %40 = vector.shape_cast %39 : vector<8x16x32xf32> to vector<8x8x2x32xf32>
    %41 = vector.extract_strided_slice %40 {offsets = [0, 0, 0, 0], sizes = [8, 8, 1, 32], strides = [1, 1, 1, 1]} : vector<8x8x2x32xf32> to vector<8x8x1x32xf32>
    %42 = vector.shape_cast %41 : vector<8x8x1x32xf32> to vector<8x8x32xf32>
    %43 = vector.extract_strided_slice %40 {offsets = [0, 0, 1, 0], sizes = [8, 8, 1, 32], strides = [1, 1, 1, 1]} : vector<8x8x2x32xf32> to vector<8x8x1x32xf32>
    %44 = vector.shape_cast %43 : vector<8x8x1x32xf32> to vector<8x8x32xf32>
    %45 = arith.maximumf %42, %44 : vector<8x8x32xf32>
    %46 = arith.truncf %45 : vector<8x8x32xf32> to vector<8x8x32xbf16>
    %c0_60 = arith.constant 0 : index
    %c0_61 = arith.constant 0 : index
    %c0_62 = arith.constant 0 : index
    %c0_63 = arith.constant 0 : index
    %47 = vector.load %arg4[%c0_60, %c0_61, %c0_62, %c0_63] : memref<1x8x8x32xbf16, #tpu.memory_space<vmem>>, vector<1x8x8x32xbf16>
    %48 = vector.shape_cast %47 : vector<1x8x8x32xbf16> to vector<8x8x32xbf16>
    %49 = vector.shape_cast %46 : vector<8x8x32xbf16> to vector<1x8x8x32xbf16>
    tpu.vector_store %arg4[%c0_60, %c0_61, %c0_62, %c0_63], %49 {strides = array<i32>} : memref<1x8x8x32xbf16, #tpu.memory_space<vmem>>, vector<1x8x8x32xbf16>,
    return
  }
  func.func @transform_0(%arg0: i32) -> (i32, i32, i32, i32) {
    %c0_i32 = arith.constant 0 : i32
    %c0_i32_0 = arith.constant 0 : i32
    %c0_i32_1 = arith.constant 0 : i32
    %c0_i32_2 = arith.constant 0 : i32
    return %arg0, %c0_i32, %c0_i32_0, %c0_i32_1 : i32, i32, i32, i32
  }
  func.func @transform_1(%arg0: i32) -> (i32, i32) {
    %c0_i32 = arith.constant 0 : i32
    %c0_i32_0 = arith.constant 0 : i32
    %c0_i32_1 = arith.constant 0 : i32
    return %c0_i32, %c0_i32_0 : i32, i32
  }
  func.func @transform_2(%arg0: i32) -> (i32, i32) {
    %c0_i32 = arith.constant 0 : i32
    %c0_i32_0 = arith.constant 0 : i32
    %c0_i32_1 = arith.constant 0 : i32
    return %c0_i32, %c0_i32_0 : i32, i32
  }
  func.func @transform_3(%arg0: i32) -> (i32, i32, i32, i32) {
    %c0_i32 = arith.constant 0 : i32
    %c0_i32_0 = arith.constant 0 : i32
    %c0_i32_1 = arith.constant 0 : i32
    %c0_i32_2 = arith.constant 0 : i32
    return %arg0, %c0_i32, %c0_i32_0, %c0_i32_1 : i32, i32, i32, i32
  }
}

module attributes {stable_mosaic.version = 11 : i64} {
  func.func @_conv3x3_relu_pool_kernel(%arg0: i32, %arg1: memref<1x10x10x32xbf16, #tpu.memory_space<vmem>>, %arg2: memref<288x64xbf16, #tpu.memory_space<vmem>>, %arg3: memref<1x64xf32, #tpu.memory_space<vmem>>, %arg4: memref<1x4x4x64xbf16, #tpu.memory_space<vmem>>, %arg5: memref<8x8x288xbf16, #tpu.memory_space<vmem>>) attributes {dimension_semantics = [#tpu.dimension_semantics<parallel>], iteration_bounds = array<i64: 2>, scalar_prefetch = 0 : i64, scratch_operands = 1 : i64, tpu.core_type = #tpu.core_type<tc>, window_params = [{transform_indices = @transform_0, window_bounds = array<i64: 1, 10, 10, 32>}, {pipeline_mode = #tpu.pipeline_mode<synchronous>, transform_indices = @transform_1, window_bounds = array<i64: 288, 64>}, {pipeline_mode = #tpu.pipeline_mode<synchronous>, transform_indices = @transform_2, window_bounds = array<i64: 1, 64>}, {transform_indices = @transform_3, window_bounds = array<i64: 1, 4, 4, 64>}]} {
    %c0 = arith.constant 0 : index
    %c0_0 = arith.constant 0 : index
    %c0_1 = arith.constant 0 : index
    %c0_2 = arith.constant 0 : index
    %0 = vector.load %arg1[%c0, %c0_0, %c0_1, %c0_2] : memref<1x10x10x32xbf16, #tpu.memory_space<vmem>>, vector<1x8x8x32xbf16>
    %1 = vector.shape_cast %0 : vector<1x8x8x32xbf16> to vector<8x8x32xbf16>
    %c0_3 = arith.constant 0 : index
    %c0_4 = arith.constant 0 : index
    %c0_5 = arith.constant 0 : index
    %2 = vector.load %arg5[%c0_3, %c0_4, %c0_5] : memref<8x8x288xbf16, #tpu.memory_space<vmem>>, vector<8x8x32xbf16>
    tpu.vector_store %arg5[%c0_3, %c0_4, %c0_5], %1 {strides = array<i32>} : memref<8x8x288xbf16, #tpu.memory_space<vmem>>, vector<8x8x32xbf16>,
    %c0_6 = arith.constant 0 : index
    %c0_7 = arith.constant 0 : index
    %c1 = arith.constant 1 : index
    %c0_8 = arith.constant 0 : index
    %3 = vector.load %arg1[%c0_6, %c0_7, %c1, %c0_8] : memref<1x10x10x32xbf16, #tpu.memory_space<vmem>>, vector<1x8x8x32xbf16>
    %4 = vector.shape_cast %3 : vector<1x8x8x32xbf16> to vector<8x8x32xbf16>
    %c0_9 = arith.constant 0 : index
    %c0_10 = arith.constant 0 : index
    %c32 = arith.constant 32 : index
    %5 = vector.load %arg5[%c0_9, %c0_10, %c32] : memref<8x8x288xbf16, #tpu.memory_space<vmem>>, vector<8x8x32xbf16>
    tpu.vector_store %arg5[%c0_9, %c0_10, %c32], %4 {strides = array<i32>} : memref<8x8x288xbf16, #tpu.memory_space<vmem>>, vector<8x8x32xbf16>,
    %c0_11 = arith.constant 0 : index
    %c0_12 = arith.constant 0 : index
    %c2 = arith.constant 2 : index
    %c0_13 = arith.constant 0 : index
    %6 = vector.load %arg1[%c0_11, %c0_12, %c2, %c0_13] : memref<1x10x10x32xbf16, #tpu.memory_space<vmem>>, vector<1x8x8x32xbf16>
    %7 = vector.shape_cast %6 : vector<1x8x8x32xbf16> to vector<8x8x32xbf16>
    %c0_14 = arith.constant 0 : index
    %c0_15 = arith.constant 0 : index
    %c64 = arith.constant 64 : index
    %8 = vector.load %arg5[%c0_14, %c0_15, %c64] : memref<8x8x288xbf16, #tpu.memory_space<vmem>>, vector<8x8x32xbf16>
    tpu.vector_store %arg5[%c0_14, %c0_15, %c64], %7 {strides = array<i32>} : memref<8x8x288xbf16, #tpu.memory_space<vmem>>, vector<8x8x32xbf16>,
    %c0_16 = arith.constant 0 : index
    %c1_17 = arith.constant 1 : index
    %c0_18 = arith.constant 0 : index
    %c0_19 = arith.constant 0 : index
    %9 = vector.load %arg1[%c0_16, %c1_17, %c0_18, %c0_19] : memref<1x10x10x32xbf16, #tpu.memory_space<vmem>>, vector<1x8x8x32xbf16>
    %10 = vector.shape_cast %9 : vector<1x8x8x32xbf16> to vector<8x8x32xbf16>
    %c0_20 = arith.constant 0 : index
    %c0_21 = arith.constant 0 : index
    %c96 = arith.constant 96 : index
    %11 = vector.load %arg5[%c0_20, %c0_21, %c96] : memref<8x8x288xbf16, #tpu.memory_space<vmem>>, vector<8x8x32xbf16>
    tpu.vector_store %arg5[%c0_20, %c0_21, %c96], %10 {strides = array<i32>} : memref<8x8x288xbf16, #tpu.memory_space<vmem>>, vector<8x8x32xbf16>,
    %c0_22 = arith.constant 0 : index
    %c1_23 = arith.constant 1 : index
    %c1_24 = arith.constant 1 : index
    %c0_25 = arith.constant 0 : index
    %12 = vector.load %arg1[%c0_22, %c1_23, %c1_24, %c0_25] : memref<1x10x10x32xbf16, #tpu.memory_space<vmem>>, vector<1x8x8x32xbf16>
    %13 = vector.shape_cast %12 : vector<1x8x8x32xbf16> to vector<8x8x32xbf16>
    %c0_26 = arith.constant 0 : index
    %c0_27 = arith.constant 0 : index
    %c128 = arith.constant 128 : index
    %14 = vector.load %arg5[%c0_26, %c0_27, %c128] : memref<8x8x288xbf16, #tpu.memory_space<vmem>>, vector<8x8x32xbf16>
    tpu.vector_store %arg5[%c0_26, %c0_27, %c128], %13 {strides = array<i32>} : memref<8x8x288xbf16, #tpu.memory_space<vmem>>, vector<8x8x32xbf16>,
    %c0_28 = arith.constant 0 : index
    %c1_29 = arith.constant 1 : index
    %c2_30 = arith.constant 2 : index
    %c0_31 = arith.constant 0 : index
    %15 = vector.load %arg1[%c0_28, %c1_29, %c2_30, %c0_31] : memref<1x10x10x32xbf16, #tpu.memory_space<vmem>>, vector<1x8x8x32xbf16>
    %16 = vector.shape_cast %15 : vector<1x8x8x32xbf16> to vector<8x8x32xbf16>
    %c0_32 = arith.constant 0 : index
    %c0_33 = arith.constant 0 : index
    %c160 = arith.constant 160 : index
    %17 = vector.load %arg5[%c0_32, %c0_33, %c160] : memref<8x8x288xbf16, #tpu.memory_space<vmem>>, vector<8x8x32xbf16>
    tpu.vector_store %arg5[%c0_32, %c0_33, %c160], %16 {strides = array<i32>} : memref<8x8x288xbf16, #tpu.memory_space<vmem>>, vector<8x8x32xbf16>,
    %c0_34 = arith.constant 0 : index
    %c2_35 = arith.constant 2 : index
    %c0_36 = arith.constant 0 : index
    %c0_37 = arith.constant 0 : index
    %18 = vector.load %arg1[%c0_34, %c2_35, %c0_36, %c0_37] : memref<1x10x10x32xbf16, #tpu.memory_space<vmem>>, vector<1x8x8x32xbf16>
    %19 = vector.shape_cast %18 : vector<1x8x8x32xbf16> to vector<8x8x32xbf16>
    %c0_38 = arith.constant 0 : index
    %c0_39 = arith.constant 0 : index
    %c192 = arith.constant 192 : index
    %20 = vector.load %arg5[%c0_38, %c0_39, %c192] : memref<8x8x288xbf16, #tpu.memory_space<vmem>>, vector<8x8x32xbf16>
    tpu.vector_store %arg5[%c0_38, %c0_39, %c192], %19 {strides = array<i32>} : memref<8x8x288xbf16, #tpu.memory_space<vmem>>, vector<8x8x32xbf16>,
    %c0_40 = arith.constant 0 : index
    %c2_41 = arith.constant 2 : index
    %c1_42 = arith.constant 1 : index
    %c0_43 = arith.constant 0 : index
    %21 = vector.load %arg1[%c0_40, %c2_41, %c1_42, %c0_43] : memref<1x10x10x32xbf16, #tpu.memory_space<vmem>>, vector<1x8x8x32xbf16>
    %22 = vector.shape_cast %21 : vector<1x8x8x32xbf16> to vector<8x8x32xbf16>
    %c0_44 = arith.constant 0 : index
    %c0_45 = arith.constant 0 : index
    %c224 = arith.constant 224 : index
    %23 = vector.load %arg5[%c0_44, %c0_45, %c224] : memref<8x8x288xbf16, #tpu.memory_space<vmem>>, vector<8x8x32xbf16>
    tpu.vector_store %arg5[%c0_44, %c0_45, %c224], %22 {strides = array<i32>} : memref<8x8x288xbf16, #tpu.memory_space<vmem>>, vector<8x8x32xbf16>,
    %c0_46 = arith.constant 0 : index
    %c2_47 = arith.constant 2 : index
    %c2_48 = arith.constant 2 : index
    %c0_49 = arith.constant 0 : index
    %24 = vector.load %arg1[%c0_46, %c2_47, %c2_48, %c0_49] : memref<1x10x10x32xbf16, #tpu.memory_space<vmem>>, vector<1x8x8x32xbf16>
    %25 = vector.shape_cast %24 : vector<1x8x8x32xbf16> to vector<8x8x32xbf16>
    %c0_50 = arith.constant 0 : index
    %c0_51 = arith.constant 0 : index
    %c256 = arith.constant 256 : index
    %26 = vector.load %arg5[%c0_50, %c0_51, %c256] : memref<8x8x288xbf16, #tpu.memory_space<vmem>>, vector<8x8x32xbf16>
    tpu.vector_store %arg5[%c0_50, %c0_51, %c256], %25 {strides = array<i32>} : memref<8x8x288xbf16, #tpu.memory_space<vmem>>, vector<8x8x32xbf16>,
    %c0_52 = arith.constant 0 : index
    %c0_53 = arith.constant 0 : index
    %c0_54 = arith.constant 0 : index
    %27 = vector.load %arg5[%c0_52, %c0_53, %c0_54] : memref<8x8x288xbf16, #tpu.memory_space<vmem>>, vector<8x8x288xbf16>
    %28 = vector.shape_cast %27 : vector<8x8x288xbf16> to vector<64x288xbf16>
    %c0_55 = arith.constant 0 : index
    %c0_56 = arith.constant 0 : index
    %29 = vector.load %arg2[%c0_55, %c0_56] : memref<288x64xbf16, #tpu.memory_space<vmem>>, vector<288x64xbf16>
    %cst = arith.constant dense<0.000000e+00> : vector<64x64xf32>
    %30 = tpu.matmul %28, %29, %cst {dimension_numbers = #tpu.dot_dimension_numbers<[1], [0], [0], [1], [0, 0, 1, 1], [], []>} : vector<64x288xbf16>, vector<288x64xbf16>, vector<64x64xf32> -> vector<64x64xf32>
    %c0_57 = arith.constant 0 : index
    %c0_58 = arith.constant 0 : index
    %31 = vector.load %arg3[%c0_57, %c0_58] : memref<1x64xf32, #tpu.memory_space<vmem>>, vector<1x64xf32>
    %32 = vector.broadcast %31 : vector<1x64xf32> to vector<64x64xf32>
    %33 = arith.addf %30, %32 : vector<64x64xf32>
    %cst_59 = arith.constant 0.000000e+00 : f32
    %34 = vector.broadcast %cst_59 : f32 to vector<64x64xf32>
    %35 = arith.maximumf %33, %34 : vector<64x64xf32>
    %36 = vector.shape_cast %35 : vector<64x64xf32> to vector<4x16x64xf32>
    %37 = vector.extract_strided_slice %36 {offsets = [0, 0, 0], sizes = [4, 8, 64], strides = [1, 1, 1]} : vector<4x16x64xf32> to vector<4x8x64xf32>
    %38 = vector.extract_strided_slice %36 {offsets = [0, 8, 0], sizes = [4, 8, 64], strides = [1, 1, 1]} : vector<4x16x64xf32> to vector<4x8x64xf32>
    %39 = arith.maximumf %37, %38 : vector<4x8x64xf32>
    %40 = vector.shape_cast %39 : vector<4x8x64xf32> to vector<4x4x2x64xf32>
    %41 = vector.extract_strided_slice %40 {offsets = [0, 0, 0, 0], sizes = [4, 4, 1, 64], strides = [1, 1, 1, 1]} : vector<4x4x2x64xf32> to vector<4x4x1x64xf32>
    %42 = vector.shape_cast %41 : vector<4x4x1x64xf32> to vector<4x4x64xf32>
    %43 = vector.extract_strided_slice %40 {offsets = [0, 0, 1, 0], sizes = [4, 4, 1, 64], strides = [1, 1, 1, 1]} : vector<4x4x2x64xf32> to vector<4x4x1x64xf32>
    %44 = vector.shape_cast %43 : vector<4x4x1x64xf32> to vector<4x4x64xf32>
    %45 = arith.maximumf %42, %44 : vector<4x4x64xf32>
    %46 = arith.truncf %45 : vector<4x4x64xf32> to vector<4x4x64xbf16>
    %c0_60 = arith.constant 0 : index
    %c0_61 = arith.constant 0 : index
    %c0_62 = arith.constant 0 : index
    %c0_63 = arith.constant 0 : index
    %47 = vector.load %arg4[%c0_60, %c0_61, %c0_62, %c0_63] : memref<1x4x4x64xbf16, #tpu.memory_space<vmem>>, vector<1x4x4x64xbf16>
    %48 = vector.shape_cast %47 : vector<1x4x4x64xbf16> to vector<4x4x64xbf16>
    %49 = vector.shape_cast %46 : vector<4x4x64xbf16> to vector<1x4x4x64xbf16>
    tpu.vector_store %arg4[%c0_60, %c0_61, %c0_62, %c0_63], %49 {strides = array<i32>} : memref<1x4x4x64xbf16, #tpu.memory_space<vmem>>, vector<1x4x4x64xbf16>,
    return
  }
  func.func @transform_0(%arg0: i32) -> (i32, i32, i32, i32) {
    %c0_i32 = arith.constant 0 : i32
    %c0_i32_0 = arith.constant 0 : i32
    %c0_i32_1 = arith.constant 0 : i32
    %c0_i32_2 = arith.constant 0 : i32
    return %arg0, %c0_i32, %c0_i32_0, %c0_i32_1 : i32, i32, i32, i32
  }
  func.func @transform_1(%arg0: i32) -> (i32, i32) {
    %c0_i32 = arith.constant 0 : i32
    %c0_i32_0 = arith.constant 0 : i32
    %c0_i32_1 = arith.constant 0 : i32
    return %c0_i32, %c0_i32_0 : i32, i32
  }
  func.func @transform_2(%arg0: i32) -> (i32, i32) {
    %c0_i32 = arith.constant 0 : i32
    %c0_i32_0 = arith.constant 0 : i32
    %c0_i32_1 = arith.constant 0 : i32
    return %c0_i32, %c0_i32_0 : i32, i32
  }
  func.func @transform_3(%arg0: i32) -> (i32, i32, i32, i32) {
    %c0_i32 = arith.constant 0 : i32
    %c0_i32_0 = arith.constant 0 : i32
    %c0_i32_1 = arith.constant 0 : i32
    %c0_i32_2 = arith.constant 0 : i32
    return %arg0, %c0_i32, %c0_i32_0, %c0_i32_1 : i32, i32, i32, i32
  }
}

module attributes {stable_mosaic.version = 11 : i64} {
  func.func @_linear_kernel(%arg0: i32, %arg1: i32, %arg2: i32, %arg3: memref<16x1024xbf16, #tpu.memory_space<vmem>>, %arg4: memref<1024x256xbf16, #tpu.memory_space<vmem>>, %arg5: memref<1x256xf32, #tpu.memory_space<vmem>>, %arg6: memref<16x256xbf16, #tpu.memory_space<vmem>>, %arg7: memref<16x256xf32, #tpu.memory_space<vmem>>) attributes {dimension_semantics = [#tpu.dimension_semantics<parallel>, #tpu.dimension_semantics<parallel>, #tpu.dimension_semantics<arbitrary>], iteration_bounds = array<i64: 1, 2, 1>, scalar_prefetch = 0 : i64, scratch_operands = 1 : i64, tpu.core_type = #tpu.core_type<tc>, window_params = [{transform_indices = @transform_0, window_bounds = array<i64: 16, 1024>}, {transform_indices = @transform_1, window_bounds = array<i64: 1024, 256>}, {transform_indices = @transform_2, window_bounds = array<i64: 1, 256>}, {transform_indices = @transform_3, window_bounds = array<i64: 16, 256>}]} {
    %c0_i32 = arith.constant 0 : i32
    %0 = arith.cmpi eq, %arg2, %c0_i32 : i32
    %1 = arith.extui %0 : i1 to i32
    %c0_i32_0 = arith.constant 0 : i32
    %2 = arith.cmpi ne, %1, %c0_i32_0 : i32
    scf.if %2 {
      %cst_10 = arith.constant 0.000000e+00 : f32
      %12 = vector.broadcast %cst_10 : f32 to vector<16x256xf32>
      %c0_11 = arith.constant 0 : index
      %c0_12 = arith.constant 0 : index
      %13 = vector.load %arg7[%c0_11, %c0_12] : memref<16x256xf32, #tpu.memory_space<vmem>>, vector<16x256xf32>
      tpu.vector_store %arg7[%c0_11, %c0_12], %12 {strides = array<i32>} : memref<16x256xf32, #tpu.memory_space<vmem>>, vector<16x256xf32>,
    } else {
    }
    %c0 = arith.constant 0 : index
    %c0_1 = arith.constant 0 : index
    %3 = vector.load %arg7[%c0, %c0_1] : memref<16x256xf32, #tpu.memory_space<vmem>>, vector<16x256xf32>
    %c0_2 = arith.constant 0 : index
    %c0_3 = arith.constant 0 : index
    %4 = vector.load %arg3[%c0_2, %c0_3] : memref<16x1024xbf16, #tpu.memory_space<vmem>>, vector<16x1024xbf16>
    %c0_4 = arith.constant 0 : index
    %c0_5 = arith.constant 0 : index
    %5 = vector.load %arg4[%c0_4, %c0_5] : memref<1024x256xbf16, #tpu.memory_space<vmem>>, vector<1024x256xbf16>
    %cst = arith.constant dense<0.000000e+00> : vector<16x256xf32>
    %6 = tpu.matmul %4, %5, %cst {dimension_numbers = #tpu.dot_dimension_numbers<[1], [0], [0], [1], [0, 0, 1, 1], [], []>} : vector<16x1024xbf16>, vector<1024x256xbf16>, vector<16x256xf32> -> vector<16x256xf32>
    %7 = arith.addf %3, %6 : vector<16x256xf32>
    %c0_6 = arith.constant 0 : index
    %c0_7 = arith.constant 0 : index
    %8 = vector.load %arg7[%c0_6, %c0_7] : memref<16x256xf32, #tpu.memory_space<vmem>>, vector<16x256xf32>
    tpu.vector_store %arg7[%c0_6, %c0_7], %7 {strides = array<i32>} : memref<16x256xf32, #tpu.memory_space<vmem>>, vector<16x256xf32>,
    %c0_i32_8 = arith.constant 0 : i32
    %9 = arith.cmpi eq, %arg2, %c0_i32_8 : i32
    %10 = arith.extui %9 : i1 to i32
    %c0_i32_9 = arith.constant 0 : i32
    %11 = arith.cmpi ne, %10, %c0_i32_9 : i32
    scf.if %11 {
      %c0_10 = arith.constant 0 : index
      %c0_11 = arith.constant 0 : index
      %12 = vector.load %arg7[%c0_10, %c0_11] : memref<16x256xf32, #tpu.memory_space<vmem>>, vector<16x256xf32>
      %c0_12 = arith.constant 0 : index
      %c0_13 = arith.constant 0 : index
      %13 = vector.load %arg5[%c0_12, %c0_13] : memref<1x256xf32, #tpu.memory_space<vmem>>, vector<1x256xf32>
      %14 = vector.broadcast %13 : vector<1x256xf32> to vector<16x256xf32>
      %15 = arith.addf %12, %14 : vector<16x256xf32>
      %cst_14 = arith.constant 0.000000e+00 : f32
      %16 = vector.broadcast %cst_14 : f32 to vector<16x256xf32>
      %17 = arith.maximumf %15, %16 : vector<16x256xf32>
      %18 = arith.truncf %17 : vector<16x256xf32> to vector<16x256xbf16>
      %c0_15 = arith.constant 0 : index
      %c0_16 = arith.constant 0 : index
      %19 = vector.load %arg6[%c0_15, %c0_16] : memref<16x256xbf16, #tpu.memory_space<vmem>>, vector<16x256xbf16>
      tpu.vector_store %arg6[%c0_15, %c0_16], %18 {strides = array<i32>} : memref<16x256xbf16, #tpu.memory_space<vmem>>, vector<16x256xbf16>,
    } else {
    }
    return
  }
  func.func @transform_0(%arg0: i32, %arg1: i32, %arg2: i32) -> (i32, i32) {
    %c0_i32 = arith.constant 0 : i32
    return %arg0, %arg2 : i32, i32
  }
  func.func @transform_1(%arg0: i32, %arg1: i32, %arg2: i32) -> (i32, i32) {
    %c0_i32 = arith.constant 0 : i32
    return %arg2, %arg1 : i32, i32
  }
  func.func @transform_2(%arg0: i32, %arg1: i32, %arg2: i32) -> (i32, i32) {
    %c0_i32 = arith.constant 0 : i32
    %c0_i32_0 = arith.constant 0 : i32
    return %c0_i32, %arg1 : i32, i32
  }
  func.func @transform_3(%arg0: i32, %arg1: i32, %arg2: i32) -> (i32, i32) {
    %c0_i32 = arith.constant 0 : i32
    return %arg0, %arg1 : i32, i32
  }
}

module attributes {stable_mosaic.version = 11 : i64} {
  func.func @_linear_kernel(%arg0: i32, %arg1: i32, %arg2: i32, %arg3: memref<16x512xbf16, #tpu.memory_space<vmem>>, %arg4: memref<512x128xbf16, #tpu.memory_space<vmem>>, %arg5: memref<1x128xf32, #tpu.memory_space<vmem>>, %arg6: memref<16x128xf32, #tpu.memory_space<vmem>>, %arg7: memref<16x128xf32, #tpu.memory_space<vmem>>) attributes {dimension_semantics = [#tpu.dimension_semantics<parallel>, #tpu.dimension_semantics<parallel>, #tpu.dimension_semantics<arbitrary>], iteration_bounds = array<i64: 1, 1, 1>, scalar_prefetch = 0 : i64, scratch_operands = 1 : i64, tpu.core_type = #tpu.core_type<tc>, window_params = [{transform_indices = @transform_0, window_bounds = array<i64: 16, 512>}, {transform_indices = @transform_1, window_bounds = array<i64: 512, 128>}, {transform_indices = @transform_2, window_bounds = array<i64: 1, 128>}, {transform_indices = @transform_3, window_bounds = array<i64: 16, 128>}]} {
    %c0_i32 = arith.constant 0 : i32
    %0 = arith.cmpi eq, %arg2, %c0_i32 : i32
    %1 = arith.extui %0 : i1 to i32
    %c0_i32_0 = arith.constant 0 : i32
    %2 = arith.cmpi ne, %1, %c0_i32_0 : i32
    scf.if %2 {
      %cst_10 = arith.constant 0.000000e+00 : f32
      %12 = vector.broadcast %cst_10 : f32 to vector<16x128xf32>
      %c0_11 = arith.constant 0 : index
      %c0_12 = arith.constant 0 : index
      %13 = vector.load %arg7[%c0_11, %c0_12] : memref<16x128xf32, #tpu.memory_space<vmem>>, vector<16x128xf32>
      tpu.vector_store %arg7[%c0_11, %c0_12], %12 {strides = array<i32>} : memref<16x128xf32, #tpu.memory_space<vmem>>, vector<16x128xf32>,
    } else {
    }
    %c0 = arith.constant 0 : index
    %c0_1 = arith.constant 0 : index
    %3 = vector.load %arg7[%c0, %c0_1] : memref<16x128xf32, #tpu.memory_space<vmem>>, vector<16x128xf32>
    %c0_2 = arith.constant 0 : index
    %c0_3 = arith.constant 0 : index
    %4 = vector.load %arg3[%c0_2, %c0_3] : memref<16x512xbf16, #tpu.memory_space<vmem>>, vector<16x512xbf16>
    %c0_4 = arith.constant 0 : index
    %c0_5 = arith.constant 0 : index
    %5 = vector.load %arg4[%c0_4, %c0_5] : memref<512x128xbf16, #tpu.memory_space<vmem>>, vector<512x128xbf16>
    %cst = arith.constant dense<0.000000e+00> : vector<16x128xf32>
    %6 = tpu.matmul %4, %5, %cst {dimension_numbers = #tpu.dot_dimension_numbers<[1], [0], [0], [1], [0, 0, 1, 1], [], []>} : vector<16x512xbf16>, vector<512x128xbf16>, vector<16x128xf32> -> vector<16x128xf32>
    %7 = arith.addf %3, %6 : vector<16x128xf32>
    %c0_6 = arith.constant 0 : index
    %c0_7 = arith.constant 0 : index
    %8 = vector.load %arg7[%c0_6, %c0_7] : memref<16x128xf32, #tpu.memory_space<vmem>>, vector<16x128xf32>
    tpu.vector_store %arg7[%c0_6, %c0_7], %7 {strides = array<i32>} : memref<16x128xf32, #tpu.memory_space<vmem>>, vector<16x128xf32>,
    %c0_i32_8 = arith.constant 0 : i32
    %9 = arith.cmpi eq, %arg2, %c0_i32_8 : i32
    %10 = arith.extui %9 : i1 to i32
    %c0_i32_9 = arith.constant 0 : i32
    %11 = arith.cmpi ne, %10, %c0_i32_9 : i32
    scf.if %11 {
      %c0_10 = arith.constant 0 : index
      %c0_11 = arith.constant 0 : index
      %12 = vector.load %arg7[%c0_10, %c0_11] : memref<16x128xf32, #tpu.memory_space<vmem>>, vector<16x128xf32>
      %c0_12 = arith.constant 0 : index
      %c0_13 = arith.constant 0 : index
      %13 = vector.load %arg5[%c0_12, %c0_13] : memref<1x128xf32, #tpu.memory_space<vmem>>, vector<1x128xf32>
      %14 = vector.broadcast %13 : vector<1x128xf32> to vector<16x128xf32>
      %15 = arith.addf %12, %14 : vector<16x128xf32>
      %c0_14 = arith.constant 0 : index
      %c0_15 = arith.constant 0 : index
      %16 = vector.load %arg6[%c0_14, %c0_15] : memref<16x128xf32, #tpu.memory_space<vmem>>, vector<16x128xf32>
      tpu.vector_store %arg6[%c0_14, %c0_15], %15 {strides = array<i32>} : memref<16x128xf32, #tpu.memory_space<vmem>>, vector<16x128xf32>,
    } else {
    }
    return
  }
  func.func @transform_0(%arg0: i32, %arg1: i32, %arg2: i32) -> (i32, i32) {
    %c0_i32 = arith.constant 0 : i32
    return %arg0, %arg2 : i32, i32
  }
  func.func @transform_1(%arg0: i32, %arg1: i32, %arg2: i32) -> (i32, i32) {
    %c0_i32 = arith.constant 0 : i32
    return %arg2, %arg1 : i32, i32
  }
  func.func @transform_2(%arg0: i32, %arg1: i32, %arg2: i32) -> (i32, i32) {
    %c0_i32 = arith.constant 0 : i32
    %c0_i32_0 = arith.constant 0 : i32
    return %c0_i32, %arg1 : i32, i32
  }
  func.func @transform_3(%arg0: i32, %arg1: i32, %arg2: i32) -> (i32, i32) {
    %c0_i32 = arith.constant 0 : i32
    return %arg0, %arg1 : i32, i32
  }
}

</mosaic_0001>

<bundles_post_ra>
// kernel: tomato_forward.6
= control target key start
LH: loop header
LB: loop body
LE: loop exit
PB: predicated region body
PF: predicated region fallthrough
CT: control target
= control target key end

     0   :  { %s2463_s12 = smov 0   ;;  %s2465_s13 = smov 0   ;;  %s2995_s0 = inlined_call_operand.vmem [shape: bf16[16,1024], index: 0, kind: input, shape index: {}]   ;;  %s2996_s1 = inlined_call_operand.vmem [shape: bf16[1024,512], index: 1, kind: input, shape index: {}]   ;;  %s2997_s2 = inlined_call_operand.vmem [shape: f32[1,512], index: 2, kind: input, shape index: {}]   ;;  %s2998_s3 = inlined_call_operand.vmem [shape: bf16[16,512], index: 3, kind: output, shape index: {}]  }
   0x1   :  { %s2467_s14 = smov 0   ;;  %s2469_s15 = smov 0  }
   0x2   :  { %s2471_s16 = smov 0  }
   0x3 LB: > { %s28_s17 = sadd.s32 1, %s2437_s15  ;;  %s2000_s18 = sadd.s32 4294967295, %s2441_s16   ;;  %s2441_s16 = sphi %s2471_s16, %s13_s16   ;;  %s2437_s15 = sphi %s2469_s15, %s3003_s15   ;;  %s2433_s14 = sphi %s2467_s14, %s3002_s14   ;;  %s2429_s13 = sphi %s2465_s13, %s3001_s13   ;;  %s2425_s12 = sphi %s2463_s12, %s3000_s12  }
   0x4   : > { %p30_p0 = scmp.ge.s32.totalorder %s28_s17, 2  ;;  %p76_p1 = scmp.ne.s32.totalorder %s2429_s13, %s2425_s12 }
   0x5   : > { %p77_p2 = scmp.eq.s32.totalorder %s2441_s16, 0  ;;  %p134_p4 = scmp.eq.s32.totalorder %s2000_s18, 1 }
   0x6   : > { %s3005_s17 = smov (%p30_p0, %s28_s17), 0  ;;  %s69_s20 = sadd.s32 1, %s2429_s13 }
   0x7   : > { %p78_p3 = por %p77_p2, %p76_p1  ;;  %s65_s19 = ssub.s32 %s2437_s15, %s3005_s17 }
   0x8   : > { %p67_p5 = scmp.eq.s32.totalorder %s65_s19, 0  ;;  %p2498_p6 = por %p134_p4, %p76_p1 }
   0x9   : > { %p2004_p7 = scmp.ge.s32.totalorder %s2441_s16, 2 }
   0xa   : > { %s2503_s22 = scalar_select %p67_p5, %s2429_s13, %s69_s20  }
   0xb   : > { %171 = sbr.rel (%p2004_p7) target bundleno = 86 (0x56), region = 20 }
  0x12   : > { %174 = sbr.rel (!%p78_p3) target bundleno = 86 (0x56), region = 24  ;;  %s176_s23 = sand.u32 (%p78_p3), 1, %s2429_s13  }
  0x13   : > { %s2155_s24 = sshll.u32 (%p78_p3), %s2437_s15, 3  ;;  %s2005_s25 = sshll.u32 (%p78_p3), %s176_s23, 10 }
  0x14   : > { %s2511_s28 = scalar_lea.vmem (%p78_p3), %s2996_s1, %s2155_s24  ;;  %s2516_s29 = scalar_lea.vmem (%p78_p3), [#allocation3], %s2005_s25 }
  0x15   : > { %v466_v0 = vld [vmem:[%s2511_s28] sm:$0xff] (%p78_p3)  ;;  %v468_v1 = vld [vmem:[%s2511_s28 + $0x10] sm:$0xff] (%p78_p3) }
  0x16   : > { %v470_v2 = vld [vmem:[%s2511_s28 + $0x20] sm:$0xff] (%p78_p3)  ;;  %467 = vst [vmem:[%s2516_s29] sm:$0xff] (%p78_p3), %v466_v0  ;;  %469 = vst [vmem:[%s2516_s29 + $0x8] sm:$0xff] (%p78_p3), %v468_v1  ;;  %v472_v3 = vld [vmem:[%s2511_s28 + $0x30] sm:$0xff] (%p78_p3) }
  0x17   : > { %471 = vst [vmem:[%s2516_s29 + $0x10] sm:$0xff] (%p78_p3), %v470_v2  ;;  %v474_v4 = vld [vmem:[%s2511_s28 + $0x40] sm:$0xff] (%p78_p3)  ;;  %v476_v5 = vld [vmem:[%s2511_s28 + $0x50] sm:$0xff] (%p78_p3)  ;;  %473 = vst [vmem:[%s2516_s29 + $0x18] sm:$0xff] (%p78_p3), %v472_v3 }
  0x18   : > { %475 = vst [vmem:[%s2516_s29 + $0x20] sm:$0xff] (%p78_p3), %v474_v4  ;;  %477 = vst [vmem:[%s2516_s29 + $0x28] sm:$0xff] (%p78_p3), %v476_v5  ;;  %v478_v6 = vld [vmem:[%s2511_s28 + $0x60] sm:$0xff] (%p78_p3)  ;;  %v480_v7 = vld [vmem:[%s2511_s28 + $0x70] sm:$0xff] (%p78_p3) }
  0x19   : > { %v482_v8 = vld [vmem:[%s2511_s28 + $0x80] sm:$0xff]  ;;  %479 = vst [vmem:[%s2516_s29 + $0x30] sm:$0xff] %v478_v6  ;;  %481 = vst [vmem:[%s2516_s29 + $0x38] sm:$0xff] %v480_v7  ;;  %v484_v9 = vld [vmem:[%s2511_s28 + $0x90] sm:$0xff] }
  0x1a   : > { %483 = vst [vmem:[%s2516_s29 + $0x40] sm:$0xff] %v482_v8  ;;  %v486_v10 = vld [vmem:[%s2511_s28 + $0xa0] sm:$0xff]  ;;  %v488_v11 = vld [vmem:[%s2511_s28 + $0xb0] sm:$0xff]  ;;  %485 = vst [vmem:[%s2516_s29 + $0x48] sm:$0xff] %v484_v9 }
  0x1b   : > { %487 = vst [vmem:[%s2516_s29 + $0x50] sm:$0xff] %v486_v10  ;;  %489 = vst [vmem:[%s2516_s29 + $0x58] sm:$0xff] %v488_v11  ;;  %v490_v12 = vld [vmem:[%s2511_s28 + $0xc0] sm:$0xff]  ;;  %v492_v13 = vld [vmem:[%s2511_s28 + $0xd0] sm:$0xff] }
  0x1c   : > { %v494_v14 = vld [vmem:[%s2511_s28 + $0xe0] sm:$0xff]  ;;  %491 = vst [vmem:[%s2516_s29 + $0x60] sm:$0xff] %v490_v12  ;;  %493 = vst [vmem:[%s2516_s29 + $0x68] sm:$0xff] %v492_v13  ;;  %v496_v15 = vld [vmem:[%s2511_s28 + $0xf0] sm:$0xff] }
  0x1d   : > { %495 = vst [vmem:[%s2516_s29 + $0x70] sm:$0xff] %v494_v14  ;;  %v498_v16 = vld [vmem:[%s2511_s28 + $0x100] sm:$0xff]  ;;  %v500_v17 = vld [vmem:[%s2511_s28 + $0x110] sm:$0xff]  ;;  %497 = vst [vmem:[%s2516_s29 + $0x78] sm:$0xff] %v496_v15 }
  0x1e   : > { %499 = vst [vmem:[%s2516_s29 + $0x80] sm:$0xff] %v498_v16  ;;  %501 = vst [vmem:[%s2516_s29 + $0x88] sm:$0xff] %v500_v17  ;;  %v502_v18 = vld [vmem:[%s2511_s28 + $0x120] sm:$0xff]  ;;  %v504_v19 = vld [vmem:[%s2511_s28 + $0x130] sm:$0xff] }
  0x1f   : > { %v506_v20 = vld [vmem:[%s2511_s28 + $0x140] sm:$0xff]  ;;  %503 = vst [vmem:[%s2516_s29 + $0x90] sm:$0xff] %v502_v18  ;;  %505 = vst [vmem:[%s2516_s29 + $0x98] sm:$0xff] %v504_v19  ;;  %v508_v21 = vld [vmem:[%s2511_s28 + $0x150] sm:$0xff] }
  0x20   : > { %507 = vst [vmem:[%s2516_s29 + $0xa0] sm:$0xff] %v506_v20  ;;  %v510_v22 = vld [vmem:[%s2511_s28 + $0x160] sm:$0xff]  ;;  %v512_v23 = vld [vmem:[%s2511_s28 + $0x170] sm:$0xff]  ;;  %509 = vst [vmem:[%s2516_s29 + $0xa8] sm:$0xff] %v508_v21 }
  0x21   : > { %511 = vst [vmem:[%s2516_s29 + $0xb0] sm:$0xff] %v510_v22  ;;  %513 = vst [vmem:[%s2516_s29 + $0xb8] sm:$0xff] %v512_v23  ;;  %v514_v24 = vld [vmem:[%s2511_s28 + $0x180] sm:$0xff]  ;;  %v516_v25 = vld [vmem:[%s2511_s28 + $0x190] sm:$0xff] }
  0x22   : > { %v518_v26 = vld [vmem:[%s2511_s28 + $0x1a0] sm:$0xff]  ;;  %515 = vst [vmem:[%s2516_s29 + $0xc0] sm:$0xff] %v514_v24  ;;  %517 = vst [vmem:[%s2516_s29 + $0xc8] sm:$0xff] %v516_v25  ;;  %v520_v27 = vld [vmem:[%s2511_s28 + $0x1b0] sm:$0xff] }
  0x23   : > { %519 = vst [vmem:[%s2516_s29 + $0xd0] sm:$0xff] %v518_v26  ;;  %v522_v28 = vld [vmem:[%s2511_s28 + $0x1c0] sm:$0xff]  ;;  %v524_v29 = vld [vmem:[%s2511_s28 + $0x1d0] sm:$0xff]  ;;  %521 = vst [vmem:[%s2516_s29 + $0xd8] sm:$0xff] %v520_v27 }
  0x24   : > { %523 = vst [vmem:[%s2516_s29 + $0xe0] sm:$0xff] %v522_v28  ;;  %525 = vst [vmem:[%s2516_s29 + $0xe8] sm:$0xff] %v524_v29  ;;  %v526_v30 = vld [vmem:[%s2511_s28 + $0x1e0] sm:$0xff]  ;;  %v528_v31 = vld [vmem:[%s2511_s28 + $0x1f0] sm:$0xff] }
  0x25   : > { %v530_v32 = vld [vmem:[%s2511_s28 + $0x200] sm:$0xff]  ;;  %527 = vst [vmem:[%s2516_s29 + $0xf0] sm:$0xff] %v526_v30  ;;  %529 = vst [vmem:[%s2516_s29 + $0xf8] sm:$0xff] %v528_v31  ;;  %v532_v33 = vld [vmem:[%s2511_s28 + $0x210] sm:$0xff] }
  0x26   : > { %531 = vst [vmem:[%s2516_s29 + $0x100] sm:$0xff] %v530_v32  ;;  %v534_v34 = vld [vmem:[%s2511_s28 + $0x220] sm:$0xff]  ;;  %v536_v35 = vld [vmem:[%s2511_s28 + $0x230] sm:$0xff]  ;;  %533 = vst [vmem:[%s2516_s29 + $0x108] sm:$0xff] %v532_v33 }
  0x27   : > { %535 = vst [vmem:[%s2516_s29 + $0x110] sm:$0xff] %v534_v34  ;;  %537 = vst [vmem:[%s2516_s29 + $0x118] sm:$0xff] %v536_v35  ;;  %v538_v36 = vld [vmem:[%s2511_s28 + $0x240] sm:$0xff]  ;;  %v540_v37 = vld [vmem:[%s2511_s28 + $0x250] sm:$0xff] }
  0x28   : > { %v542_v38 = vld [vmem:[%s2511_s28 + $0x260] sm:$0xff]  ;;  %539 = vst [vmem:[%s2516_s29 + $0x120] sm:$0xff] %v538_v36  ;;  %541 = vst [vmem:[%s2516_s29 + $0x128] sm:$0xff] %v540_v37  ;;  %v544_v39 = vld [vmem:[%s2511_s28 + $0x270] sm:$0xff] }
  0x29   : > { %543 = vst [vmem:[%s2516_s29 + $0x130] sm:$0xff] %v542_v38  ;;  %v546_v40 = vld [vmem:[%s2511_s28 + $0x280] sm:$0xff]  ;;  %v548_v41 = vld [vmem:[%s2511_s28 + $0x290] sm:$0xff]  ;;  %545 = vst [vmem:[%s2516_s29 + $0x138] sm:$0xff] %v544_v39 }
  0x2a   : > { %547 = vst [vmem:[%s2516_s29 + $0x140] sm:$0xff] %v546_v40  ;;  %549 = vst [vmem:[%s2516_s29 + $0x148] sm:$0xff] %v548_v41  ;;  %v550_v42 = vld [vmem:[%s2511_s28 + $0x2a0] sm:$0xff]  ;;  %v552_v43 = vld [vmem:[%s2511_s28 + $0x2b0] sm:$0xff] }
  0x2b   : > { %v554_v44 = vld [vmem:[%s2511_s28 + $0x2c0] sm:$0xff]  ;;  %551 = vst [vmem:[%s2516_s29 + $0x150] sm:$0xff] %v550_v42  ;;  %553 = vst [vmem:[%s2516_s29 + $0x158] sm:$0xff] %v552_v43  ;;  %v556_v45 = vld [vmem:[%s2511_s28 + $0x2d0] sm:$0xff] }
  0x2c   : > { %555 = vst [vmem:[%s2516_s29 + $0x160] sm:$0xff] %v554_v44  ;;  %v558_v46 = vld [vmem:[%s2511_s28 + $0x2e0] sm:$0xff]  ;;  %v560_v47 = vld [vmem:[%s2511_s28 + $0x2f0] sm:$0xff]  ;;  %557 = vst [vmem:[%s2516_s29 + $0x168] sm:$0xff] %v556_v45 }
  0x2d   : > { %559 = vst [vmem:[%s2516_s29 + $0x170] sm:$0xff] %v558_v46  ;;  %561 = vst [vmem:[%s2516_s29 + $0x178] sm:$0xff] %v560_v47  ;;  %v562_v48 = vld [vmem:[%s2511_s28 + $0x300] sm:$0xff]  ;;  %v564_v49 = vld [vmem:[%s2511_s28 + $0x310] sm:$0xff] }
  0x2e   : > { %v566_v50 = vld [vmem:[%s2511_s28 + $0x320] sm:$0xff]  ;;  %563 = vst [vmem:[%s2516_s29 + $0x180] sm:$0xff] %v562_v48  ;;  %565 = vst [vmem:[%s2516_s29 + $0x188] sm:$0xff] %v564_v49  ;;  %v568_v51 = vld [vmem:[%s2511_s28 + $0x330] sm:$0xff] }
  0x2f   : > { %567 = vst [vmem:[%s2516_s29 + $0x190] sm:$0xff] %v566_v50  ;;  %v570_v52 = vld [vmem:[%s2511_s28 + $0x340] sm:$0xff]  ;;  %v572_v53 = vld [vmem:[%s2511_s28 + $0x350] sm:$0xff]  ;;  %569 = vst [vmem:[%s2516_s29 + $0x198] sm:$0xff] %v568_v51 }
  0x30   : > { %571 = vst [vmem:[%s2516_s29 + $0x1a0] sm:$0xff] %v570_v52  ;;  %573 = vst [vmem:[%s2516_s29 + $0x1a8] sm:$0xff] %v572_v53  ;;  %v574_v54 = vld [vmem:[%s2511_s28 + $0x360] sm:$0xff]  ;;  %v576_v55 = vld [vmem:[%s2511_s28 + $0x370] sm:$0xff] }
  0x31   : > { %v578_v56 = vld [vmem:[%s2511_s28 + $0x380] sm:$0xff]  ;;  %575 = vst [vmem:[%s2516_s29 + $0x1b0] sm:$0xff] %v574_v54  ;;  %577 = vst [vmem:[%s2516_s29 + $0x1b8] sm:$0xff] %v576_v55  ;;  %v580_v57 = vld [vmem:[%s2511_s28 + $0x390] sm:$0xff] }
  0x32   : > { %579 = vst [vmem:[%s2516_s29 + $0x1c0] sm:$0xff] %v578_v56  ;;  %v582_v58 = vld [vmem:[%s2511_s28 + $0x3a0] sm:$0xff]  ;;  %v584_v59 = vld [vmem:[%s2511_s28 + $0x3b0] sm:$0xff]  ;;  %581 = vst [vmem:[%s2516_s29 + $0x1c8] sm:$0xff] %v580_v57 }
  0x33   : > { %583 = vst [vmem:[%s2516_s29 + $0x1d0] sm:$0xff] %v582_v58  ;;  %585 = vst [vmem:[%s2516_s29 + $0x1d8] sm:$0xff] %v584_v59  ;;  %v586_v60 = vld [vmem:[%s2511_s28 + $0x3c0] sm:$0xff]  ;;  %v588_v61 = vld [vmem:[%s2511_s28 + $0x3d0] sm:$0xff] }
  0x34   : > { %v590_v62 = vld [vmem:[%s2511_s28 + $0x3e0] sm:$0xff]  ;;  %587 = vst [vmem:[%s2516_s29 + $0x1e0] sm:$0xff] %v586_v60  ;;  %589 = vst [vmem:[%s2516_s29 + $0x1e8] sm:$0xff] %v588_v61  ;;  %v592_v63 = vld [vmem:[%s2511_s28 + $0x3f0] sm:$0xff] }
  0x35   : > { %591 = vst [vmem:[%s2516_s29 + $0x1f0] sm:$0xff] %v590_v62  ;;  %v594_v0 = vld [vmem:[%s2511_s28 + $0x400] sm:$0xff]  ;;  %v596_v1 = vld [vmem:[%s2511_s28 + $0x410] sm:$0xff]  ;;  %593 = vst [vmem:[%s2516_s29 + $0x1f8] sm:$0xff] %v592_v63 }
  0x36   : > { %595 = vst [vmem:[%s2516_s29 + $0x200] sm:$0xff] %v594_v0  ;;  %597 = vst [vmem:[%s2516_s29 + $0x208] sm:$0xff] %v596_v1  ;;  %v598_v2 = vld [vmem:[%s2511_s28 + $0x420] sm:$0xff]  ;;  %v600_v3 = vld [vmem:[%s2511_s28 + $0x430] sm:$0xff] }
  0x37   : > { %v602_v4 = vld [vmem:[%s2511_s28 + $0x440] sm:$0xff]  ;;  %599 = vst [vmem:[%s2516_s29 + $0x210] sm:$0xff] %v598_v2  ;;  %601 = vst [vmem:[%s2516_s29 + $0x218] sm:$0xff] %v600_v3  ;;  %v604_v5 = vld [vmem:[%s2511_s28 + $0x450] sm:$0xff] }
  0x38   : > { %603 = vst [vmem:[%s2516_s29 + $0x220] sm:$0xff] %v602_v4  ;;  %v606_v6 = vld [vmem:[%s2511_s28 + $0x460] sm:$0xff]  ;;  %v608_v7 = vld [vmem:[%s2511_s28 + $0x470] sm:$0xff]  ;;  %605 = vst [vmem:[%s2516_s29 + $0x228] sm:$0xff] %v604_v5 }
  0x39   : > { %607 = vst [vmem:[%s2516_s29 + $0x230] sm:$0xff] %v606_v6  ;;  %609 = vst [vmem:[%s2516_s29 + $0x238] sm:$0xff] %v608_v7  ;;  %v610_v8 = vld [vmem:[%s2511_s28 + $0x480] sm:$0xff]  ;;  %v612_v9 = vld [vmem:[%s2511_s28 + $0x490] sm:$0xff] }
  0x3a   : > { %v614_v10 = vld [vmem:[%s2511_s28 + $0x4a0] sm:$0xff]  ;;  %611 = vst [vmem:[%s2516_s29 + $0x240] sm:$0xff] %v610_v8  ;;  %613 = vst [vmem:[%s2516_s29 + $0x248] sm:$0xff] %v612_v9  ;;  %v616_v11 = vld [vmem:[%s2511_s28 + $0x4b0] sm:$0xff] }
  0x3b   : > { %615 = vst [vmem:[%s2516_s29 + $0x250] sm:$0xff] %v614_v10  ;;  %v618_v12 = vld [vmem:[%s2511_s28 + $0x4c0] sm:$0xff]  ;;  %v620_v13 = vld [vmem:[%s2511_s28 + $0x4d0] sm:$0xff]  ;;  %617 = vst [vmem:[%s2516_s29 + $0x258] sm:$0xff] %v616_v11 }
  0x3c   : > { %619 = vst [vmem:[%s2516_s29 + $0x260] sm:$0xff] %v618_v12  ;;  %621 = vst [vmem:[%s2516_s29 + $0x268] sm:$0xff] %v620_v13  ;;  %v622_v14 = vld [vmem:[%s2511_s28 + $0x4e0] sm:$0xff]  ;;  %v624_v15 = vld [vmem:[%s2511_s28 + $0x4f0] sm:$0xff] }
  0x3d   : > { %v626_v16 = vld [vmem:[%s2511_s28 + $0x500] sm:$0xff]  ;;  %623 = vst [vmem:[%s2516_s29 + $0x270] sm:$0xff] %v622_v14  ;;  %625 = vst [vmem:[%s2516_s29 + $0x278] sm:$0xff] %v624_v15  ;;  %v628_v17 = vld [vmem:[%s2511_s28 + $0x510] sm:$0xff] }
  0x3e   : > { %627 = vst [vmem:[%s2516_s29 + $0x280] sm:$0xff] %v626_v16  ;;  %v630_v18 = vld [vmem:[%s2511_s28 + $0x520] sm:$0xff]  ;;  %v632_v19 = vld [vmem:[%s2511_s28 + $0x530] sm:$0xff]  ;;  %629 = vst [vmem:[%s2516_s29 + $0x288] sm:$0xff] %v628_v17 }
  0x3f   : > { %631 = vst [vmem:[%s2516_s29 + $0x290] sm:$0xff] %v630_v18  ;;  %633 = vst [vmem:[%s2516_s29 + $0x298] sm:$0xff] %v632_v19  ;;  %v634_v20 = vld [vmem:[%s2511_s28 + $0x540] sm:$0xff]  ;;  %v636_v21 = vld [vmem:[%s2511_s28 + $0x550] sm:$0xff] }
  0x40   : > { %v638_v22 = vld [vmem:[%s2511_s28 + $0x560] sm:$0xff]  ;;  %635 = vst [vmem:[%s2516_s29 + $0x2a0] sm:$0xff] %v634_v20  ;;  %637 = vst [vmem:[%s2516_s29 + $0x2a8] sm:$0xff] %v636_v21  ;;  %v640_v23 = vld [vmem:[%s2511_s28 + $0x570] sm:$0xff] }
  0x41   : > { %639 = vst [vmem:[%s2516_s29 + $0x2b0] sm:$0xff] %v638_v22  ;;  %v642_v24 = vld [vmem:[%s2511_s28 + $0x580] sm:$0xff]  ;;  %v644_v25 = vld [vmem:[%s2511_s28 + $0x590] sm:$0xff]  ;;  %641 = vst [vmem:[%s2516_s29 + $0x2b8] sm:$0xff] %v640_v23 }
  0x42   : > { %643 = vst [vmem:[%s2516_s29 + $0x2c0] sm:$0xff] %v642_v24  ;;  %645 = vst [vmem:[%s2516_s29 + $0x2c8] sm:$0xff] %v644_v25  ;;  %v646_v26 = vld [vmem:[%s2511_s28 + $0x5a0] sm:$0xff]  ;;  %v648_v27 = vld [vmem:[%s2511_s28 + $0x5b0] sm:$0xff] }
  0x43   : > { %v650_v28 = vld [vmem:[%s2511_s28 + $0x5c0] sm:$0xff]  ;;  %647 = vst [vmem:[%s2516_s29 + $0x2d0] sm:$0xff] %v646_v26  ;;  %649 = vst [vmem:[%s2516_s29 + $0x2d8] sm:$0xff] %v648_v27  ;;  %v652_v29 = vld [vmem:[%s2511_s28 + $0x5d0] sm:$0xff] }
  0x44   : > { %651 = vst [vmem:[%s2516_s29 + $0x2e0] sm:$0xff] %v650_v28  ;;  %v654_v30 = vld [vmem:[%s2511_s28 + $0x5e0] sm:$0xff]  ;;  %v656_v31 = vld [vmem:[%s2511_s28 + $0x5f0] sm:$0xff]  ;;  %653 = vst [vmem:[%s2516_s29 + $0x2e8] sm:$0xff] %v652_v29 }
  0x45   : > { %655 = vst [vmem:[%s2516_s29 + $0x2f0] sm:$0xff] %v654_v30  ;;  %657 = vst [vmem:[%s2516_s29 + $0x2f8] sm:$0xff] %v656_v31  ;;  %v658_v32 = vld [vmem:[%s2511_s28 + $0x600] sm:$0xff]  ;;  %v660_v33 = vld [vmem:[%s2511_s28 + $0x610] sm:$0xff] }
  0x46   : > { %v662_v34 = vld [vmem:[%s2511_s28 + $0x620] sm:$0xff]  ;;  %659 = vst [vmem:[%s2516_s29 + $0x300] sm:$0xff] %v658_v32  ;;  %661 = vst [vmem:[%s2516_s29 + $0x308] sm:$0xff] %v660_v33  ;;  %v664_v35 = vld [vmem:[%s2511_s28 + $0x630] sm:$0xff] }
  0x47   : > { %663 = vst [vmem:[%s2516_s29 + $0x310] sm:$0xff] %v662_v34  ;;  %v666_v36 = vld [vmem:[%s2511_s28 + $0x640] sm:$0xff]  ;;  %v668_v37 = vld [vmem:[%s2511_s28 + $0x650] sm:$0xff]  ;;  %665 = vst [vmem:[%s2516_s29 + $0x318] sm:$0xff] %v664_v35 }
  0x48   : > { %667 = vst [vmem:[%s2516_s29 + $0x320] sm:$0xff] %v666_v36  ;;  %669 = vst [vmem:[%s2516_s29 + $0x328] sm:$0xff] %v668_v37  ;;  %v670_v38 = vld [vmem:[%s2511_s28 + $0x660] sm:$0xff]  ;;  %v672_v39 = vld [vmem:[%s2511_s28 + $0x670] sm:$0xff] }
  0x49   : > { %v674_v40 = vld [vmem:[%s2511_s28 + $0x680] sm:$0xff]  ;;  %671 = vst [vmem:[%s2516_s29 + $0x330] sm:$0xff] %v670_v38  ;;  %673 = vst [vmem:[%s2516_s29 + $0x338] sm:$0xff] %v672_v39  ;;  %v676_v41 = vld [vmem:[%s2511_s28 + $0x690] sm:$0xff] }
  0x4a   : > { %675 = vst [vmem:[%s2516_s29 + $0x340] sm:$0xff] %v674_v40  ;;  %v678_v42 = vld [vmem:[%s2511_s28 + $0x6a0] sm:$0xff]  ;;  %v680_v43 = vld [vmem:[%s2511_s28 + $0x6b0] sm:$0xff]  ;;  %677 = vst [vmem:[%s2516_s29 + $0x348] sm:$0xff] %v676_v41 }
  0x4b   : > { %679 = vst [vmem:[%s2516_s29 + $0x350] sm:$0xff] %v678_v42  ;;  %681 = vst [vmem:[%s2516_s29 + $0x358] sm:$0xff] %v680_v43  ;;  %v682_v44 = vld [vmem:[%s2511_s28 + $0x6c0] sm:$0xff]  ;;  %v684_v45 = vld [vmem:[%s2511_s28 + $0x6d0] sm:$0xff] }
  0x4c   : > { %v686_v46 = vld [vmem:[%s2511_s28 + $0x6e0] sm:$0xff]  ;;  %683 = vst [vmem:[%s2516_s29 + $0x360] sm:$0xff] %v682_v44  ;;  %685 = vst [vmem:[%s2516_s29 + $0x368] sm:$0xff] %v684_v45  ;;  %v688_v47 = vld [vmem:[%s2511_s28 + $0x6f0] sm:$0xff] }
  0x4d   : > { %687 = vst [vmem:[%s2516_s29 + $0x370] sm:$0xff] %v686_v46  ;;  %v690_v48 = vld [vmem:[%s2511_s28 + $0x700] sm:$0xff]  ;;  %v692_v49 = vld [vmem:[%s2511_s28 + $0x710] sm:$0xff]  ;;  %689 = vst [vmem:[%s2516_s29 + $0x378] sm:$0xff] %v688_v47 }
  0x4e   : > { %691 = vst [vmem:[%s2516_s29 + $0x380] sm:$0xff] %v690_v48  ;;  %693 = vst [vmem:[%s2516_s29 + $0x388] sm:$0xff] %v692_v49  ;;  %v694_v50 = vld [vmem:[%s2511_s28 + $0x720] sm:$0xff]  ;;  %v696_v51 = vld [vmem:[%s2511_s28 + $0x730] sm:$0xff] }
  0x4f   : > { %v698_v52 = vld [vmem:[%s2511_s28 + $0x740] sm:$0xff]  ;;  %695 = vst [vmem:[%s2516_s29 + $0x390] sm:$0xff] %v694_v50  ;;  %697 = vst [vmem:[%s2516_s29 + $0x398] sm:$0xff] %v696_v51  ;;  %v700_v53 = vld [vmem:[%s2511_s28 + $0x750] sm:$0xff] }
  0x50   : > { %699 = vst [vmem:[%s2516_s29 + $0x3a0] sm:$0xff] %v698_v52  ;;  %v702_v54 = vld [vmem:[%s2511_s28 + $0x760] sm:$0xff]  ;;  %v704_v55 = vld [vmem:[%s2511_s28 + $0x770] sm:$0xff]  ;;  %701 = vst [vmem:[%s2516_s29 + $0x3a8] sm:$0xff] %v700_v53 }
  0x51   : > { %703 = vst [vmem:[%s2516_s29 + $0x3b0] sm:$0xff] %v702_v54  ;;  %705 = vst [vmem:[%s2516_s29 + $0x3b8] sm:$0xff] %v704_v55  ;;  %v706_v56 = vld [vmem:[%s2511_s28 + $0x780] sm:$0xff]  ;;  %v708_v57 = vld [vmem:[%s2511_s28 + $0x790] sm:$0xff] }
  0x52   : > { %v710_v58 = vld [vmem:[%s2511_s28 + $0x7a0] sm:$0xff]  ;;  %707 = vst [vmem:[%s2516_s29 + $0x3c0] sm:$0xff] %v706_v56  ;;  %709 = vst [vmem:[%s2516_s29 + $0x3c8] sm:$0xff] %v708_v57  ;;  %v712_v59 = vld [vmem:[%s2511_s28 + $0x7b0] sm:$0xff] }
  0x53   : > { %711 = vst [vmem:[%s2516_s29 + $0x3d0] sm:$0xff] %v710_v58  ;;  %v714_v60 = vld [vmem:[%s2511_s28 + $0x7c0] sm:$0xff]  ;;  %v716_v61 = vld [vmem:[%s2511_s28 + $0x7d0] sm:$0xff]  ;;  %713 = vst [vmem:[%s2516_s29 + $0x3d8] sm:$0xff] %v712_v59 }
  0x54   : > { %715 = vst [vmem:[%s2516_s29 + $0x3e0] sm:$0xff] %v714_v60  ;;  %717 = vst [vmem:[%s2516_s29 + $0x3e8] sm:$0xff] %v716_v61  ;;  %v718_v62 = vld [vmem:[%s2511_s28 + $0x7e0] sm:$0xff]  ;;  %v720_v63 = vld [vmem:[%s2511_s28 + $0x7f0] sm:$0xff] }
  0x55   : > { %719 = vst [vmem:[%s2516_s29 + $0x3f0] sm:$0xff] %v718_v62  ;;  %721 = vst [vmem:[%s2516_s29 + $0x3f8] sm:$0xff] %v720_v63 }
  0x56 PF: > { %p2008_p8 = scmp.ge.s32.totalorder %s2441_s16, 1  ;;  %p734_p9 = scmp.lt.s32.totalorder %s2441_s16, 3 }
  0x58   : > { %p735_p10 = pnand %p2008_p8, %p734_p9 }
  0x59   : > { %s741_s30 = sand.u32 (!%p735_p10), 1, %s2425_s12   ;;  %v2777_v0 = vld [vmem:[%s2995_s0] sm:$0xff] (!%p735_p10)  ;;  %v2787_v2 = vld [vmem:[%s2995_s0 + $0x10] sm:$0xff] (!%p735_p10)  ;;  %s2011_s4 = sshll.u32 (!%p735_p10), %s2433_s14, 1 }
  0x5a   : > { %738 = sbr.rel (%p735_p10) target bundleno = 454 (0x1c6), region = 66  ;;  %v2782_v1 = vld [vmem:[%s2995_s0 + $0x20] sm:$0xff] (!%p735_p10)  ;;  %s2009_s10 = sshll.u32 (!%p735_p10), %s741_s30, 10  ;;  %v2798_v5 = vld [vmem:[%s2995_s0 + $0x30] sm:$0xff] (!%p735_p10) }
  0x5b   : > { %v2012_v3 = vcombine.low (!%p735_p10), %v2777_v0, %v2782_v1  ;;  %v2013_v4 = vcombine.high (!%p735_p10), %v2777_v0, %v2782_v1  ;;  %v2016_v6 = vcombine.low (!%p735_p10), %v2787_v2, %v2798_v5  ;;  %v2017_v7 = vcombine.high (!%p735_p10), %v2787_v2, %v2798_v5  ;;  %s2804_s19 = scalar_lea.vmem (!%p735_p10), [#allocation3], %s2009_s10  ;;  %p792_p11 = scmp.lt.s32.totalorder (!%p735_p10), %s2011_s4, 3 }
  0x5c   : > { %v2211_v8 = vld [vmem:[%s2804_s19 + $0x4] ss:$8 sps:$4 sm:$0xff] (!%p735_p10)   ;;  %v2215_v10 = vld [vmem:[%s2804_s19] ss:$8 sps:$4 sm:$0xff] (!%p735_p10)   ;;  %v2217_v12 = vld [vmem:[%s2804_s19 + $0x14] ss:$8 sps:$4 sm:$0xff] (!%p735_p10)  }
  0x5d   : > { %1658 = vmatprep.mubr.bf16.mxu1 (!%p735_p10), %v2013_v4  ;;  %v2213_v9 = vld [vmem:[%s2804_s19 + $0x204] ss:$8 sps:$4 sm:$0xff] (!%p735_p10)   ;;  %1744 = vmatprep.mubr.bf16.mxu0 (!%p735_p10), %v2017_v7  ;;  %v2216_v11 = vld [vmem:[%s2804_s19 + $0x200] ss:$8 sps:$4 sm:$0xff] (!%p735_p10)   ;;  %v2219_v13 = vld [vmem:[%s2804_s19 + $0x214] ss:$8 sps:$4 sm:$0xff] (!%p735_p10)  }
  0x5e   : > { %1626 = vmatprep.subr.bf16.mxu1 (!%p735_p10), %v2211_v8  ;;  %1712 = vmatprep.subr.bf16.mxu0 (!%p735_p10), %v2213_v9  ;;  %v2221_v14 = vld [vmem:[%s2804_s19 + $0x10] ss:$8 sps:$4 sm:$0xff] (!%p735_p10)   ;;  %v2223_v16 = vld [vmem:[%s2804_s19 + $0x24] ss:$8 sps:$4 sm:$0xff] (!%p735_p10)   ;;  %v2227_v18 = vld [vmem:[%s2804_s19 + $0x20] ss:$8 sps:$4 sm:$0xff] (!%p735_p10)  }
  0x5f   : > { %1627 = vmatpush1.bf16.msra.mxu1 (!%p735_p10), %v2215_v10  ;;  %1713 = vmatpush1.bf16.msra.mxu0 (!%p735_p10), %v2216_v11  ;;  %v2222_v15 = vld [vmem:[%s2804_s19 + $0x210] ss:$8 sps:$4 sm:$0xff] (!%p735_p10)   ;;  %v2225_v17 = vld [vmem:[%s2804_s19 + $0x224] ss:$8 sps:$4 sm:$0xff] (!%p735_p10)   ;;  %v2228_v19 = vld [vmem:[%s2804_s19 + $0x220] ss:$8 sps:$4 sm:$0xff] (!%p735_p10)  }
  0x60   : > { %1628 = vmatprep.subr.bf16.mxu1 (!%p735_p10), %v2217_v12  ;;  %1714 = vmatprep.subr.bf16.mxu0 (!%p735_p10), %v2219_v13  ;;  %v2229_v20 = vld [vmem:[%s2804_s19 + $0x34] ss:$8 sps:$4 sm:$0xff] (!%p735_p10)   ;;  %v2233_v22 = vld [vmem:[%s2804_s19 + $0x30] ss:$8 sps:$4 sm:$0xff] (!%p735_p10)   ;;  %v2235_v24 = vld [vmem:[%s2804_s19 + $0x44] ss:$8 sps:$4 sm:$0xff] (!%p735_p10)  }
  0x61   : > { %v2231_v21 = vld [vmem:[%s2804_s19 + $0x234] ss:$8 sps:$4 sm:$0xff]   ;;  %v2234_v23 = vld [vmem:[%s2804_s19 + $0x230] ss:$8 sps:$4 sm:$0xff]   ;;  %v2237_v25 = vld [vmem:[%s2804_s19 + $0x244] ss:$8 sps:$4 sm:$0xff]  }
  0x62   : > { %v2239_v26 = vld [vmem:[%s2804_s19 + $0x40] ss:$8 sps:$4 sm:$0xff]   ;;  %v2241_v28 = vld [vmem:[%s2804_s19 + $0x54] ss:$8 sps:$4 sm:$0xff]   ;;  %v2245_v30 = vld [vmem:[%s2804_s19 + $0x50] ss:$8 sps:$4 sm:$0xff]  }
  0x63   : > { %1629 = vmatpush1.bf16.msra.mxu1 %v2221_v14  ;;  %1715 = vmatpush1.bf16.msra.mxu0 %v2222_v15  ;;  %v2240_v27 = vld [vmem:[%s2804_s19 + $0x240] ss:$8 sps:$4 sm:$0xff]   ;;  %v2243_v29 = vld [vmem:[%s2804_s19 + $0x254] ss:$8 sps:$4 sm:$0xff]   ;;  %v2246_v31 = vld [vmem:[%s2804_s19 + $0x250] ss:$8 sps:$4 sm:$0xff]  }
  0x64   : > { %1630 = vmatprep.subr.bf16.mxu1 %v2223_v16  ;;  %1716 = vmatprep.subr.bf16.mxu0 %v2225_v17  ;;  %v2247_v32 = vld [vmem:[%s2804_s19 + $0x64] ss:$8 sps:$4 sm:$0xff]   ;;  %v2251_v34 = vld [vmem:[%s2804_s19 + $0x60] ss:$8 sps:$4 sm:$0xff]   ;;  %v2253_v36 = vld [vmem:[%s2804_s19 + $0x74] ss:$8 sps:$4 sm:$0xff]  }
  0x65   : > { %v2249_v33 = vld [vmem:[%s2804_s19 + $0x264] ss:$8 sps:$4 sm:$0xff]   ;;  %v2252_v35 = vld [vmem:[%s2804_s19 + $0x260] ss:$8 sps:$4 sm:$0xff]   ;;  %v2255_v37 = vld [vmem:[%s2804_s19 + $0x274] ss:$8 sps:$4 sm:$0xff]  }
  0x66   : > { %v2257_v38 = vld [vmem:[%s2804_s19 + $0x70] ss:$8 sps:$4 sm:$0xff]   ;;  %v2259_v40 = vld [vmem:[%s2804_s19 + $0x84] ss:$8 sps:$4 sm:$0xff]   ;;  %v2263_v42 = vld [vmem:[%s2804_s19 + $0x80] ss:$8 sps:$4 sm:$0xff]  }
  0x67   : > { %1631 = vmatpush1.bf16.msra.mxu1 %v2227_v18  ;;  %1717 = vmatpush1.bf16.msra.mxu0 %v2228_v19  ;;  %v2258_v39 = vld [vmem:[%s2804_s19 + $0x270] ss:$8 sps:$4 sm:$0xff]   ;;  %v2261_v41 = vld [vmem:[%s2804_s19 + $0x284] ss:$8 sps:$4 sm:$0xff]   ;;  %v2264_v43 = vld [vmem:[%s2804_s19 + $0x280] ss:$8 sps:$4 sm:$0xff]  }
  0x68   : > { %1632 = vmatprep.subr.bf16.mxu1 %v2229_v20  ;;  %1718 = vmatprep.subr.bf16.mxu0 %v2231_v21  ;;  %v2265_v44 = vld [vmem:[%s2804_s19 + $0x94] ss:$8 sps:$4 sm:$0xff]   ;;  %v2269_v46 = vld [vmem:[%s2804_s19 + $0x90] ss:$8 sps:$4 sm:$0xff]   ;;  %v2271_v48 = vld [vmem:[%s2804_s19 + $0xa4] ss:$8 sps:$4 sm:$0xff]  }
  0x69   : > { %v2267_v45 = vld [vmem:[%s2804_s19 + $0x294] ss:$8 sps:$4 sm:$0xff]   ;;  %v2270_v47 = vld [vmem:[%s2804_s19 + $0x290] ss:$8 sps:$4 sm:$0xff]   ;;  %v2273_v49 = vld [vmem:[%s2804_s19 + $0x2a4] ss:$8 sps:$4 sm:$0xff]  }
  0x6a   : > { %v2275_v50 = vld [vmem:[%s2804_s19 + $0xa0] ss:$8 sps:$4 sm:$0xff]   ;;  %v2277_v52 = vld [vmem:[%s2804_s19 + $0xb4] ss:$8 sps:$4 sm:$0xff]   ;;  %v2281_v54 = vld [vmem:[%s2804_s19 + $0xb0] ss:$8 sps:$4 sm:$0xff]  }
  0x6b   : > { %1633 = vmatpush1.bf16.msra.mxu1 %v2233_v22  ;;  %1719 = vmatpush1.bf16.msra.mxu0 %v2234_v23  ;;  %v2276_v51 = vld [vmem:[%s2804_s19 + $0x2a0] ss:$8 sps:$4 sm:$0xff]   ;;  %v2279_v53 = vld [vmem:[%s2804_s19 + $0x2b4] ss:$8 sps:$4 sm:$0xff]   ;;  %v2282_v55 = vld [vmem:[%s2804_s19 + $0x2b0] ss:$8 sps:$4 sm:$0xff]  }
  0x6c   : > { %1634 = vmatprep.subr.bf16.mxu1 %v2235_v24  ;;  %1720 = vmatprep.subr.bf16.mxu0 %v2237_v25  ;;  %v2283_v56 = vld [vmem:[%s2804_s19 + $0xc4] ss:$8 sps:$4 sm:$0xff]   ;;  %v2287_v58 = vld [vmem:[%s2804_s19 + $0xc0] ss:$8 sps:$4 sm:$0xff]   ;;  %v2289_v60 = vld [vmem:[%s2804_s19 + $0xd4] ss:$8 sps:$4 sm:$0xff]  }
  0x6d   : > { %v2285_v57 = vld [vmem:[%s2804_s19 + $0x2c4] ss:$8 sps:$4 sm:$0xff]   ;;  %v2288_v59 = vld [vmem:[%s2804_s19 + $0x2c0] ss:$8 sps:$4 sm:$0xff]   ;;  %v2291_v61 = vld [vmem:[%s2804_s19 + $0x2d4] ss:$8 sps:$4 sm:$0xff]  }
  0x6e   : > { %v2293_v62 = vld [vmem:[%s2804_s19 + $0xd0] ss:$8 sps:$4 sm:$0xff]   ;;  %v2295_v4 = vld [vmem:[%s2804_s19 + $0xe4] ss:$8 sps:$4 sm:$0xff]   ;;  %v2299_v8 = vld [vmem:[%s2804_s19 + $0xe0] ss:$8 sps:$4 sm:$0xff]  }
  0x6f   : > { %1635 = vmatpush1.bf16.msra.mxu1 %v2239_v26  ;;  %1721 = vmatpush1.bf16.msra.mxu0 %v2240_v27  ;;  %v2294_v63 = vld [vmem:[%s2804_s19 + $0x2d0] ss:$8 sps:$4 sm:$0xff]   ;;  %v2297_v7 = vld [vmem:[%s2804_s19 + $0x2e4] ss:$8 sps:$4 sm:$0xff]   ;;  %v2300_v9 = vld [vmem:[%s2804_s19 + $0x2e0] ss:$8 sps:$4 sm:$0xff]  }
  0x70   : > { %1636 = vmatprep.subr.bf16.mxu1 %v2241_v28  ;;  %1722 = vmatprep.subr.bf16.mxu0 %v2243_v29  ;;  %v2301_v10 = vld [vmem:[%s2804_s19 + $0xf4] ss:$8 sps:$4 sm:$0xff]   ;;  %v2305_v12 = vld [vmem:[%s2804_s19 + $0xf0] ss:$8 sps:$4 sm:$0xff]   ;;  %v2309_v14 = vld [vmem:[%s2804_s19 + $0x104] ss:$8 sps:$4 sm:$0xff]  }
  0x71   : > { %v2303_v11 = vld [vmem:[%s2804_s19 + $0x2f4] ss:$8 sps:$4 sm:$0xff]   ;;  %v2306_v13 = vld [vmem:[%s2804_s19 + $0x2f0] ss:$8 sps:$4 sm:$0xff]   ;;  %v2312_v15 = vld [vmem:[%s2804_s19 + $0x304] ss:$8 sps:$4 sm:$0xff]  }
  0x72   : > { %v2875_v16 = vld [vmem:[%s2995_s0 + $0x8] sm:$0xff]  ;;  %v2315_v20 = vld [vmem:[%s2804_s19 + $0x114] ss:$8 sps:$4 sm:$0xff]   ;;  %v2313_v23 = vld [vmem:[%s2804_s19 + $0x110] ss:$8 sps:$4 sm:$0xff]   ;;  %s3007_s4 = smov (!%p792_p11, %s2011_s4), 3 }
  0x73   : > { %1637 = vmatpush1.bf16.msra.mxu1 %v2245_v30  ;;  %1723 = vmatpush1.bf16.msra.mxu0 %v2246_v31  ;;  %v2880_v17 = vld [vmem:[%s2995_s0 + $0x28] sm:$0xff]  ;;  %v2318_v21 = vld [vmem:[%s2804_s19 + $0x314] ss:$8 sps:$4 sm:$0xff]   ;;  %v2316_v24 = vld [vmem:[%s2804_s19 + $0x310] ss:$8 sps:$4 sm:$0xff]   ;;  %s794_s7 = scalar_lea.vmem %s2997_s2, %s3007_s4  ;;  %s2010_s8 = sshll.u32 %s741_s30, 4 }
  0x74   : > { %1638 = vmatprep.subr.bf16.mxu1 %v2247_v32  ;;  %1724 = vmatprep.subr.bf16.mxu0 %v2249_v33  ;;  %v2307_v18 = vld [vmem:[%s2804_s19 + $0x100] ss:$8 sps:$4 sm:$0xff]   ;;  %v2015_v22 = vcombine.high %v2875_v16, %v2880_v17  ;;  %v2321_v25 = vld [vmem:[%s2804_s19 + $0x124] ss:$8 sps:$4 sm:$0xff]   ;;  %v2327_v2 = vld [vmem:[%s2804_s19 + $0x134] ss:$8 sps:$4 sm:$0xff]  }
  0x75   : > { %v2310_v19 = vld [vmem:[%s2804_s19 + $0x300] ss:$8 sps:$4 sm:$0xff]   ;;  %v2324_v26 = vld [vmem:[%s2804_s19 + $0x324] ss:$8 sps:$4 sm:$0xff]   ;;  %v2325_v5 = vld [vmem:[%s2804_s19 + $0x130] ss:$8 sps:$4 sm:$0xff]  }
  0x76   : > { %v2319_v0 = vld [vmem:[%s2804_s19 + $0x120] ss:$8 sps:$4 sm:$0xff]   ;;  %v2333_v27 = vld [vmem:[%s2804_s19 + $0x144] ss:$8 sps:$4 sm:$0xff]   ;;  %v2339_v31 = vld [vmem:[%s2804_s19 + $0x154] ss:$8 sps:$4 sm:$0xff]  }
  0x77   : > { %1639 = vmatpush1.bf16.msra.mxu1 %v2251_v34  ;;  %1725 = vmatpush1.bf16.msra.mxu0 %v2252_v35  ;;  %v2322_v1 = vld [vmem:[%s2804_s19 + $0x320] ss:$8 sps:$4 sm:$0xff]   ;;  %v2336_v28 = vld [vmem:[%s2804_s19 + $0x344] ss:$8 sps:$4 sm:$0xff]   ;;  %v2342_v32 = vld [vmem:[%s2804_s19 + $0x354] ss:$8 sps:$4 sm:$0xff]  }
  0x78   : > { %1640 = vmatprep.subr.bf16.mxu1 %v2253_v36  ;;  %1726 = vmatprep.subr.bf16.mxu0 %v2255_v37  ;;  %v2331_v29 = vld [vmem:[%s2804_s19 + $0x140] ss:$8 sps:$4 sm:$0xff]   ;;  %v2337_v33 = vld [vmem:[%s2804_s19 + $0x150] ss:$8 sps:$4 sm:$0xff]   ;;  %v2345_v36 = vld [vmem:[%s2804_s19 + $0x164] ss:$8 sps:$4 sm:$0xff]  }
  0x79   : > { %v2334_v30 = vld [vmem:[%s2804_s19 + $0x340] ss:$8 sps:$4 sm:$0xff]   ;;  %v2914_v34 = vld [vmem:[%s2995_s0 + $0x18] sm:$0xff]  ;;  %v2348_v37 = vld [vmem:[%s2804_s19 + $0x364] ss:$8 sps:$4 sm:$0xff]   ;;  %s776_s9 = scalar_lea.vmem [#allocation4], %s2010_s8 }
  0x7a   : > { %v2340_v35 = vld [vmem:[%s2804_s19 + $0x350] ss:$8 sps:$4 sm:$0xff]   ;;  %s2158_s10 = sshll.u32 (%p2498_p6), %s2433_s14, 3 }
  0x7b   : > { %1641 = vmatpush1.bf16.msra.mxu1 %v2257_v38  ;;  %1727 = vmatpush1.bf16.msra.mxu0 %v2258_v39  ;;  %v2922_v38 = vld [vmem:[%s2995_s0 + $0x38] sm:$0xff]  ;;  %s1859_s11 = scalar_lea.vmem (%p2498_p6), %s2998_s3, %s2158_s10 }
  0x7c   : > { %1642 = vmatprep.subr.bf16.mxu1 %v2259_v40  ;;  %1728 = vmatprep.subr.bf16.mxu0 %v2261_v41  ;;  %v2019_v39 = vcombine.high %v2914_v34, %v2922_v38  ;;  %v2343_v40 = vld [vmem:[%s2804_s19 + $0x160] ss:$8 sps:$4 sm:$0xff]  }
  0x7d   : > { %v2346_v41 = vld [vmem:[%s2804_s19 + $0x360] ss:$8 sps:$4 sm:$0xff]  }
  0x7f   : > { %1643 = vmatpush1.bf16.msra.mxu1 %v2263_v42  ;;  %1729 = vmatpush1.bf16.msra.mxu0 %v2264_v43  ;;  %v2351_v42 = vld [vmem:[%s2804_s19 + $0x174] ss:$8 sps:$4 sm:$0xff]  }
  0x80   : > { %1644 = vmatprep.subr.bf16.mxu1 %v2265_v44  ;;  %1730 = vmatprep.subr.bf16.mxu0 %v2267_v45  ;;  %v2354_v43 = vld [vmem:[%s2804_s19 + $0x374] ss:$8 sps:$4 sm:$0xff]   ;;  %v2349_v44 = vld [vmem:[%s2804_s19 + $0x170] ss:$8 sps:$4 sm:$0xff]  }
  0x81   : > { %v2352_v45 = vld [vmem:[%s2804_s19 + $0x370] ss:$8 sps:$4 sm:$0xff]  }
  0x83   : > { %1645 = vmatpush1.bf16.msra.mxu1 %v2269_v46  ;;  %1731 = vmatpush1.bf16.msra.mxu0 %v2270_v47  ;;  %v2357_v46 = vld [vmem:[%s2804_s19 + $0x184] ss:$8 sps:$4 sm:$0xff]  }
  0x84   : > { %1646 = vmatprep.subr.bf16.mxu1 %v2271_v48  ;;  %1732 = vmatprep.subr.bf16.mxu0 %v2273_v49  ;;  %v2360_v47 = vld [vmem:[%s2804_s19 + $0x384] ss:$8 sps:$4 sm:$0xff]   ;;  %v2355_v48 = vld [vmem:[%s2804_s19 + $0x180] ss:$8 sps:$4 sm:$0xff]  }
  0x85   : > { %v2358_v49 = vld [vmem:[%s2804_s19 + $0x380] ss:$8 sps:$4 sm:$0xff]  }
  0x87   : > { %1647 = vmatpush1.bf16.msra.mxu1 %v2275_v50  ;;  %1733 = vmatpush1.bf16.msra.mxu0 %v2276_v51  ;;  %v2363_v50 = vld [vmem:[%s2804_s19 + $0x194] ss:$8 sps:$4 sm:$0xff]  }
  0x88   : > { %1648 = vmatprep.subr.bf16.mxu1 %v2277_v52  ;;  %1734 = vmatprep.subr.bf16.mxu0 %v2279_v53  ;;  %v2366_v51 = vld [vmem:[%s2804_s19 + $0x394] ss:$8 sps:$4 sm:$0xff]   ;;  %v2361_v52 = vld [vmem:[%s2804_s19 + $0x190] ss:$8 sps:$4 sm:$0xff]  }
  0x89   : > { %v2364_v53 = vld [vmem:[%s2804_s19 + $0x390] ss:$8 sps:$4 sm:$0xff]  }
  0x8b   : > { %1649 = vmatpush1.bf16.msra.mxu1 %v2281_v54  ;;  %1735 = vmatpush1.bf16.msra.mxu0 %v2282_v55  ;;  %v2369_v54 = vld [vmem:[%s2804_s19 + $0x1a4] ss:$8 sps:$4 sm:$0xff]  }
  0x8c   : > { %1650 = vmatprep.subr.bf16.mxu1 %v2283_v56  ;;  %1736 = vmatprep.subr.bf16.mxu0 %v2285_v57  ;;  %v2372_v55 = vld [vmem:[%s2804_s19 + $0x3a4] ss:$8 sps:$4 sm:$0xff]   ;;  %v2367_v56 = vld [vmem:[%s2804_s19 + $0x1a0] ss:$8 sps:$4 sm:$0xff]  }
  0x8d   : > { %v2370_v57 = vld [vmem:[%s2804_s19 + $0x3a0] ss:$8 sps:$4 sm:$0xff]  }
  0x8f   : > { %1651 = vmatpush1.bf16.msra.mxu1 %v2287_v58  ;;  %1737 = vmatpush1.bf16.msra.mxu0 %v2288_v59  ;;  %v2375_v58 = vld [vmem:[%s2804_s19 + $0x1b4] ss:$8 sps:$4 sm:$0xff]  }
  0x90   : > { %1652 = vmatprep.subr.bf16.mxu1 %v2289_v60  ;;  %1738 = vmatprep.subr.bf16.mxu0 %v2291_v61  ;;  %v2378_v59 = vld [vmem:[%s2804_s19 + $0x3b4] ss:$8 sps:$4 sm:$0xff]   ;;  %v2373_v60 = vld [vmem:[%s2804_s19 + $0x1b0] ss:$8 sps:$4 sm:$0xff]  }
  0x91   : > { %v2376_v61 = vld [vmem:[%s2804_s19 + $0x3b0] ss:$8 sps:$4 sm:$0xff]  }
  0x93   : > { %1653 = vmatpush1.bf16.msra.mxu1 %v2293_v62  ;;  %1739 = vmatpush1.bf16.msra.mxu0 %v2294_v63  ;;  %v2381_v62 = vld [vmem:[%s2804_s19 + $0x1c4] ss:$8 sps:$4 sm:$0xff]  }
  0x94   : > { %1654 = vmatprep.subr.bf16.mxu1 %v2295_v4  ;;  %1740 = vmatprep.subr.bf16.mxu0 %v2297_v7  ;;  %v2384_v63 = vld [vmem:[%s2804_s19 + $0x3c4] ss:$8 sps:$4 sm:$0xff]   ;;  %v2379_v4 = vld [vmem:[%s2804_s19 + $0x1c0] ss:$8 sps:$4 sm:$0xff]  }
  0x95   : > { %v2382_v7 = vld [vmem:[%s2804_s19 + $0x3c0] ss:$8 sps:$4 sm:$0xff]  }
  0x97   : > { %1655 = vmatpush1.bf16.msra.mxu1 %v2299_v8  ;;  %1741 = vmatpush1.bf16.msra.mxu0 %v2300_v9  ;;  %v2387_v8 = vld [vmem:[%s2804_s19 + $0x1d4] ss:$8 sps:$4 sm:$0xff]  }
  0x98   : > { %1656 = vmatprep.subr.bf16.mxu1 %v2301_v10  ;;  %1742 = vmatprep.subr.bf16.mxu0 %v2303_v11  ;;  %v2390_v9 = vld [vmem:[%s2804_s19 + $0x3d4] ss:$8 sps:$4 sm:$0xff]   ;;  %v2385_v10 = vld [vmem:[%s2804_s19 + $0x1d0] ss:$8 sps:$4 sm:$0xff]  }
  0x99   : > { %v2388_v11 = vld [vmem:[%s2804_s19 + $0x3d0] ss:$8 sps:$4 sm:$0xff]  }
  0x9b   : > { %1657 = vmatpush1.bf16.msra.mxu1 %v2305_v12  ;;  %1743 = vmatpush1.bf16.msra.mxu0 %v2306_v13  ;;  %v2393_v12 = vld [vmem:[%s2804_s19 + $0x1e4] ss:$8 sps:$4 sm:$0xff]  }
  0x9c   : > { %1669 = vmatprep.subr.bf16.mxu1 %v2309_v14  ;;  %1755 = vmatprep.subr.bf16.mxu0 %v2312_v15  ;;  %v2396_v13 = vld [vmem:[%s2804_s19 + $0x3e4] ss:$8 sps:$4 sm:$0xff]   ;;  %v2391_v14 = vld [vmem:[%s2804_s19 + $0x1e0] ss:$8 sps:$4 sm:$0xff]  }
  0x9d   : > { %v2394_v15 = vld [vmem:[%s2804_s19 + $0x3e0] ss:$8 sps:$4 sm:$0xff]  }
  0x9e   : > { %1659 = vmatmul.mubr.bf16.vlgmr.msra.gmra.mrb[0].mxu1 %v2012_v3  ;;  %1745 = vmatmul.mubr.bf16.vlgmr.msra.gmra.mrb[0].mxu0 %v2016_v6  ;;  %v2330_v3 = vld [vmem:[%s2804_s19 + $0x334] ss:$8 sps:$4 sm:$0xff]   ;;  %v2328_v6 = vld [vmem:[%s2804_s19 + $0x330] ss:$8 sps:$4 sm:$0xff]  }
  0x9f   : > { %1670 = vmatpush1.bf16.msra.mxu1 %v2307_v18  ;;  %1756 = vmatpush1.bf16.msra.mxu0 %v2310_v19  ;;  %v2399_v18 = vld [vmem:[%s2804_s19 + $0x1f4] ss:$8 sps:$4 sm:$0xff]  }
  0xa0   : > { %1671 = vmatprep.subr.bf16.mxu1 %v2315_v20  ;;  %1757 = vmatprep.subr.bf16.mxu0 %v2318_v21  ;;  %v2402_v19 = vld [vmem:[%s2804_s19 + $0x3f4] ss:$8 sps:$4 sm:$0xff]   ;;  %v2397_v20 = vld [vmem:[%s2804_s19 + $0x1f0] ss:$8 sps:$4 sm:$0xff]  }
  0xa1   : > { %1701 = vmatprep.mubr.bf16.mxu1 %v2015_v22  ;;  %1787 = vmatprep.mubr.bf16.mxu0 %v2019_v39  ;;  %v2400_v21 = vld [vmem:[%s2804_s19 + $0x3f0] ss:$8 sps:$4 sm:$0xff]   ;;  %v2014_v22 = vcombine.low %v2875_v16, %v2880_v17 }
  0xa3   : > { %1672 = vmatpush1.bf16.msra.mxu1 %v2313_v23  ;;  %1758 = vmatpush1.bf16.msra.mxu0 %v2316_v24  ;;  %v2018_v23 = vcombine.low %v2914_v34, %v2922_v38  ;;  %v1815_v24 = vlaneseq }
  0xa4   : > { %1673 = vmatprep.subr.bf16.mxu1 %v2321_v25  ;;  %1759 = vmatprep.subr.bf16.mxu0 %v2324_v26 }
  0xa5   : > { %v1816_v25 = vshrl.u32 %v1815_v24, 7 }
  0xa7   : > { %1674 = vmatpush1.bf16.msra.mxu1 %v2319_v0  ;;  %1760 = vmatpush1.bf16.msra.mxu0 %v2322_v1  ;;  %v1817_v26 = vsub.s32 0, %v1816_v25  ;;  %v1813_v0 = vld [vmem:[%s794_s7] sm:$0x3]  ;;  %v1821_v16 = vsub.s32 1, %v1816_v25 }
  0xa8   : > { %1675 = vmatprep.subr.bf16.mxu1 %v2327_v2  ;;  %1761 = vmatprep.subr.bf16.mxu0 %v2330_v3 }
  0xa9   : > { %v1818_v17 = vrot.slane %v1813_v0, %v1817_v26  ;;  %v1822_v3 = vrot.slane %v1813_v0, %v1821_v16 }
  0xab   : > { %1676 = vmatpush1.bf16.msra.mxu1 %v2325_v5  ;;  %1762 = vmatpush1.bf16.msra.mxu0 %v2328_v6 }
  0xac   : > { %1677 = vmatprep.subr.bf16.mxu1 %v2333_v27  ;;  %1763 = vmatprep.subr.bf16.mxu0 %v2336_v28 }
  0xaf   : > { %1678 = vmatpush1.bf16.msra.mxu1 %v2331_v29  ;;  %1764 = vmatpush1.bf16.msra.mxu0 %v2334_v30 }
  0xb0   : > { %1679 = vmatprep.subr.bf16.mxu1 %v2339_v31  ;;  %1765 = vmatprep.subr.bf16.mxu0 %v2342_v32 }
  0xb3   : > { %1680 = vmatpush1.bf16.msra.mxu1 %v2337_v33  ;;  %1766 = vmatpush1.bf16.msra.mxu0 %v2340_v35 }
  0xb4   : > { %1681 = vmatprep.subr.bf16.mxu1 %v2345_v36  ;;  %1767 = vmatprep.subr.bf16.mxu0 %v2348_v37 }
  0xb7   : > { %1682 = vmatpush1.bf16.msra.mxu1 %v2343_v40  ;;  %1768 = vmatpush1.bf16.msra.mxu0 %v2346_v41 }
  0xb8   : > { %1683 = vmatprep.subr.bf16.mxu1 %v2351_v42  ;;  %1769 = vmatprep.subr.bf16.mxu0 %v2354_v43 }
  0xbb   : > { %1684 = vmatpush1.bf16.msra.mxu1 %v2349_v44  ;;  %1770 = vmatpush1.bf16.msra.mxu0 %v2352_v45 }
  0xbc   : > { %1685 = vmatprep.subr.bf16.mxu1 %v2357_v46  ;;  %1771 = vmatprep.subr.bf16.mxu0 %v2360_v47 }
  0xbf   : > { %1686 = vmatpush1.bf16.msra.mxu1 %v2355_v48  ;;  %1772 = vmatpush1.bf16.msra.mxu0 %v2358_v49 }
  0xc0   : > { %1687 = vmatprep.subr.bf16.mxu1 %v2363_v50  ;;  %1773 = vmatprep.subr.bf16.mxu0 %v2366_v51 }
  0xc3   : > { %1688 = vmatpush1.bf16.msra.mxu1 %v2361_v52  ;;  %1774 = vmatpush1.bf16.msra.mxu0 %v2364_v53 }
  0xc4   : > { %1689 = vmatprep.subr.bf16.mxu1 %v2369_v54  ;;  %1775 = vmatprep.subr.bf16.mxu0 %v2372_v55 }
  0xc7   : > { %1690 = vmatpush1.bf16.msra.mxu1 %v2367_v56  ;;  %1776 = vmatpush1.bf16.msra.mxu0 %v2370_v57 }
  0xc8   : > { %1691 = vmatprep.subr.bf16.mxu1 %v2375_v58  ;;  %1777 = vmatprep.subr.bf16.mxu0 %v2378_v59 }
  0xcb   : > { %1692 = vmatpush1.bf16.msra.mxu1 %v2373_v60  ;;  %1778 = vmatpush1.bf16.msra.mxu0 %v2376_v61 }
  0xcc   : > { %1693 = vmatprep.subr.bf16.mxu1 %v2381_v62  ;;  %1779 = vmatprep.subr.bf16.mxu0 %v2384_v63 }
  0xcf   : > { %1694 = vmatpush1.bf16.msra.mxu1 %v2379_v4  ;;  %1780 = vmatpush1.bf16.msra.mxu0 %v2382_v7 }
  0xd0   : > { %1695 = vmatprep.subr.bf16.mxu1 %v2387_v8  ;;  %1781 = vmatprep.subr.bf16.mxu0 %v2390_v9 }
  0xd3   : > { %1696 = vmatpush1.bf16.msra.mxu1 %v2385_v10  ;;  %1782 = vmatpush1.bf16.msra.mxu0 %v2388_v11 }
  0xd4   : > { %1697 = vmatprep.subr.bf16.mxu1 %v2393_v12  ;;  %1783 = vmatprep.subr.bf16.mxu0 %v2396_v13 }
  0xd7   : > { %1698 = vmatpush1.bf16.msra.mxu1 %v2391_v14  ;;  %1784 = vmatpush1.bf16.msra.mxu0 %v2394_v15 }
  0xd8   : > { %1699 = vmatprep.subr.bf16.mxu1 %v2399_v18  ;;  %1785 = vmatprep.subr.bf16.mxu0 %v2402_v19 }
  0xdb   : > { %1700 = vmatpush1.bf16.msra.mxu1 %v2397_v20  ;;  %1786 = vmatpush1.bf16.msra.mxu0 %v2400_v21 }
  0xde   : > { %1702 = vmatmul.mubr.bf16.vlgmr.msra.gmra.mrb[0].mxu1 %v2014_v22  ;;  %1788 = vmatmul.mubr.bf16.vlgmr.msra.gmra.mrb[0].mxu0 %v2018_v23 }
 0x1b1   : > { %v1703_v1 = vpop.f32.mrb[0].mxu1  ;;  %v1789_v2 = vpop.f32.mrb[0].mxu0 }
 0x1b2   : > { %v2159_v5 = vadd.f32 %v1789_v2, %v1703_v1  ;;  %v1705_v6 = vpop.f32.mrb[1].mxu1  ;;  %v1791_v27 = vpop.f32.mrb[1].mxu0 }
 0x1b3   : > { %v2160_v28 = vadd.f32 %v1791_v27, %v1705_v6  ;;  %v1707_v29 = vpop.f32.mrb[2].mxu1  ;;  %v1793_v30 = vpop.f32.mrb[2].mxu0 }
 0x1b4   : > { %v1825_v31 = vadd.f32 %v2159_v5, %v1818_v17  ;;  %v2161_v32 = vadd.f32 %v1793_v30, %v1707_v29  ;;  %v1709_v33 = vpop.f32.mrb[3].mxu1  ;;  %v1795_v34 = vpop.f32.mrb[3].mxu0 }
 0x1b5   : > { %v1826_v35 = vadd.f32 %v2160_v28, %v1822_v3  ;;  %v2162_v36 = vadd.f32 %v1795_v34, %v1709_v33 }
 0x1b6   : > { %v1829_v37 = vmax.f32 %v1825_v31, 0.0  ;;  %v1827_v38 = vadd.f32 %v2161_v32, %v1818_v17 }
 0x1b7   : > { %v1830_v39 = vmax.f32 %v1826_v35, 0.0  ;;  %v1828_v40 = vadd.f32 %v2162_v36, %v1822_v3  ;;  %1853 = sbr.rel (!%p2498_p6) target bundleno = 454 (0x1c6), region = 82 }
 0x1b8   : > { %v1831_v41 = vmax.f32 %v1827_v38, 0.0 }
 0x1b9   : > { %v2156_v42 = vpack.c.bf16 %v1830_v39, %v1829_v37  ;;  %v1832_v43 = vmax.f32 %v1828_v40, 0.0 }
 0x1bb   : > { %1845 = vst [vmem:[%s776_s9] sm:$0xff] %v2156_v42  ;;  %v2157_v44 = vpack.c.bf16 %v1832_v43, %v1831_v41 }
 0x1bd   : > { %1846 = vst [vmem:[%s776_s9 + $0x8] sm:$0xff] %v2157_v44 }
 0x1c2   : > { %v1889_v45 = vld [vmem:[%s776_s9] sm:$0xff] }
 0x1c3   : > { %1890 = vst [vmem:[%s1859_s11] sm:$0xff] %v1889_v45 }
 0x1c4   : > { %v1891_v46 = vld [vmem:[%s776_s9 + $0x8] sm:$0xff] }
 0x1c5   : > { %1892 = vst [vmem:[%s1859_s11 + $0x10] sm:$0xff] %v1891_v46 }
 0x1c6 PF: > { %s13_s16 = sadd.s32 1, %s2441_s16   ;;  %s3000_s12 = smov %s2429_s13 }
 0x1c7   : > { %p10_p12 = scmp.ge.s32.totalorder %s13_s16, 4   ;;  %s3001_s13 = smov %s2503_s22 }
 0x1c8   : > { %s3002_s14 = smov %s2437_s15  ;;  %s3003_s15 = smov %s3005_s17 }
 0x1c9   :  { %12 = sbr.rel (!%p10_p12) target bundleno = 3 (0x3), region = 157 }

// kernel: tomato_forward.7
= control target key start
LH: loop header
LB: loop body
LE: loop exit
PB: predicated region body
PF: predicated region fallthrough
CT: control target
= control target key end

     0   :  { %s665_s1 = inlined_call_operand.vmem [shape: bf16[512,128], index: 1, kind: input, shape index: {}]   ;;  %s666_s0 = inlined_call_operand.vmem [shape: bf16[16,512], index: 0, kind: input, shape index: {}]   ;;  %s667_s2 = inlined_call_operand.vmem [shape: f32[1,128], index: 2, kind: input, shape index: {}]   ;;  %s668_s3 = inlined_call_operand.vmem [shape: f32[16,128], index: 3, kind: output, shape index: {}]  }
   0x1   :  { %v490_v0 = vld [vmem:[%s665_s1 + $0x40] sm:$0xff]   ;;  %v494_v4 = vld [vmem:[%s665_s1 + $0x48] sm:$0xff]   ;;  %v498_v8 = vld [vmem:[%s665_s1 + $0x50] sm:$0xff]  }
   0x2   :  { %v491_v1 = vld [vmem:[%s665_s1 + $0xc0] sm:$0xff]   ;;  %446 = vmatprep.subr.bf16.mxu0 %v490_v0  ;;  %v495_v5 = vld [vmem:[%s665_s1 + $0xc8] sm:$0xff]   ;;  %v499_v9 = vld [vmem:[%s665_s1 + $0xd0] sm:$0xff]  }
   0x3   :  { %v492_v2 = vld [vmem:[%s665_s1] sm:$0xff]   ;;  %468 = vmatprep.subr.bf16.mxu1 %v491_v1  ;;  %v496_v6 = vld [vmem:[%s665_s1 + $0x8] sm:$0xff]   ;;  %v500_v10 = vld [vmem:[%s665_s1 + $0x10] sm:$0xff]  }
   0x4   :  { %v493_v3 = vld [vmem:[%s665_s1 + $0x80] sm:$0xff]   ;;  %447 = vmatpush3.bf16.msra.mxu0 %v492_v2  ;;  %v497_v7 = vld [vmem:[%s665_s1 + $0x88] sm:$0xff]   ;;  %v501_v11 = vld [vmem:[%s665_s1 + $0x90] sm:$0xff]  }
   0x5   :  { %469 = vmatpush3.bf16.msra.mxu1 %v493_v3  ;;  %448 = vmatprep.subr.bf16.mxu0 %v494_v4  ;;  %v502_v12 = vld [vmem:[%s665_s1 + $0x58] sm:$0xff]   ;;  %v506_v16 = vld [vmem:[%s665_s1 + $0x60] sm:$0xff]   ;;  %v510_v20 = vld [vmem:[%s665_s1 + $0x68] sm:$0xff]  }
   0x6   :  { %470 = vmatprep.subr.bf16.mxu1 %v495_v5  ;;  %v503_v13 = vld [vmem:[%s665_s1 + $0xd8] sm:$0xff]   ;;  %v507_v17 = vld [vmem:[%s665_s1 + $0xe0] sm:$0xff]   ;;  %v511_v21 = vld [vmem:[%s665_s1 + $0xe8] sm:$0xff]  }
   0x7   :  { %v504_v14 = vld [vmem:[%s665_s1 + $0x18] sm:$0xff]   ;;  %v508_v18 = vld [vmem:[%s665_s1 + $0x20] sm:$0xff]   ;;  %v512_v22 = vld [vmem:[%s665_s1 + $0x28] sm:$0xff]  }
   0x8   :  { %449 = vmatpush3.bf16.msra.mxu0 %v496_v6  ;;  %v505_v15 = vld [vmem:[%s665_s1 + $0x98] sm:$0xff]   ;;  %v509_v19 = vld [vmem:[%s665_s1 + $0xa0] sm:$0xff]   ;;  %v513_v23 = vld [vmem:[%s665_s1 + $0xa8] sm:$0xff]  }
   0x9   :  { %471 = vmatpush3.bf16.msra.mxu1 %v497_v7  ;;  %450 = vmatprep.subr.bf16.mxu0 %v498_v8  ;;  %v514_v24 = vld [vmem:[%s665_s1 + $0x70] sm:$0xff]   ;;  %v518_v28 = vld [vmem:[%s665_s1 + $0x78] sm:$0xff]   ;;  %v445_v45 = vld [vmem:[%s667_s2] ss:$0 sm:$0xff] }
   0xa   :  { %472 = vmatprep.subr.bf16.mxu1 %v499_v9  ;;  %v515_v25 = vld [vmem:[%s665_s1 + $0xf0] sm:$0xff]   ;;  %v519_v29 = vld [vmem:[%s665_s1 + $0xf8] sm:$0xff]  }
   0xb   :  { %v516_v26 = vld [vmem:[%s665_s1 + $0x30] sm:$0xff]   ;;  %v520_v30 = vld [vmem:[%s665_s1 + $0x38] sm:$0xff]  }
   0xc   :  { %451 = vmatpush3.bf16.msra.mxu0 %v500_v10  ;;  %v517_v27 = vld [vmem:[%s665_s1 + $0xb0] sm:$0xff]   ;;  %v521_v31 = vld [vmem:[%s665_s1 + $0xb8] sm:$0xff]  }
   0xd   :  { %473 = vmatpush3.bf16.msra.mxu1 %v501_v11  ;;  %452 = vmatprep.subr.bf16.mxu0 %v502_v12  ;;  %v522_v32 = vld [vmem:[%s666_s0] ss:$16 sps:$4 sm:$0xff]   ;;  %v524_v33 = vld [vmem:[%s666_s0 + $0x4] ss:$16 sps:$4 sm:$0xff]   ;;  %v525_v34 = vld [vmem:[%s666_s0 + $0x8] ss:$16 sps:$4 sm:$0xff]  }
   0xe   :  { %474 = vmatprep.subr.bf16.mxu1 %v503_v13  ;;  %v527_v35 = vld [vmem:[%s666_s0 + $0xc] ss:$16 sps:$4 sm:$0xff]   ;;  %335 = vmatprep.mubr.bf16.mxu0 %v524_v33 }
   0xf   :  { %376 = vmatprep.mubr.bf16.mxu1 %v527_v35 }
  0x10   :  { %453 = vmatpush3.bf16.msra.mxu0 %v504_v14 }
  0x11   :  { %475 = vmatpush3.bf16.msra.mxu1 %v505_v15  ;;  %454 = vmatprep.subr.bf16.mxu0 %v506_v16 }
  0x12   :  { %476 = vmatprep.subr.bf16.mxu1 %v507_v17 }
  0x14   :  { %455 = vmatpush3.bf16.msra.mxu0 %v508_v18 }
  0x15   :  { %477 = vmatpush3.bf16.msra.mxu1 %v509_v19  ;;  %456 = vmatprep.subr.bf16.mxu0 %v510_v20 }
  0x16   :  { %478 = vmatprep.subr.bf16.mxu1 %v511_v21 }
  0x18   :  { %457 = vmatpush3.bf16.msra.mxu0 %v512_v22 }
  0x19   :  { %479 = vmatpush3.bf16.msra.mxu1 %v513_v23  ;;  %458 = vmatprep.subr.bf16.mxu0 %v514_v24 }
  0x1a   :  { %480 = vmatprep.subr.bf16.mxu1 %v515_v25 }
  0x1c   :  { %459 = vmatpush3.bf16.msra.mxu0 %v516_v26 }
  0x1d   :  { %481 = vmatpush3.bf16.msra.mxu1 %v517_v27  ;;  %460 = vmatprep.subr.bf16.mxu0 %v518_v28 }
  0x1e   :  { %482 = vmatprep.subr.bf16.mxu1 %v519_v29 }
  0x20   :  { %461 = vmatpush3.bf16.msra.mxu0 %v520_v30 }
  0x21   :  { %483 = vmatpush3.bf16.msra.mxu1 %v521_v31 }
  0x23   :  { %336 = vmatmul.mubr.bf16.vlgmr.msra.gmra.mrb[0].mxu0 %v522_v32 }
  0x24   :  { %377 = vmatmul.mubr.bf16.vlgmr.msra.gmra.mrb[0].mxu1 %v525_v34 }
  0xf6   :  { %v462_v36 = vpop.f32.mrb[0].mxu0 }
  0xf7   :  { %v484_v37 = vpop.f32.mrb[0].mxu1  ;;  %v463_v38 = vpop.f32.mrb[1].mxu0 }
  0xf8   :  { %v464_v39 = vadd.f32 %v463_v38, %v462_v36  ;;  %v485_v40 = vpop.f32.mrb[1].mxu1  ;;  %v465_v41 = vpop.f32.mrb[2].mxu0 }
  0xf9   :  { %v486_v42 = vadd.f32 %v485_v40, %v484_v37  ;;  %v487_v43 = vpop.f32.mrb[2].mxu1  ;;  %v466_v44 = vpop.f32.mrb[3].mxu0 }
  0xfa   :  { %v467_v46 = vadd.f32 %v466_v44, %v465_v41  ;;  %v488_v47 = vpop.f32.mrb[3].mxu1 }
  0xfb   :  { %v379_v48 = vadd.f32 %v486_v42, %v464_v39  ;;  %v489_v49 = vadd.f32 %v488_v47, %v487_v43 }
  0xfd   :  { %v401_v50 = vadd.f32 %v445_v45, %v379_v48  ;;  %v382_v51 = vadd.f32 %v489_v49, %v467_v46 }
  0xff   :  { %403 = vst [vmem:[%s668_s3] sm:$0xff] %v401_v50  ;;  %v402_v52 = vadd.f32 %v445_v45, %v382_v51 }
 0x101   :  { %404 = vst [vmem:[%s668_s3 + $0x8] sm:$0xff] %v402_v52 }

// kernel: tomato_forward.5
= control target key start
LH: loop header
LB: loop body
LE: loop exit
PB: predicated region body
PF: predicated region fallthrough
CT: control target
= control target key end

     0   :  { %s2279_s12 = smov 0   ;;  %s2929_s0 = inlined_call_operand.vmem [shape: bf16[2,10,10,32], index: 0, kind: input, shape index: {}]   ;;  %s2930_s1 = inlined_call_operand.vmem [shape: bf16[288,64], index: 1, kind: input, shape index: {}]   ;;  %s2931_s2 = inlined_call_operand.vmem [shape: f32[1,64], index: 2, kind: input, shape index: {}]   ;;  %s2932_s3 = inlined_call_operand.vmem [shape: bf16[2,4,4,64], index: 3, kind: output, shape index: {}]  }
   0x1 LB: > { %s1961_s13 = sadd.s32 4294967295, %s2253_s12   ;;  %p1965_p0 = scmp.ge.s32.totalorder %s2253_s12, 1  ;;  %s2253_s12 = sphi %s2279_s12, %s13_s12  }
   0x2   : > { %p137_p1 = scmp.lt.s32.totalorder %s2253_s12, 3 }
   0x4   : > { %p138_p2 = pnand %p1965_p0, %p137_p1 }
   0x5   : > { %p161_p3 = scmp.lt.s32.totalorder (!%p138_p2), %s1961_s13, 1  ;;  %vm385_vm0 = vcmask (!%p138_p2), 1042432   ;;  %vm386_vm1 = vcmask (!%p138_p2), 1046532   ;;  %v2214_v1 = vld [vmem:[%s2930_s1 + $0x40] sm:$0xff] (!%p138_p2)   ;;  %v2216_v3 = vld [vmem:[%s2930_s1 + $0x48] sm:$0xff] (!%p138_p2)   ;;  %v2218_v5 = vld [vmem:[%s2930_s1 + $0x50] sm:$0xff] (!%p138_p2)  }
   0x6   : > { %141 = sbr.rel (%p138_p2) target bundleno = 489 (0x1e9), region = 32  ;;  %vm2289_vm2 = vmor (!%p138_p2), %vm385_vm0, %vm386_vm1  ;;  %v2215_v2 = vld [vmem:[%s2930_s1] sm:$0xff] (!%p138_p2)   ;;  %2127 = vmatprep.subr.bf16.mxu0 (!%p138_p2), %v2214_v1  ;;  %2185 = vmatprep.subr.bf16.mxu1 (!%p138_p2), %v2214_v1  ;;  %v2217_v4 = vld [vmem:[%s2930_s1 + $0x8] sm:$0xff] (!%p138_p2)   ;;  %vm205_vm3 = vsmask.f32 (!%p138_p2), 3328  ;;  %s2255_s28 = smov (!%p138_p2), 64  }
   0x7   : > { %2128 = vmatpush3.bf16.msra.mxu0 (!%p138_p2), %v2215_v2  ;;  %2193 = vmatpush3.bf16.msra.mxu1 (!%p138_p2), %v2215_v2  ;;  %vm206_vm4 = vsmask.f32 (!%p138_p2), 7440  ;;  %s2256_s29 = smov (!%p138_p2), 32   ;;  %v2219_v25 = vld [vmem:[%s2930_s1 + $0x10] sm:$0xff] (!%p138_p2)   ;;  %v2220_v31 = vld [vmem:[%s2930_s1 + $0x58] sm:$0xff] (!%p138_p2)   ;;  %v2222_v40 = vld [vmem:[%s2930_s1 + $0x60] sm:$0xff] (!%p138_p2)  }
   0x8   : > { %2129 = vmatprep.subr.bf16.mxu0 (!%p138_p2), %v2216_v3  ;;  %2186 = vmatprep.subr.bf16.mxu1 (!%p138_p2), %v2216_v3  ;;  %v2221_v35 = vld [vmem:[%s2930_s1 + $0x18] sm:$0xff] (!%p138_p2)   ;;  %s2257_s11 = smov (!%p138_p2), 96   ;;  %v2223_v49 = vld [vmem:[%s2930_s1 + $0x20] sm:$0xff] (!%p138_p2)   ;;  %vm2360_vm5 = vmor (!%p138_p2), %vm205_vm3, %vm206_vm4  ;;  %vm180_vm6 = vcmask (!%p138_p2), 257024   ;;  %vm344_vm7 = vcmask (!%p138_p2), 519424   ;;  %vm444_vm8 = vcmask (!%p138_p2), 781824  }
   0x9   : > { %v2224_v55 = vld [vmem:[%s2930_s1 + $0x68] sm:$0xff] (!%p138_p2)   ;;  %vm494_vm9 = vcmask (!%p138_p2), 1044224   ;;  %vm1259_vm10 = vcmask (!%p138_p2), 261120   ;;  %vm1839_vm11 = vcmask (!%p138_p2), 1041409   ;;  %vm1842_vm12 = vcmask (!%p138_p2), 1042434  }
   0xa   : > { %vm1845_vm13 = vcmask (!%p138_p2), 1043459   ;;  %vm1901_vm14 = vcmask (!%p138_p2), 517120  }
   0xb   : > { %2130 = vmatpush3.bf16.msra.mxu0 (!%p138_p2), %v2217_v4  ;;  %2194 = vmatpush3.bf16.msra.mxu1 (!%p138_p2), %v2217_v4 }
   0xc   : > { %2131 = vmatprep.subr.bf16.mxu0 (!%p138_p2), %v2218_v5  ;;  %2187 = vmatprep.subr.bf16.mxu1 (!%p138_p2), %v2218_v5 }
   0xd   : > { %s2938_s13 = smov (!%p161_p3, %s1961_s13), 1 }
   0xe   : > { %s2201_s18 = smul.u32 80, %s2938_s13  ;;  %s2126_s7 = sshll.u32 %s2938_s13, 3 }
   0xf   : > { %2132 = vmatpush3.bf16.msra.mxu0 %v2219_v25  ;;  %2195 = vmatpush3.bf16.msra.mxu1 %v2219_v25  ;;  %s2878_s13 = scalar_lea.vmem %s2932_s3, %s2126_s7 }
  0x10   : > { %s2309_s25 = scalar_lea.vmem %s2929_s0, %s2201_s18  ;;  %2133 = vmatprep.subr.bf16.mxu0 %v2220_v31  ;;  %2188 = vmatprep.subr.bf16.mxu1 %v2220_v31 }
  0x11   : > { %v2025_v6 = vld [vmem:[%s2309_s25 + $0x10] sm:$0xf]  ;;  %v2001_v7 = vld [vmem:[%s2309_s25 + $0x8] sm:$0xe]  ;;  %v2002_v8 = vld [vmem:[%s2309_s25 + $0xc] sm:$0x1] }
  0x12   : > { %760 = vrot.lane.b32.xlu0 %v2025_v6, %s2255_s28  ;;  %v2017_v9 = vrot.slane %v2001_v7, 9  ;;  %v681_v10 = vrot.slane %v2002_v8, 5  ;;  %v353_v11 = vld [vmem:[%s2309_s25] sm:$0xe]  ;;  %v354_v12 = vld [vmem:[%s2309_s25 + $0x4] sm:$0x1] }
  0x13   : > { %v1969_v13 = vrot.slane %v353_v11, 9  ;;  %v390_v14 = vrot.slane %v354_v12, 5  ;;  %v2003_v15 = vld [vmem:[%s2309_s25 + $0x10] sm:$0xe]  ;;  %v2004_v16 = vld [vmem:[%s2309_s25 + $0x14] sm:$0x1]  ;;  %2134 = vmatpush3.bf16.msra.mxu0 %v2221_v35  ;;  %2196 = vmatpush3.bf16.msra.mxu1 %v2221_v35 }
  0x14   : > { %v682_v17 = vsel %vm2289_vm2, %v2017_v9, %v681_v10  ;;  %v2018_v18 = vrot.slane %v2003_v15, 9  ;;  %v685_v19 = vrot.slane %v2004_v16, 5  ;;  %v355_v20 = vld [vmem:[%s2309_s25 + $0x8] sm:$0xe]  ;;  %v356_v22 = vld [vmem:[%s2309_s25 + $0xc] sm:$0x1]  ;;  %2135 = vmatprep.subr.bf16.mxu0 %v2222_v40  ;;  %2189 = vmatprep.subr.bf16.mxu1 %v2222_v40 }
  0x15   : > { %711 = vrot.lane.b32.xlu1 %v682_v17, %s2256_s29  ;;  %v391_v21 = vsel %vm2289_vm2, %v1969_v13, %v390_v14  ;;  %v1970_v23 = vrot.slane %v355_v20, 9  ;;  %v189_v24 = vld [vmem:[%s2309_s25] sm:$0xf]  ;;  %v394_v27 = vrot.slane %v356_v22, 5  ;;  %v190_v28 = vld [vmem:[%s2309_s25 + $0x4] sm:$0x1] }
  0x16   : > { %420 = vrot.lane.b32.xlu0 %v391_v21, %s2255_s28  ;;  %v686_v26 = vsel %vm2289_vm2, %v2018_v18, %v685_v19  ;;  %v209_v29 = vshrl.u32 %v189_v24, 16  ;;  %v212_v30 = vshll.u32 %v189_v24, 16  ;;  %v1977_v32 = vld [vmem:[%s2309_s25 + $0x8] sm:$0xf]  ;;  %v218_v33 = vshll.u32 %v190_v28, 16  ;;  %v2226_v20 = vld [vmem:[%s2930_s1 + $0x70] sm:$0xff]  }
  0x17   : > { %v191_v34 = vld [vmem:[%s2309_s25 + $0x8] sm:$0xf]  ;;  %v192_v38 = vld [vmem:[%s2309_s25 + $0xc] sm:$0x1]  ;;  %v395_v44 = vsel %vm2289_vm2, %v1970_v23, %v394_v27  ;;  %v2033_v47 = vld [vmem:[%s2309_s25 + $0x10] sm:$0xf]  ;;  %2136 = vmatpush3.bf16.msra.mxu0 %v2223_v49  ;;  %2197 = vmatpush3.bf16.msra.mxu1 %v2223_v49 }
  0x18   : > { %v211_v36 = vrot.slane %v209_v29, 4  ;;  %v214_v37 = vrot.slane %v212_v30, 5  ;;  %v223_v39 = vshrl.u32 %v191_v34, 16  ;;  %v220_v41 = vrot.slane %v218_v33, 5  ;;  %v2034_v48 = vld [vmem:[%s2309_s25 + $0x14] sm:$0x1]  ;;  %2137 = vmatprep.subr.bf16.mxu0 %v2224_v55  ;;  %2190 = vmatprep.subr.bf16.mxu1 %v2224_v55 }
  0x19   : > { %713 = vrot.lane.b32.xlu1 %v686_v26, %s2256_s29  ;;  %v226_v42 = vshll.u32 %v191_v34, 16  ;;  %v232_v43 = vshll.u32 %v192_v38, 16  ;;  %v809_v52 = vshrl.u32 %v2033_v47, 16  ;;  %v812_v53 = vshll.u32 %v2033_v47, 16  ;;  %v2035_v54 = vld [vmem:[%s2309_s25 + $0x18] sm:$0xf] }
  0x1a   : > { %470 = vrot.lane.b32.xlu0 %v1977_v32, %s2257_s11  ;;  %v215_v45 = vor.u32 %v214_v37, %v211_v36  ;;  %v225_v46 = vrot.slane %v223_v39, 4  ;;  %v2026_v57 = vld [vmem:[%s2309_s25 + $0x18] sm:$0xf]  ;;  %v818_v58 = vshll.u32 %v2034_v48, 16  ;;  %v2036_v59 = vld [vmem:[%s2309_s25 + $0x1c] sm:$0x1] }
  0x1b   : > { %v228_v51 = vrot.slane %v226_v42, 5  ;;  %v823_v60 = vshrl.u32 %v2035_v54, 16  ;;  %v826_v61 = vshll.u32 %v2035_v54, 16  ;;  %v234_v63 = vrot.slane %v232_v43, 5  ;;  %v201_v3 = vld [vmem:[%s2309_s25 + $0x30] sm:$0xf] }
  0x1c   : > { %v216_v56 = vrot.slane %v215_v45, 4  ;;  %v811_v1 = vrot.slane %v809_v52, 4  ;;  %v814_v2 = vrot.slane %v812_v53, 5  ;;  %v832_v7 = vshll.u32 %v2036_v59, 16  ;;  %v202_v8 = vld [vmem:[%s2309_s25 + $0x34] sm:$0x1] }
  0x1d   : > { %422 = vrot.lane.b32.xlu1 %v395_v44, %s2255_s28  ;;  %v229_v62 = vor.u32 %v228_v51, %v225_v46  ;;  %v825_v5 = vrot.slane %v823_v60, 4  ;;  %v828_v6 = vrot.slane %v826_v61, 5  ;;  %v820_v11 = vrot.slane %v818_v58, 5  ;;  %v203_v13 = vld [vmem:[%s2309_s25 + $0x38] sm:$0xf]  ;;  %v2225_v14 = vld [vmem:[%s2930_s1 + $0x28] sm:$0xff]  }
  0x1e   : > { %v221_v4 = vsel %vm2360_vm5, %v216_v56, %v220_v41  ;;  %v815_v10 = vor.u32 %v814_v2, %v811_v1  ;;  %v293_v12 = vshrl.u32 %v201_v3, 16  ;;  %v296_v16 = vshll.u32 %v201_v3, 16  ;;  %v204_v18 = vld [vmem:[%s2309_s25 + $0x3c] sm:$0x1]  ;;  %v1978_v25 = vld [vmem:[%s2309_s25 + $0x10] sm:$0xf]  ;;  %2138 = vmatpush3.bf16.msra.mxu0 %v2225_v14  ;;  %2198 = vmatpush3.bf16.msra.mxu1 %v2225_v14 }
  0x1f   : > { %320 = vrot.lane.b32.xlu0 %v221_v4, %s2256_s29  ;;  %v230_v9 = vrot.slane %v229_v62, 4  ;;  %v829_v15 = vor.u32 %v828_v6, %v825_v5  ;;  %v302_v17 = vshll.u32 %v202_v8, 16  ;;  %v307_v19 = vshrl.u32 %v203_v13, 16  ;;  %v2227_v32 = vld [vmem:[%s2930_s1 + $0x30] sm:$0xff]   ;;  %2139 = vmatprep.subr.bf16.mxu0 %v2226_v20  ;;  %v2228_v36 = vld [vmem:[%s2930_s1 + $0x78] sm:$0xff]  }
  0x20   : > { %v816_v22 = vrot.slane %v815_v10, 4  ;;  %v295_v23 = vrot.slane %v293_v12, 4  ;;  %v310_v24 = vshll.u32 %v203_v13, 16  ;;  %v834_v27 = vrot.slane %v832_v7, 5  ;;  %v2013_v38 = vld [vmem:[%s2309_s25 + $0x38] sm:$0xe]  ;;  %2191 = vmatprep.subr.bf16.mxu1 %v2226_v20 }
  0x21   : > { %762 = vrot.lane.b32.xlu1 %v2026_v57, %s2255_s28  ;;  %v235_v21 = vsel %vm2360_vm5, %v230_v9, %v234_v63  ;;  %v830_v26 = vrot.slane %v829_v15, 4  ;;  %v298_v28 = vrot.slane %v296_v16, 5  ;;  %v309_v29 = vrot.slane %v307_v19, 4  ;;  %v2014_v39 = vld [vmem:[%s2309_s25 + $0x3c] sm:$0x1] }
  0x22   : > { %v312_v30 = vrot.slane %v310_v24, 5  ;;  %v316_v31 = vshll.u32 %v204_v18, 16  ;;  %v821_v33 = vsel %vm2360_vm5, %v816_v22, %v820_v11  ;;  %v304_v35 = vrot.slane %v302_v17, 5  ;;  %v2015_v43 = vld [vmem:[%s2309_s25 + $0x40] sm:$0xe]  ;;  %2140 = vmatpush3.bf16.msra.mxu0 %v2227_v32  ;;  %v2229_v47 = vld [vmem:[%s2930_s1 + $0x38] sm:$0xff]   ;;  %2199 = vmatpush3.bf16.msra.mxu1 %v2227_v32 }
  0x23   : > { %322 = vrot.lane.b32.xlu0 %v235_v21, %s2256_s29  ;;  %v299_v34 = vor.u32 %v298_v28, %v295_v23  ;;  %v835_v40 = vsel %vm2360_vm5, %v830_v26, %v834_v27  ;;  %v2016_v45 = vld [vmem:[%s2309_s25 + $0x44] sm:$0x1]  ;;  %v365_v46 = vld [vmem:[%s2309_s25 + $0x30] sm:$0xe]  ;;  %v2023_v49 = vrot.slane %v2013_v38, 9  ;;  %v705_v51 = vrot.slane %v2014_v39, 5  ;;  %2141 = vmatprep.subr.bf16.mxu0 %v2228_v36 }
  0x24   : > { %v313_v37 = vor.u32 %v312_v30, %v309_v29  ;;  %v318_v42 = vrot.slane %v316_v31, 5  ;;  %v366_v52 = vld [vmem:[%s2309_s25 + $0x34] sm:$0x1]  ;;  %v2045_v53 = vld [vmem:[%s2309_s25 + $0x40] sm:$0xf]  ;;  %2192 = vmatprep.subr.bf16.mxu1 %v2228_v36  ;;  %v2024_v56 = vrot.slane %v2015_v43, 9 }
  0x25   : > { %472 = vrot.lane.b32.xlu1 %v1978_v25, %s2257_s11  ;;  %v300_v41 = vrot.slane %v299_v34, 4  ;;  %v2047_v54 = vld [vmem:[%s2309_s25 + $0x48] sm:$0xf]  ;;  %v709_v57 = vrot.slane %v2016_v45, 5  ;;  %v1975_v58 = vrot.slane %v365_v46, 9  ;;  %v893_v61 = vshrl.u32 %v2045_v53, 16 }
  0x26   : > { %v314_v44 = vrot.slane %v313_v37, 4  ;;  %v367_v59 = vld [vmem:[%s2309_s25 + $0x38] sm:$0xe]  ;;  %v368_v60 = vld [vmem:[%s2309_s25 + $0x3c] sm:$0x1]  ;;  %v896_v62 = vshll.u32 %v2045_v53, 16  ;;  %2142 = vmatpush3.bf16.msra.mxu0 %v2229_v47  ;;  %v706_v1 = vsel %vm2289_vm2, %v2023_v49, %v705_v51  ;;  %2200 = vmatpush3.bf16.msra.mxu1 %v2229_v47 }
  0x27   : > { %920 = vrot.lane.b32.xlu0 %v821_v33, %s2257_s11  ;;  %v305_v48 = vsel %vm2360_vm5, %v300_v41, %v304_v35  ;;  %v193_v63 = vld [vmem:[%s2309_s25 + $0x10] sm:$0xf]  ;;  %v414_v2 = vrot.slane %v366_v52, 5  ;;  %v907_v3 = vshrl.u32 %v2047_v54, 16  ;;  %v910_v4 = vshll.u32 %v2047_v54, 16 }
  0x28   : > { %v319_v55 = vsel %vm2360_vm5, %v314_v44, %v318_v42  ;;  %v237_v5 = vshrl.u32 %v193_v63, 16  ;;  %v240_v6 = vshll.u32 %v193_v63, 16  ;;  %v710_v7 = vsel %vm2289_vm2, %v2024_v56, %v709_v57  ;;  %v2046_v10 = vld [vmem:[%s2309_s25 + $0x44] sm:$0x1]  ;;  %v2048_v11 = vld [vmem:[%s2309_s25 + $0x4c] sm:$0x1] }
  0x29   : > { %922 = vrot.lane.b32.xlu1 %v835_v40, %s2257_s11  ;;  %v1976_v8 = vrot.slane %v367_v59, 9  ;;  %v418_v9 = vrot.slane %v368_v60, 5  ;;  %v895_v12 = vrot.slane %v893_v61, 4  ;;  %v898_v13 = vrot.slane %v896_v62, 5  ;;  %v195_v14 = vld [vmem:[%s2309_s25 + $0x18] sm:$0xf] }
  0x2a   : > { %v415_v15 = vsel %vm2289_vm2, %v1975_v58, %v414_v2  ;;  %v909_v16 = vrot.slane %v907_v3, 4  ;;  %v912_v17 = vrot.slane %v910_v4, 5  ;;  %v194_v18 = vld [vmem:[%s2309_s25 + $0x14] sm:$0x1]  ;;  %v902_v19 = vshll.u32 %v2046_v10, 16 }
  0x2b   : > { %332 = vrot.lane.b32.xlu0 %v305_v48, %s2256_s29  ;;  %v916_v20 = vshll.u32 %v2048_v11, 16  ;;  %v239_v21 = vrot.slane %v237_v5, 4  ;;  %v242_v22 = vrot.slane %v240_v6, 5  ;;  %v196_v23 = vld [vmem:[%s2309_s25 + $0x1c] sm:$0x1]  ;;  %v419_v24 = vsel %vm2289_vm2, %v1976_v8, %v418_v9 }
  0x2c   : > { %v251_v25 = vshrl.u32 %v195_v14, 16  ;;  %v254_v26 = vshll.u32 %v195_v14, 16  ;;  %v899_v27 = vor.u32 %v898_v13, %v895_v12  ;;  %v246_v28 = vshll.u32 %v194_v18, 16  ;;  %v2031_v29 = vld [vmem:[%s2309_s25 + $0x40] sm:$0xf] }
  0x2d   : > { %334 = vrot.lane.b32.xlu1 %v319_v55, %s2256_s29  ;;  %v2032_v30 = vld [vmem:[%s2309_s25 + $0x48] sm:$0xf]  ;;  %v913_v31 = vor.u32 %v912_v17, %v909_v16  ;;  %v260_v32 = vshll.u32 %v196_v23, 16  ;;  %v904_v33 = vrot.slane %v902_v19, 5  ;;  %v2441_v34 = vrot.slane %v916_v20, 5 }
  0x2e   : > { %v243_v35 = vor.u32 %v242_v22, %v239_v21  ;;  %v2444_v36 = vld [vmem:[%s2309_s25 + $0x18] sm:$0xe]  ;;  %v2447_v37 = vld [vmem:[%s2309_s25 + $0x1c] sm:$0x1]  ;;  %v253_v39 = vrot.slane %v251_v25, 4  ;;  %v256_v40 = vrot.slane %v254_v26, 5 }
  0x2f   : > { %723 = vrot.lane.b32.xlu0 %v706_v1, %s2256_s29  ;;  %v1983_v38 = vld [vmem:[%s2309_s25 + $0x38] sm:$0xf]  ;;  %v2451_v41 = vld [vmem:[%s2309_s25 + $0x20] sm:$0xe]  ;;  %v900_v43 = vrot.slane %v899_v27, 4  ;;  %v2455_v44 = vrot.slane %v246_v28, 5 }
  0x30   : > { %v2037_v42 = vld [vmem:[%s2309_s25 + $0x20] sm:$0xf]  ;;  %v2039_v47 = vld [vmem:[%s2309_s25 + $0x28] sm:$0xf]  ;;  %v914_v49 = vrot.slane %v913_v31, 4  ;;  %v2459_v51 = vrot.slane %v260_v32, 5  ;;  %v257_v60 = vor.u32 %v256_v40, %v253_v39 }
  0x31   : > { %725 = vrot.lane.b32.xlu1 %v710_v7, %s2256_s29  ;;  %v837_v45 = vshrl.u32 %v2037_v42, 16  ;;  %v840_v46 = vshll.u32 %v2037_v42, 16  ;;  %v1984_v48 = vld [vmem:[%s2309_s25 + $0x40] sm:$0xf]  ;;  %v851_v52 = vshrl.u32 %v2039_v47, 16  ;;  %v854_v53 = vshll.u32 %v2039_v47, 16 }
  0x32   : > { %v244_v54 = vrot.slane %v243_v35, 4  ;;  %v2019_v55 = vrot.slane %v2444_v36, 9  ;;  %v689_v56 = vrot.slane %v2447_v37, 5  ;;  %v2465_v57 = vld [vmem:[%s2309_s25 + $0x24] sm:$0x1]  ;;  %v2020_v58 = vrot.slane %v2451_v41, 9 }
  0x33   : > { %432 = vrot.lane.b32.xlu0 %v415_v15, %s2255_s28  ;;  %v197_v59 = vld [vmem:[%s2309_s25 + $0x20] sm:$0xf]  ;;  %v2470_v61 = vld [vmem:[%s2309_s25 + $0x10] sm:$0xe]  ;;  %v2038_v62 = vld [vmem:[%s2309_s25 + $0x24] sm:$0x1]  ;;  %v905_v9 = vsel %vm2360_vm5, %v900_v43, %v904_v33  ;;  %v919_v10 = vsel %vm2360_vm5, %v914_v49, %v2441_v34 }
  0x34   : > { %v839_v63 = vrot.slane %v837_v45, 4  ;;  %v2040_v1 = vld [vmem:[%s2309_s25 + $0x2c] sm:$0x1]  ;;  %v265_v2 = vshrl.u32 %v197_v59, 16  ;;  %v2476_v3 = vld [vmem:[%s2309_s25 + $0x14] sm:$0x1] }
  0x35   : > { %434 = vrot.lane.b32.xlu1 %v419_v24, %s2255_s28  ;;  %v842_v4 = vrot.slane %v840_v46, 5  ;;  %v853_v5 = vrot.slane %v851_v52, 4  ;;  %v856_v6 = vrot.slane %v854_v53, 5  ;;  %v268_v7 = vshll.u32 %v197_v59, 16  ;;  %v199_v8 = vld [vmem:[%s2309_s25 + $0x28] sm:$0xf] }
  0x36   : > { %v2485_v11 = vld [vmem:[%s2309_s25 + $0x18] sm:$0xe]  ;;  %v198_v12 = vld [vmem:[%s2309_s25 + $0x24] sm:$0x1]  ;;  %v279_v13 = vshrl.u32 %v199_v8, 16  ;;  %v282_v14 = vshll.u32 %v199_v8, 16 }
  0x37   : > { %772 = vrot.lane.b32.xlu0 %v2031_v29, %s2255_s28  ;;  %v846_v15 = vshll.u32 %v2038_v62, 16  ;;  %v860_v16 = vshll.u32 %v2040_v1, 16  ;;  %v267_v17 = vrot.slane %v265_v2, 4  ;;  %v270_v18 = vrot.slane %v268_v7, 5  ;;  %v200_v19 = vld [vmem:[%s2309_s25 + $0x2c] sm:$0x1] }
  0x38   : > { %v258_v20 = vrot.slane %v257_v60, 4  ;;  %v693_v21 = vrot.slane %v2465_v57, 5  ;;  %v360_v22 = vld [vmem:[%s2309_s25 + $0x1c] sm:$0x1]  ;;  %v281_v23 = vrot.slane %v279_v13, 4  ;;  %v284_v24 = vrot.slane %v282_v14, 5 }
  0x39   : > { %774 = vrot.lane.b32.xlu1 %v2032_v30, %s2255_s28  ;;  %v1971_v25 = vrot.slane %v2470_v61, 9  ;;  %v843_v26 = vor.u32 %v842_v4, %v839_v63  ;;  %v857_v27 = vor.u32 %v856_v6, %v853_v5  ;;  %v274_v28 = vshll.u32 %v198_v12, 16  ;;  %v2500_v33 = vld [vmem:[%s2309_s25 + $0x28] sm:$0xe]  ;;  %v2508_v40 = vld [vmem:[%s2309_s25 + $0x2c] sm:$0x1] }
  0x3a   : > { %v249_v29 = vsel %vm2360_vm5, %v244_v54, %v2455_v44  ;;  %v398_v30 = vrot.slane %v2476_v3, 5  ;;  %v1972_v31 = vrot.slane %v2485_v11, 9  ;;  %v288_v32 = vshll.u32 %v200_v19, 16  ;;  %v2513_v42 = vld [vmem:[%s2930_s1 + $0x80] sm:$0xff]   ;;  %v2519_v45 = vld [vmem:[%s2309_s25 + $0x30] sm:$0xe] }
  0x3b   : > { %482 = vrot.lane.b32.xlu0 %v1983_v38, %s2257_s11  ;;  %v402_v34 = vrot.slane %v360_v22, 5  ;;  %v2503_v35 = vrot.slane %v846_v15, 5  ;;  %v2505_v38 = vrot.slane %v860_v16, 5  ;;  %v271_v39 = vor.u32 %v270_v18, %v267_v17  ;;  %v2522_v46 = vld [vmem:[%s2309_s25 + $0x34] sm:$0x1]  ;;  %2173 = vmatprep.subr.bf16.mxu1 %v2513_v42 }
  0x3c   : > { %v263_v43 = vsel %vm2360_vm5, %v258_v20, %v2459_v51  ;;  %v285_v44 = vor.u32 %v284_v24, %v281_v23  ;;  %v2525_v47 = vld [vmem:[%s2309_s25 + $0x20] sm:$0xe]  ;;  %v2530_v49 = vrot.slane %v857_v27, 4  ;;  %v2532_v52 = vrot.slane %v274_v28, 5  ;;  %v2536_v54 = vld [vmem:[%s2309_s25 + $0x24] sm:$0x1] }
  0x3d   : > { %484 = vrot.lane.b32.xlu1 %v1984_v48, %s2257_s11  ;;  %v2528_v48 = vrot.slane %v843_v26, 4  ;;  %v2021_v53 = vrot.slane %v2500_v33, 9  ;;  %v690_v51 = vsel %vm2289_vm2, %v2019_v55, %v689_v56  ;;  %v2545_v57 = vrot.slane %v288_v32, 5  ;;  %v2549_v60 = vld [vmem:[%s2309_s25 + $0x28] sm:$0xe] }
  0x3e   : > { %v697_v59 = vrot.slane %v2508_v40, 5  ;;  %v2552_v61 = vld [vmem:[%s2309_s25 + $0x2c] sm:$0x1]  ;;  %v2555_v37 = vrot.slane %v271_v39, 4  ;;  %v2022_v36 = vrot.slane %v2519_v45, 9  ;;  %v701_v55 = vrot.slane %v2522_v46, 5 }
  0x3f   : > { %932 = vrot.lane.b32.xlu0 %v905_v9, %s2257_s11  ;;  %v1973_v56 = vrot.slane %v2525_v47, 9  ;;  %v694_v62 = vsel %vm2289_vm2, %v2020_v58, %v693_v21  ;;  %v2564_v63 = vrot.slane %v285_v44, 4  ;;  %v406_v1 = vrot.slane %v2536_v54, 5  ;;  %v2041_v2 = vld [vmem:[%s2309_s25 + $0x30] sm:$0xf] }
  0x40   : > { %v1985_v3 = vld [vmem:[%s2309_s25 + $0x8] sm:$0xf]  ;;  %v1974_v4 = vrot.slane %v2549_v60, 9  ;;  %v410_v5 = vrot.slane %v2552_v61, 5  ;;  %v2042_v6 = vld [vmem:[%s2309_s25 + $0x34] sm:$0x1]  ;;  %v399_v7 = vsel %vm2289_vm2, %v1971_v25, %v398_v30  ;;  %v403_v58 = vsel %vm2289_vm2, %v1972_v31, %v402_v34 }
  0x41   : > { %934 = vrot.lane.b32.xlu1 %v919_v10, %s2257_s11  ;;  %v1986_v41 = vld [vmem:[%s2309_s25 + $0xc] sm:$0x1]  ;;  %v2579_v8 = vld [vmem:[%s2309_s25 + $0x38] sm:$0xf]  ;;  %v520_v9 = vshrl.u32 %v1985_v3, 16  ;;  %v523_v10 = vshll.u32 %v1985_v3, 16 }
  0x42   : > { %v1987_v11 = vld [vmem:[%s2309_s25 + $0x10] sm:$0xf]  ;;  %v865_v12 = vshrl.u32 %v2041_v2, 16  ;;  %v868_v13 = vshll.u32 %v2041_v2, 16  ;;  %v529_v14 = vshll.u32 %v1986_v41, 16  ;;  %v874_v18 = vshll.u32 %v2042_v6, 16 }
  0x43   : > { %324 = vrot.lane.b32.xlu0 %v249_v29, %s2256_s29  ;;  %v1988_v15 = vld [vmem:[%s2309_s25 + $0x14] sm:$0x1]  ;;  %v534_v16 = vshrl.u32 %v1987_v11, 16  ;;  %v2027_v17 = vld [vmem:[%s2309_s25 + $0x20] sm:$0xf]  ;;  %v522_v19 = vrot.slane %v520_v9, 4 }
  0x44   : > { %v525_v20 = vrot.slane %v523_v10, 5  ;;  %v537_v21 = vshll.u32 %v1987_v11, 16  ;;  %v879_v22 = vshrl.u32 %v2579_v8, 16  ;;  %v882_v23 = vshll.u32 %v2579_v8, 16  ;;  %v2028_v26 = vld [vmem:[%s2309_s25 + $0x28] sm:$0xf] }
  0x45   : > { %326 = vrot.lane.b32.xlu1 %v263_v43, %s2256_s29  ;;  %v536_v24 = vrot.slane %v534_v16, 4  ;;  %v543_v25 = vshll.u32 %v1988_v15, 16  ;;  %v531_v28 = vrot.slane %v529_v14, 5  ;;  %v172_v30 = vld [vmem:[%s2309_s25] sm:$0xf]  ;;  %v2591_v31 = vrot.slane %v865_v12, 4 }
  0x46   : > { %v526_v27 = vor.u32 %v525_v20, %v522_v19  ;;  %v539_v29 = vrot.slane %v537_v21, 5  ;;  %v2593_v32 = vrot.slane %v868_v13, 5  ;;  %181 = vst.msk [vmem:[#allocation2] sm:$0xf] %vm180_vm6, %v172_v30  ;;  %v1979_v34 = vld [vmem:[%s2309_s25 + $0x18] sm:$0xf]  ;;  %v849_v10 = vsel %vm2360_vm5, %v2528_v48, %v2503_v35 }
  0x47   : > { %715 = vrot.lane.b32.xlu0 %v690_v51, %s2256_s29  ;;  %v545_v44 = vrot.slane %v543_v25, 5  ;;  %v173_v51 = vld [vmem:[%s2309_s25 + $0x8] sm:$0xf]  ;;  %v2601_v2 = vrot.slane %v874_v18, 5  ;;  %v2604_v3 = vld [vmem:[%s2309_s25 + $0x3c] sm:$0x1] }
  0x48   : > { %v527_v39 = vrot.slane %v526_v27, 4  ;;  %v540_v43 = vor.u32 %v539_v29, %v536_v24  ;;  %182 = vst.msk [vmem:[#allocation2 + $0xc] sm:$0xf] %vm180_vm6, %v173_v51  ;;  %v179_v9 = vld [vmem:[%s2309_s25 + $0x38] sm:$0xf]  ;;  %v888_v13 = vshll.u32 %v2604_v3, 16  ;;  %v277_v24 = vsel %vm2360_vm5, %v2555_v37, %v2532_v52 }
  0x49   : > { %717 = vrot.lane.b32.xlu1 %v694_v62, %s2256_s29  ;;  %v1980_v62 = vld [vmem:[%s2309_s25 + $0x20] sm:$0xf]  ;;  %188 = vst.msk [vmem:[#allocation2 + $0x54] sm:$0xf] %vm180_vm6, %v179_v9  ;;  %v1997_v11 = vld [vmem:[%s2309_s25 + $0x38] sm:$0xf]  ;;  %v291_v27 = vsel %vm2360_vm5, %v2564_v63, %v2545_v57  ;;  %v871_v8 = vor.u32 %v2593_v32, %v2591_v31 }
  0x4a   : > { %v532_v6 = vsel %vm2360_vm5, %v527_v39, %v531_v28  ;;  %v541_v41 = vrot.slane %v540_v43, 4  ;;  %v1998_v12 = vld [vmem:[%s2309_s25 + $0x3c] sm:$0x1]  ;;  %v604_v14 = vshrl.u32 %v1997_v11, 16  ;;  %v607_v15 = vshll.u32 %v1997_v11, 16 }
  0x4b   : > { %424 = vrot.lane.b32.xlu0 %v399_v7, %s2255_s28  ;;  %639 = vst.msk [vmem:[#allocation2 + $0x4] sm:$0xf] %vm180_vm6, %v532_v6  ;;  %v613_v16 = vshll.u32 %v1998_v12, 16  ;;  %v1999_v18 = vld [vmem:[%s2309_s25 + $0x40] sm:$0xf]  ;;  %v2633_v48 = vrot.slane %v879_v22, 4  ;;  %v702_v11 = vsel %vm2289_vm2, %v2022_v36, %v701_v55 }
  0x4c   : > { %v546_v7 = vsel %vm2360_vm5, %v541_v41, %v545_v44  ;;  %v2000_v35 = vld [vmem:[%s2309_s25 + $0x44] sm:$0x1]  ;;  %v606_v19 = vrot.slane %v604_v14, 4  ;;  %v609_v20 = vrot.slane %v607_v15, 5  ;;  %v618_v21 = vshrl.u32 %v1999_v18, 16 }
  0x4d   : > { %426 = vrot.lane.b32.xlu1 %v403_v58, %s2255_s28  ;;  %v178_v58 = vld [vmem:[%s2309_s25 + $0x30] sm:$0xf]  ;;  %640 = vst.msk [vmem:[#allocation2 + $0x10] sm:$0xf] %vm180_vm6, %v546_v7  ;;  %v627_v22 = vshll.u32 %v2000_v35, 16  ;;  %v615_v40 = vrot.slane %v613_v16, 5  ;;  %v407_v16 = vsel %vm2289_vm2, %v1973_v56, %v406_v1 }
  0x4e   : > { %187 = vst.msk [vmem:[#allocation2 + $0x48] sm:$0xf] %vm180_vm6, %v178_v58  ;;  %v174_v25 = vld [vmem:[%s2309_s25 + $0x10] sm:$0xf]  ;;  %v610_v52 = vor.u32 %v609_v20, %v606_v19  ;;  %v620_v37 = vrot.slane %v618_v21, 4  ;;  %v2685_v47 = vrot.slane %v882_v23, 5 }
  0x4f   : > { %764 = vrot.lane.b32.xlu0 %v2027_v17, %s2255_s28  ;;  %v863_v17 = vsel %vm2360_vm5, %v2530_v49, %v2505_v38  ;;  %v698_v38 = vsel %vm2289_vm2, %v2021_v53, %v697_v59  ;;  %v621_v49 = vshll.u32 %v1999_v18, 16  ;;  %183 = vst.msk [vmem:[#allocation2 + $0x18] sm:$0xf] %vm180_vm6, %v174_v25  ;;  %v1989_v33 = vld [vmem:[%s2309_s25 + $0x18] sm:$0xf]  ;;  %v629_v28 = vrot.slane %v627_v22, 5 }
  0x50   : > { %v1990_v53 = vld [vmem:[%s2309_s25 + $0x1c] sm:$0x1]  ;;  %v548_v29 = vshrl.u32 %v1989_v33, 16  ;;  %v551_v30 = vshll.u32 %v1989_v33, 16  ;;  %v611_v39 = vrot.slane %v610_v52, 4 }
  0x51   : > { %766 = vrot.lane.b32.xlu1 %v2028_v26, %s2255_s28  ;;  %v175_v26 = vld [vmem:[%s2309_s25 + $0x18] sm:$0xf]  ;;  %v623_v59 = vrot.slane %v621_v49, 5  ;;  %v557_v43 = vshll.u32 %v1990_v53, 16  ;;  %v1992_v57 = vld [vmem:[%s2309_s25 + $0x24] sm:$0x1] }
  0x52   : > { %184 = vst.msk [vmem:[#allocation2 + $0x24] sm:$0xf] %vm180_vm6, %v175_v26  ;;  %v553_v6 = vrot.slane %v551_v30, 5  ;;  %v571_v41 = vshll.u32 %v1992_v57, 16  ;;  %v616_v7 = vsel %vm2360_vm5, %v611_v39, %v615_v40  ;;  %v2049_v45 = vld [vmem:[%s2309_s25 + $0x10] sm:$0xe] }
  0x53   : > { %474 = vrot.lane.b32.xlu0 %v1979_v34, %s2257_s11  ;;  %v1991_v34 = vld [vmem:[%s2309_s25 + $0x20] sm:$0xf]  ;;  %v624_v51 = vor.u32 %v623_v59, %v620_v37  ;;  %v559_v58 = vrot.slane %v557_v43, 5  ;;  %645 = vst.msk [vmem:[#allocation2 + $0x4c] sm:$0xf] %vm180_vm6, %v616_v7  ;;  %v2065_v19 = vrot.slane %v2049_v45, 9  ;;  %v885_v43 = vor.u32 %v2685_v47, %v2633_v48 }
  0x54   : > { %v562_v63 = vshrl.u32 %v1991_v34, 16  ;;  %v565_v44 = vshll.u32 %v1991_v34, 16  ;;  %v573_v15 = vrot.slane %v571_v41, 5  ;;  %v2051_v36 = vld [vmem:[%s2309_s25 + $0x18] sm:$0xe]  ;;  %v872_v39 = vrot.slane %v871_v8, 4 }
  0x55   : > { %476 = vrot.lane.b32.xlu1 %v1980_v62, %s2257_s11  ;;  %v550_v62 = vrot.slane %v548_v29, 4  ;;  %v625_v12 = vrot.slane %v624_v51, 4  ;;  %v2052_v35 = vld [vmem:[%s2309_s25 + $0x1c] sm:$0x1]  ;;  %v2066_v1 = vrot.slane %v2051_v36, 9 }
  0x56   : > { %v564_v9 = vrot.slane %v562_v63, 4  ;;  %v990_v20 = vrot.slane %v2052_v35, 5  ;;  %v2053_v21 = vld [vmem:[%s2309_s25 + $0x20] sm:$0xe]  ;;  %v2054_v22 = vld [vmem:[%s2309_s25 + $0x24] sm:$0x1] }
  0x57   : > { %924 = vrot.lane.b32.xlu0 %v849_v10, %s2257_s11  ;;  %v567_v10 = vrot.slane %v565_v44, 5  ;;  %v554_v14 = vor.u32 %v553_v6, %v550_v62  ;;  %v630_v55 = vsel %vm2360_vm5, %v625_v12, %v629_v28  ;;  %v2055_v61 = vld [vmem:[%s2309_s25 + $0x28] sm:$0xe]  ;;  %v2056_v25 = vld [vmem:[%s2309_s25 + $0x2c] sm:$0x1]  ;;  %v994_v31 = vrot.slane %v2054_v22, 5 }
  0x58   : > { %646 = vst.msk [vmem:[#allocation2 + $0x58] sm:$0xf] %vm180_vm6, %v630_v55  ;;  %v176_v32 = vld [vmem:[%s2309_s25 + $0x20] sm:$0xf]  ;;  %v2057_v26 = vld [vmem:[%s2309_s25 + $0x30] sm:$0xe] }
  0x59   : > { %926 = vrot.lane.b32.xlu1 %v863_v17, %s2257_s11  ;;  %v568_v46 = vor.u32 %v567_v10, %v564_v9  ;;  %v2050_v17 = vld [vmem:[%s2309_s25 + $0x14] sm:$0x1]  ;;  %v555_v18 = vrot.slane %v554_v14, 4  ;;  %v2068_v52 = vrot.slane %v2055_v61, 9  ;;  %v998_v40 = vrot.slane %v2056_v25, 5 }
  0x5a   : > { %v986_v54 = vrot.slane %v2050_v17, 5  ;;  %185 = vst.msk [vmem:[#allocation2 + $0x30] sm:$0xf] %vm180_vm6, %v176_v32  ;;  %v2058_v37 = vld [vmem:[%s2309_s25 + $0x34] sm:$0x1]  ;;  %v2069_v28 = vrot.slane %v2057_v26, 9 }
  0x5b   : > { %328 = vrot.lane.b32.xlu0 %v277_v24, %s2256_s29  ;;  %v569_v56 = vrot.slane %v568_v46, 4  ;;  %v411_v24 = vsel %vm2289_vm2, %v1974_v4, %v410_v5  ;;  %v560_v23 = vsel %vm2360_vm5, %v555_v18, %v559_v58  ;;  %v991_v4 = vsel %vm2289_vm2, %v2066_v1, %v990_v20  ;;  %v2059_v33 = vld [vmem:[%s2309_s25 + $0x38] sm:$0xe]  ;;  %v2060_v59 = vld [vmem:[%s2309_s25 + $0x3c] sm:$0x1] }
  0x5c   : > { %v987_v49 = vsel %vm2289_vm2, %v2065_v19, %v986_v54  ;;  %641 = vst.msk [vmem:[#allocation2 + $0x1c] sm:$0xf] %vm180_vm6, %v560_v23  ;;  %v2067_v5 = vrot.slane %v2053_v21, 9  ;;  %1025 = vst.msk [vmem:[#allocation2 + $0x14] sm:$0xf] %vm180_vm6, %v991_v4  ;;  %v1002_v29 = vrot.slane %v2058_v37, 5  ;;  %v999_v57 = vsel %vm2289_vm2, %v2068_v52, %v998_v40 }
  0x5d   : > { %330 = vrot.lane.b32.xlu1 %v291_v27, %s2256_s29  ;;  %v574_v60 = vsel %vm2360_vm5, %v569_v56, %v573_v15  ;;  %1024 = vst.msk [vmem:[#allocation2 + $0x8] sm:$0xf] %vm180_vm6, %v987_v49  ;;  %v2030_v27 = vld [vmem:[%s2309_s25 + $0x38] sm:$0xf]  ;;  %v2070_v30 = vrot.slane %v2059_v33, 9  ;;  %v1006_v63 = vrot.slane %v2060_v59, 5  ;;  %v877_v19 = vsel %vm2360_vm5, %v872_v39, %v2601_v2 }
  0x5e   : > { %642 = vst.msk [vmem:[#allocation2 + $0x28] sm:$0xf] %vm180_vm6, %v574_v60  ;;  %v995_v53 = vsel %vm2289_vm2, %v2067_v5, %v994_v31  ;;  %v1981_v34 = vld [vmem:[%s2309_s25 + $0x28] sm:$0xf]  ;;  %v2061_v51 = vld [vmem:[%s2309_s25 + $0x40] sm:$0xe]  ;;  %v1003_v62 = vsel %vm2289_vm2, %v2069_v28, %v1002_v29 }
  0x5f   : > { %719 = vrot.lane.b32.xlu0 %v698_v38, %s2256_s29  ;;  %v2029_v38 = vld [vmem:[%s2309_s25 + $0x30] sm:$0xf]  ;;  %1026 = vst.msk [vmem:[#allocation2 + $0x20] sm:$0xf] %vm180_vm6, %v995_v53  ;;  %v177_v44 = vld [vmem:[%s2309_s25 + $0x28] sm:$0xf]  ;;  %v1007_v58 = vsel %vm2289_vm2, %v2070_v30, %v1006_v63 }
  0x60   : > { %1027 = vst.msk [vmem:[#allocation2 + $0x2c] sm:$0xf] %vm180_vm6, %v999_v57  ;;  %186 = vst.msk [vmem:[#allocation2 + $0x3c] sm:$0xf] %vm180_vm6, %v177_v44  ;;  %v2062_v48 = vld [vmem:[%s2309_s25 + $0x44] sm:$0x1] }
  0x61   : > { %721 = vrot.lane.b32.xlu1 %v702_v11, %s2256_s29  ;;  %v2063_v6 = vld [vmem:[%s2309_s25 + $0x48] sm:$0xe]  ;;  %v2064_v41 = vld [vmem:[%s2309_s25 + $0x4c] sm:$0x1]  ;;  %v1982_v7 = vld [vmem:[%s2309_s25 + $0x30] sm:$0xf] }
  0x62   : > { %1028 = vst.msk [vmem:[#allocation2 + $0x38] sm:$0xf] %vm180_vm6, %v1003_v62  ;;  %v2071_v9 = vrot.slane %v2061_v51, 9  ;;  %v1010_v10 = vrot.slane %v2062_v48, 5  ;;  %v2072_v11 = vrot.slane %v2063_v6, 9  ;;  %v890_v14 = vrot.slane %v888_v13, 5 }
  0x63   : > { %428 = vrot.lane.b32.xlu0 %v407_v16, %s2255_s28  ;;  %v1993_v12 = vld [vmem:[%s2309_s25 + $0x28] sm:$0xf]  ;;  %1029 = vst.msk [vmem:[#allocation2 + $0x44] sm:$0xf] %vm180_vm6, %v1007_v58  ;;  %v1014_v15 = vrot.slane %v2064_v41, 5  ;;  %v886_v17 = vrot.slane %v885_v43, 4 }
  0x64   : > { %v1994_v16 = vld [vmem:[%s2309_s25 + $0x2c] sm:$0x1]  ;;  %v576_v46 = vshrl.u32 %v1993_v12, 16  ;;  %v579_v45 = vshll.u32 %v1993_v12, 16  ;;  %v1011_v36 = vsel %vm2289_vm2, %v2071_v9, %v1010_v10  ;;  %v1995_v18 = vld [vmem:[%s2309_s25 + $0x30] sm:$0xf] }
  0x65   : > { %430 = vrot.lane.b32.xlu1 %v411_v24, %s2255_s28  ;;  %v585_v55 = vshll.u32 %v1994_v16, 16  ;;  %v1015_v35 = vsel %vm2289_vm2, %v2072_v11, %v1014_v15  ;;  %1030 = vst.msk [vmem:[#allocation2 + $0x50] sm:$0xf] %vm180_vm6, %v1011_v36  ;;  %v1996_v54 = vld [vmem:[%s2309_s25 + $0x34] sm:$0x1]  ;;  %v590_v47 = vshrl.u32 %v1995_v18, 16  ;;  %v891_v0 = vsel %vm2360_vm5, %v886_v17, %v890_v14 }
  0x66   : > { %v578_v3 = vrot.slane %v576_v46, 4  ;;  %v581_v13 = vrot.slane %v579_v45, 5  ;;  %1031 = vst.msk [vmem:[#allocation2 + $0x5c] sm:$0xf] %vm180_vm6, %v1015_v35  ;;  %v593_v56 = vshll.u32 %v1995_v18, 16  ;;  %v599_v21 = vshll.u32 %v1996_v54, 16 }
  0x67   : > { %768 = vrot.lane.b32.xlu0 %v2029_v38, %s2255_s28  ;;  %v587_v20 = vrot.slane %v585_v55, 5  ;;  %v592_v24 = vrot.slane %v590_v47, 4  ;;  %v2237_v11 = vld [vmem:[%s2930_s1 + $0x88] sm:$0xff]  }
  0x68   : > { %v582_v1 = vor.u32 %v581_v13, %v578_v3  ;;  %v595_v38 = vrot.slane %v593_v56, 5  ;;  %v601_v2 = vrot.slane %v599_v21, 5  ;;  %v2239_v16 = vld [vmem:[#allocation2 + $0x20] ss:$12 sps:$4 sm:$0xff]  }
  0x69   : > { %770 = vrot.lane.b32.xlu1 %v2030_v27, %s2255_s28 }
  0x6a   : > { %v583_v8 = vrot.slane %v582_v1, 4  ;;  %v596_v23 = vor.u32 %v595_v38, %v592_v24  ;;  %v2240_v45 = vld [vmem:[#allocation2 + $0x38] ss:$12 sps:$4 sm:$0xff]  }
  0x6b   : > { %478 = vrot.lane.b32.xlu0 %v1981_v34, %s2257_s11 }
  0x6c   : > { %v588_v49 = vsel %vm2360_vm5, %v583_v8, %v587_v20  ;;  %v597_v22 = vrot.slane %v596_v23, 4 }
  0x6d   : > { %480 = vrot.lane.b32.xlu1 %v1982_v7, %s2257_s11  ;;  %643 = vst.msk [vmem:[#allocation2 + $0x34] sm:$0xf] %vm180_vm6, %v588_v49  ;;  %v2238_v7 = vld [vmem:[#allocation2 + $0x8] ss:$12 sps:$4 sm:$0xff]   ;;  %v2241_v55 = vld [vmem:[#allocation2 + $0x50] ss:$12 sps:$4 sm:$0xff]  }
  0x6e   : > { %v602_v61 = vsel %vm2360_vm5, %v597_v22, %v601_v2 }
  0x6f   : > { %928 = vrot.lane.b32.xlu0 %v877_v19, %s2257_s11  ;;  %644 = vst.msk [vmem:[#allocation2 + $0x40] sm:$0xf] %vm180_vm6, %v602_v61 }
  0x71   : > { %930 = vrot.lane.b32.xlu1 %v891_v0, %s2257_s11 }
  0x84   : > { %v761_v25 = vpop.permute.xlu0 %760 }
  0x87   : > { %v712_v60 = vpop.permute.xlu1 %711 }
  0x88   : > { %735 = vst.msk [vmem:[#allocation2 + $0x4] sm:$0xf] %vm344_vm7, %v712_v60  ;;  %v421_v4 = vpop.permute.xlu0 %420 }
  0x89   : > { %784 = vst.msk [vmem:[#allocation2 + $0x4] sm:$0xf] %vm444_vm8, %v761_v25 }
  0x8b   : > { %v714_v5 = vpop.permute.xlu1 %713 }
  0x8c   : > { %736 = vst.msk [vmem:[#allocation2 + $0x10] sm:$0xf] %vm344_vm7, %v714_v5  ;;  %v471_v31 = vpop.permute.xlu0 %470 }
  0x8f   : > { %v423_v32 = vpop.permute.xlu1 %422 }
  0x91   : > { %v321_v26 = vpop.permute.xlu0 %320 }
  0x92   : > { %345 = vst.msk [vmem:[#allocation2] sm:$0xf] %vm344_vm7, %v321_v26 }
  0x93   : > { %445 = vst.msk [vmem:[#allocation2] sm:$0xf] %vm444_vm8, %v421_v4  ;;  %v763_v50 = vpop.permute.xlu1 %762 }
  0x94   : > { %495 = vst.msk [vmem:[#allocation2] sm:$0xf] %vm494_vm9, %v471_v31 }
  0x95   : > { %785 = vst.msk [vmem:[#allocation2 + $0x10] sm:$0xf] %vm444_vm8, %v763_v50  ;;  %v323_v27 = vpop.permute.xlu0 %322 }
  0x96   : > { %346 = vst.msk [vmem:[#allocation2 + $0xc] sm:$0xf] %vm344_vm7, %v323_v27 }
  0x97   : > { %446 = vst.msk [vmem:[#allocation2 + $0xc] sm:$0xf] %vm444_vm8, %v423_v32  ;;  %v473_v52 = vpop.permute.xlu1 %472 }
  0x98   : > { %496 = vst.msk [vmem:[#allocation2 + $0xc] sm:$0xf] %vm494_vm9, %v473_v52 }
  0x99   : > { %v921_v40 = vpop.permute.xlu0 %920 }
  0x9a   : > { %944 = vst.msk [vmem:[#allocation2 + $0x4] sm:$0xf] %vm494_vm9, %v921_v40 }
  0x9b   : > { %v923_v37 = vpop.permute.xlu1 %922 }
  0x9c   : > { %945 = vst.msk [vmem:[#allocation2 + $0x10] sm:$0xf] %vm494_vm9, %v923_v37  ;;  %v2832_v37 = vld [vmem:[%s2931_s2] ss:$0 sm:$0xff] }
  0x9d   : > { %v333_v33 = vpop.permute.xlu0 %332 }
  0x9e   : > { %351 = vst.msk [vmem:[#allocation2 + $0x48] sm:$0xf] %vm344_vm7, %v333_v33  ;;  %v2258_v33 = vmov 1983009808  }
  0x9f   : > { %v335_v53 = vpop.permute.xlu1 %334  ;;  %v2230_v29 = vld [vmem:[#allocation2] ss:$12 sps:$4 sm:$0xff]  }
  0xa0   : > { %352 = vst.msk [vmem:[#allocation2 + $0x54] sm:$0xf] %vm344_vm7, %v335_v53  ;;  %v1420_v53 = vunpack.c.l.s4 %v2258_v33 }
  0xa1   : > { %v724_v59 = vpop.permute.xlu0 %723 }
  0xa2   : > { %741 = vst.msk [vmem:[#allocation2 + $0x4c] sm:$0xf] %vm344_vm7, %v724_v59  ;;  %v1422_v59 = vlaneseq }
  0xa3   : > { %v726_v28 = vpop.permute.xlu1 %725  ;;  %v2232_v30 = vld [vmem:[#allocation2 + $0x4] ss:$12 sps:$4 sm:$0xff]  }
  0xa4   : > { %742 = vst.msk [vmem:[#allocation2 + $0x58] sm:$0xf] %vm344_vm7, %v726_v28  ;;  %1304 = vmatprep.mubr.bf16.mxu0 %v2232_v30 }
  0xa5   : > { %v433_v34 = vpop.permute.xlu0 %432  ;;  %1305 = vmatmul.mubr.bf16.vlgmr.msra.gmra.mrb[0].mxu0 %v2230_v29 }
  0xa6   : > { %451 = vst.msk [vmem:[#allocation2 + $0x48] sm:$0xf] %vm444_vm8, %v433_v34 }
  0xa7   : > { %v435_v39 = vpop.permute.xlu1 %434 }
  0xa8   : > { %452 = vst.msk [vmem:[#allocation2 + $0x54] sm:$0xf] %vm444_vm8, %v435_v39 }
  0xa9   : > { %v773_v43 = vpop.permute.xlu0 %772 }
  0xaa   : > { %790 = vst.msk [vmem:[#allocation2 + $0x4c] sm:$0xf] %vm444_vm8, %v773_v43 }
  0xab   : > { %v775_v57 = vpop.permute.xlu1 %774 }
  0xac   : > { %791 = vst.msk [vmem:[#allocation2 + $0x58] sm:$0xf] %vm444_vm8, %v775_v57  ;;  %v1421_v57 = vunpack.c.0.s8 %v1420_v53 }
  0xad   : > { %v483_v63 = vpop.permute.xlu0 %482 }
  0xae   : > { %501 = vst.msk [vmem:[#allocation2 + $0x48] sm:$0xf] %vm494_vm9, %v483_v63  ;;  %v1423_v63 = vshrl.u32 %v1422_v59, 7 }
  0xaf   : > { %v485_v44 = vpop.permute.xlu1 %484 }
  0xb0   : > { %502 = vst.msk [vmem:[#allocation2 + $0x54] sm:$0xf] %vm494_vm9, %v485_v44 }
  0xb1   : > { %v933_v51 = vpop.permute.xlu0 %932 }
  0xb2   : > { %950 = vst.msk [vmem:[#allocation2 + $0x4c] sm:$0xf] %vm494_vm9, %v933_v51 }
  0xb3   : > { %v935_v62 = vpop.permute.xlu1 %934 }
  0xb4   : > { %951 = vst.msk [vmem:[#allocation2 + $0x58] sm:$0xf] %vm494_vm9, %v935_v62 }
  0xb5   : > { %v325_v48 = vpop.permute.xlu0 %324 }
  0xb6   : > { %347 = vst.msk [vmem:[#allocation2 + $0x18] sm:$0xf] %vm344_vm7, %v325_v48 }
  0xb7   : > { %v327_v6 = vpop.permute.xlu1 %326  ;;  %v2233_v9 = vld [vmem:[#allocation2 + $0x48] ss:$12 sps:$4 sm:$0xff]  }
  0xb8   : > { %348 = vst.msk [vmem:[#allocation2 + $0x24] sm:$0xf] %vm344_vm7, %v327_v6  ;;  %v2840_v6 = vsub.s32 %v1421_v57, %v1423_v63 }
  0xb9   : > { %v716_v41 = vpop.permute.xlu0 %715 }
  0xba   : > { %737 = vst.msk [vmem:[#allocation2 + $0x1c] sm:$0xf] %vm344_vm7, %v716_v41 }
  0xbb   : > { %v718_v58 = vpop.permute.xlu1 %717  ;;  %v2235_v10 = vld [vmem:[#allocation2 + $0x4c] ss:$12 sps:$4 sm:$0xff]  }
  0xbc   : > { %738 = vst.msk [vmem:[#allocation2 + $0x28] sm:$0xf] %vm344_vm7, %v718_v58  ;;  %1328 = vmatprep.mubr.bf16.mxu1 %v2235_v10 }
  0xbd   : > { %v425_v12 = vpop.permute.xlu0 %424  ;;  %1329 = vmatmul.mubr.bf16.vlgmr.msra.gmra.mrb[0].mxu1 %v2233_v9 }
  0xbe   : > { %447 = vst.msk [vmem:[#allocation2 + $0x18] sm:$0xf] %vm444_vm8, %v425_v12  ;;  %2174 = vmatpush3.bf16.msra.mxu1 %v2513_v42  ;;  %2177 = vmatprep.mubr.msk.bf16.mxu1 %vm1259_vm10, %v2238_v7 }
  0xbf   : > { %v427_v14 = vpop.permute.xlu1 %426  ;;  %2175 = vmatprep.subr.bf16.mxu1 %v2237_v11 }
  0xc0   : > { %448 = vst.msk [vmem:[#allocation2 + $0x24] sm:$0xf] %vm444_vm8, %v427_v14 }
  0xc1   : > { %v765_v15 = vpop.permute.xlu0 %764 }
  0xc2   : > { %786 = vst.msk [vmem:[#allocation2 + $0x1c] sm:$0xf] %vm444_vm8, %v765_v15  ;;  %2176 = vmatpush3.bf16.msra.mxu1 %v2237_v11 }
  0xc3   : > { %v767_v46 = vpop.permute.xlu1 %766 }
  0xc4   : > { %787 = vst.msk [vmem:[#allocation2 + $0x28] sm:$0xf] %vm444_vm8, %v767_v46 }
  0xc5   : > { %v475_v17 = vpop.permute.xlu0 %474  ;;  %2178 = vmatmul.mubr.msk.bf16.vlgmr.msra.gmra.mrb[4].mxu1 %vm1259_vm10, %v2239_v16 }
  0xc6   : > { %497 = vst.msk [vmem:[#allocation2 + $0x18] sm:$0xf] %vm494_vm9, %v475_v17  ;;  %2181 = vmatprep.mubr.msk.bf16.mxu1 %vm1259_vm10, %v2240_v45 }
  0xc7   : > { %v477_v42 = vpop.permute.xlu1 %476 }
  0xc8   : > { %498 = vst.msk [vmem:[#allocation2 + $0x24] sm:$0xf] %vm494_vm9, %v477_v42 }
  0xc9   : > { %v925_v36 = vpop.permute.xlu0 %924 }
  0xca   : > { %946 = vst.msk [vmem:[#allocation2 + $0x1c] sm:$0xf] %vm494_vm9, %v925_v36 }
  0xcb   : > { %v927_v18 = vpop.permute.xlu1 %926 }
  0xcc   : > { %947 = vst.msk [vmem:[#allocation2 + $0x28] sm:$0xf] %vm494_vm9, %v927_v18 }
  0xcd   : > { %v329_v35 = vpop.permute.xlu0 %328  ;;  %2182 = vmatmul.mubr.msk.bf16.gmra.mrb[8].mxu1 %vm1259_vm10, %v2241_v55 }
  0xce   : > { %349 = vst.msk [vmem:[#allocation2 + $0x30] sm:$0xf] %vm344_vm7, %v329_v35 }
  0xcf   : > { %v331_v3 = vpop.permute.xlu1 %330 }
  0xd0   : > { %350 = vst.msk [vmem:[#allocation2 + $0x3c] sm:$0xf] %vm344_vm7, %v331_v3 }
  0xd1   : > { %v720_v13 = vpop.permute.xlu0 %719  ;;  %v1036_v54 = vld [vmem:[#allocation2 + $0x18] sm:$0xff] }
  0xd2   : > { %739 = vst.msk [vmem:[#allocation2 + $0x34] sm:$0xf] %vm344_vm7, %v720_v13 }
  0xd3   : > { %v722_v19 = vpop.permute.xlu1 %721  ;;  %v1038_v47 = vld [vmem:[#allocation2 + $0x24] sm:$0xff] }
  0xd4   : > { %v2242_v56 = vld [vmem:[#allocation2 + $0x1c] ss:$12 sps:$4 sm:$0xff]   ;;  %740 = vst.msk [vmem:[#allocation2 + $0x40] sm:$0xf] %vm344_vm7, %v722_v19  ;;  %v2077_v1 = vcombine.low %v1036_v54, %v1038_v47 }
  0xd5   : > { %v429_v20 = vpop.permute.xlu0 %428  ;;  %1312 = vmatprep.mubr.bf16.mxu0 %v2242_v56 }
  0xd6   : > { %449 = vst.msk [vmem:[#allocation2 + $0x30] sm:$0xf] %vm444_vm8, %v429_v20  ;;  %1313 = vmatmul.mubr.bf16.gmra.mrb[4].mxu0 %v2077_v1 }
  0xd7   : > { %v431_v21 = vpop.permute.xlu1 %430 }
  0xd8   : > { %450 = vst.msk [vmem:[#allocation2 + $0x3c] sm:$0xf] %vm444_vm8, %v431_v21 }
  0xd9   : > { %v769_v0 = vpop.permute.xlu0 %768 }
  0xda   : > { %788 = vst.msk [vmem:[#allocation2 + $0x34] sm:$0xf] %vm444_vm8, %v769_v0 }
  0xdb   : > { %v771_v24 = vpop.permute.xlu1 %770 }
  0xdc   : > { %789 = vst.msk [vmem:[#allocation2 + $0x40] sm:$0xf] %vm444_vm8, %v771_v24 }
  0xdd   : > { %v479_v38 = vpop.permute.xlu0 %478 }
  0xde   : > { %499 = vst.msk [vmem:[#allocation2 + $0x30] sm:$0xf] %vm494_vm9, %v479_v38 }
  0xdf   : > { %v481_v8 = vpop.permute.xlu1 %480 }
  0xe0   : > { %500 = vst.msk [vmem:[#allocation2 + $0x3c] sm:$0xf] %vm494_vm9, %v481_v8 }
  0xe1   : > { %v929_v23 = vpop.permute.xlu0 %928 }
  0xe2   : > { %948 = vst.msk [vmem:[#allocation2 + $0x34] sm:$0xf] %vm494_vm9, %v929_v23 }
  0xe3   : > { %v931_v2 = vpop.permute.xlu1 %930 }
  0xe4   : > { %949 = vst.msk [vmem:[#allocation2 + $0x40] sm:$0xf] %vm494_vm9, %v931_v2 }
  0xe7   : > { %v2246_v22 = vld [vmem:[#allocation2 + $0x30] ss:$12 sps:$4 sm:$0xff]  }
  0xeb   : > { %v2244_v49 = vld [vmem:[#allocation2 + $0x34] ss:$12 sps:$4 sm:$0xff]  }
  0xec   : > { %1320 = vmatprep.mubr.bf16.mxu0 %v2244_v49 }
  0xed   : > { %1321 = vmatmul.mubr.bf16.gmra.mrb[8].mxu0 %v2246_v22 }
 0x178   : > { %v2143_v61 = vpop.f32.mrb[0].mxu0 }
 0x179   : > { %v2144_v25 = vpop.f32.mrb[1].mxu0 }
 0x17a   : > { %v2145_v60 = vadd.f32 %v2144_v25, %v2143_v61  ;;  %v2146_v4 = vpop.f32.mrb[2].mxu0 }
 0x17b   : > { %v2147_v5 = vpop.f32.mrb[3].mxu0 }
 0x17c   : > { %v2148_v31 = vadd.f32 %v2147_v5, %v2146_v4  ;;  %v1307_v29 = vadd.f32 %v2145_v60, %v2832_v37 }
 0x17e   : > { %v1310_v43 = vadd.f32 %v2148_v31, %v2832_v37 }
 0x190   : > { %v2161_v32 = vpop.f32.mrb[0].mxu1 }
 0x191   : > { %v2162_v26 = vpop.f32.mrb[1].mxu1 }
 0x192   : > { %v2163_v50 = vadd.f32 %v2162_v26, %v2161_v32  ;;  %v2164_v27 = vpop.f32.mrb[2].mxu1 }
 0x193   : > { %v2165_v52 = vpop.f32.mrb[3].mxu1 }
 0x194   : > { %v2166_v40 = vadd.f32 %v2165_v52, %v2164_v27  ;;  %v1331_v41 = vadd.f32 %v2163_v50, %v2832_v37 }
 0x196   : > { %v1334_v11 = vadd.f32 %v2166_v40, %v2832_v37 }
 0x198   : > { %v2834_v28 = vpop.f32.mrb[4].mxu1 }
 0x199   : > { %v1371_v30 = vpop.f32.mrb[5].mxu1 }
 0x19a   : > { %v1372_v34 = vadd.f32 %v1371_v30, %v1307_v29  ;;  %v2837_v39 = vpop.f32.mrb[6].mxu1 }
 0x19b   : > { %v1374_v44 = vpop.f32.mrb[7].mxu1 }
 0x19c   : > { %v1375_v51 = vadd.f32 %v1374_v44, %v1310_v43  ;;  %v1402_v62 = vmax.f32 %v1372_v34, 0.0 }
 0x19e   : > { %v1403_v48 = vmax.f32 %v1375_v51, 0.0 }
 0x1a0   : > { %v1410_v7 = vmax.f32 %v1402_v62, %v1403_v48  ;;  %v2183_v58 = vpop.f32.mrb[8].mxu1 }
 0x1a1   : > { %v1396_v9 = vadd.f32 %v2183_v58, %v1331_v41  ;;  %v2843_v10 = vpop.f32.mrb[9].mxu1 }
 0x1a2   : > { %v1418_v12 = vcombine.high %v1410_v7, %v1410_v7  ;;  %v1425_v14 = vrot.slane %v1410_v7, %v2840_v6  ;;  %v2184_v15 = vpop.f32.mrb[10].mxu1 }
 0x1a3   : > { %v1399_v16 = vadd.f32 %v2184_v15, %v1334_v11  ;;  %v2847_v46 = vpop.f32.mrb[11].mxu1  ;;  %v1408_v36 = vmax.f32 %v1396_v9, 0.0 }
 0x1a4   : > { %v1432_v45 = vrot.slane %v1418_v12, %v2840_v6  ;;  %v1433_v17 = vcombine.high %v1425_v14, %v1425_v14  ;;  %v2108_v42 = vrot.slane %v1425_v14, 9 }
 0x1a5   : > { %v1409_v55 = vmax.f32 %v1399_v16, 0.0 }
 0x1a6   : > { %v1434_v18 = vcombine.high %v1432_v45, %v1432_v45  ;;  %v2109_v35 = vrot.slane %v1433_v17, 9  ;;  %v2110_v3 = vrot.slane %v1432_v45, 9  ;;  %v1550_v13 = vmax.f32 %v1425_v14, %v2108_v42 }
 0x1a7   : > { %v1413_v19 = vmax.f32 %v1408_v36, %v1409_v55 }
 0x1a8   : > { %v2111_v54 = vrot.slane %v1434_v18, 9  ;;  %v1551_v47 = vmax.f32 %v1433_v17, %v2109_v35  ;;  %v1552_v56 = vmax.f32 %v1432_v45, %v2110_v3  ;;  %v1566_v1 = vpack.c.bf16 %v1550_v13, %v1550_v13 }
 0x1a9   : > { %v2149_v20 = vpop.f32.mrb[4].mxu0  ;;  %v1469_v21 = vcombine.high %v1413_v19, %v1413_v19  ;;  %v1476_v0 = vrot.slane %v1413_v19, %v2840_v6 }
 0x1aa   : > { %v2150_v24 = vpop.f32.mrb[5].mxu0  ;;  %v1553_v38 = vmax.f32 %v1434_v18, %v2111_v54  ;;  %v1567_v8 = vpack.c.bf16 %v1551_v47, %v1551_v47  ;;  %v1568_v23 = vpack.c.bf16 %v1552_v56, %v1552_v56  ;;  %v1604_v2 = vrot.slane %v1566_v1, %v2840_v6 }
 0x1ab   : > { %v2152_v49 = vpop.f32.mrb[6].mxu0  ;;  %v1483_v22 = vrot.slane %v1469_v21, %v2840_v6  ;;  %v1484_v61 = vcombine.high %v1476_v0, %v1476_v0  ;;  %v2120_v25 = vrot.slane %v1476_v0, 9  ;;  %v2151_v60 = vadd.f32 %v2150_v24, %v2149_v20 }
 0x1ac   : > { %v2153_v4 = vpop.f32.mrb[7].mxu0  ;;  %v1569_v5 = vpack.c.bf16 %v1553_v38, %v1553_v38  ;;  %v1611_v31 = vrot.slane %v1567_v8, %v2840_v6  ;;  %v1618_v32 = vrot.slane %v1568_v23, %v2840_v6  ;;  %v1716_v26 = vrot.slane %v1604_v2, %v2840_v6 }
 0x1ad   : > { %v1485_v50 = vcombine.high %v1483_v22, %v1483_v22  ;;  %v2121_v27 = vrot.slane %v1484_v61, 9  ;;  %v2122_v52 = vrot.slane %v1483_v22, 9  ;;  %v1562_v40 = vmax.f32 %v1476_v0, %v2120_v25 }
 0x1ae   : > { %v1625_v33 = vrot.slane %v1569_v5, %v2840_v6  ;;  %v1723_v53 = vrot.slane %v1611_v31, %v2840_v6  ;;  %v1730_v59 = vrot.slane %v1618_v32, %v2840_v6  ;;  %v1822_v29 = vunpack.c.l.b16 %v1716_v26 }
 0x1af   : > { %v2123_v30 = vrot.slane %v1485_v50, 9  ;;  %v1563_v34 = vmax.f32 %v1484_v61, %v2121_v27  ;;  %v1564_v43 = vmax.f32 %v1483_v22, %v2122_v52  ;;  %v1578_v57 = vpack.c.bf16 %v1562_v40, %v1562_v40 }
 0x1b0   : > { %v1737_v63 = vrot.slane %v1625_v33, %v2840_v6  ;;  %v1823_v44 = vunpack.c.l.b16 %v1723_v53  ;;  %v1824_v51 = vunpack.c.l.b16 %v1730_v59  ;;  %v1315_v62 = vadd.f32 %v2151_v60, %v2832_v37 }
 0x1b1   : > { %v1565_v48 = vmax.f32 %v1485_v50, %v2123_v30  ;;  %v1579_v41 = vpack.c.bf16 %v1563_v34, %v1563_v34  ;;  %v1580_v7 = vpack.c.bf16 %v1564_v43, %v1564_v43  ;;  %v1688_v58 = vrot.slane %v1578_v57, %v2840_v6 }
 0x1b2   : > { %v1825_v9 = vunpack.c.l.b16 %v1737_v63  ;;  %v1838_v11 = vrot.slane %v1823_v44, 7  ;;  %v1841_v12 = vrot.slane %v1824_v51, 6  ;;  %v1380_v14 = vadd.f32 %v2834_v28, %v1315_v62 }
 0x1b3   : > { %v1581_v15 = vpack.c.bf16 %v1565_v48, %v1565_v48  ;;  %v1695_v16 = vrot.slane %v1579_v41, %v2840_v6  ;;  %v1702_v45 = vrot.slane %v1580_v7, %v2840_v6  ;;  %v1800_v36 = vrot.slane %v1688_v58, %v2840_v6 }
 0x1b4   : > { %v1840_v17 = vsel %vm1839_vm11, %v1838_v11, %v1822_v29  ;;  %v1844_v42 = vrot.slane %v1825_v9, 5  ;;  %v2154_v55 = vadd.f32 %v2153_v4, %v2152_v49  ;;  %v1404_v23 = vmax.f32 %v1380_v14, 0.0 }
 0x1b5   : > { %v1843_v18 = vsel %vm1842_vm12, %v1841_v12, %v1840_v17  ;;  %v1709_v35 = vrot.slane %v1581_v15, %v2840_v6  ;;  %v1807_v3 = vrot.slane %v1695_v16, %v2840_v6  ;;  %v1814_v28 = vrot.slane %v1702_v45, %v2840_v6 }
 0x1b6   : > { %v1846_v13 = vsel %vm1845_vm13, %v1844_v42, %v1843_v18  ;;  %v1318_v19 = vadd.f32 %v2154_v55, %v2832_v37  ;;  %v1834_v20 = vunpack.c.l.b16 %v1800_v36 }
 0x1b7   : > { %v1865_v54 = vpack.c.b16 %v1846_v13, %v1846_v13  ;;  %v1821_v47 = vrot.slane %v1709_v35, %v2840_v6  ;;  %v1835_v56 = vunpack.c.l.b16 %v1807_v3  ;;  %v1836_v1 = vunpack.c.l.b16 %v1814_v28 }
 0x1b8   : > { %v1383_v21 = vadd.f32 %v2837_v39, %v1318_v19 }
 0x1b9   : > { %v1875_v0 = vrot.slane %v1865_v54, %v2840_v6  ;;  %v1837_v24 = vunpack.c.l.b16 %v1821_v47  ;;  %v1859_v38 = vrot.slane %v1835_v56, 7  ;;  %v1861_v8 = vrot.slane %v1836_v1, 6 }
 0x1ba   : > { %v1405_v2 = vmax.f32 %v1383_v21, 0.0 }
 0x1bb   : > { %1902 = vst.msk [vmem:[%s2878_s13] sm:$0x3] %vm1901_vm14, %v1875_v0  ;;  %v1860_v49 = vsel %vm1839_vm11, %v1859_v38, %v1834_v20  ;;  %v1863_v22 = vrot.slane %v1837_v24, 5 }
 0x1bc   : > { %v1862_v61 = vsel %vm1842_vm12, %v1861_v8, %v1860_v49  ;;  %v1411_v25 = vmax.f32 %v1404_v23, %v1405_v2 }
 0x1bd   : > { %v1864_v60 = vsel %vm1845_vm13, %v1863_v22, %v1862_v61 }
 0x1be   : > { %v1868_v4 = vpack.c.b16 %v1864_v60, %v1864_v60  ;;  %v1435_v39 = vcombine.high %v1411_v25, %v1411_v25  ;;  %v1442_v5 = vrot.slane %v1411_v25, %v2840_v6 }
 0x1c0   : > { %v1896_v31 = vrot.slane %v1868_v4, %v2840_v6  ;;  %v1449_v32 = vrot.slane %v1435_v39, %v2840_v6  ;;  %v1450_v26 = vcombine.high %v1442_v5, %v1442_v5  ;;  %v2112_v50 = vrot.slane %v1442_v5, 9  ;;  %v2155_v27 = vpop.f32.mrb[8].mxu0 }
 0x1c1   : > { %v2156_v52 = vpop.f32.mrb[9].mxu0 }
 0x1c2   : > { %1905 = vst.msk [vmem:[%s2878_s13 + $0x6] sm:$0x3] %vm1901_vm14, %v1896_v31  ;;  %v1451_v40 = vcombine.high %v1449_v32, %v1449_v32  ;;  %v2113_v33 = vrot.slane %v1450_v26, 9  ;;  %v2114_v53 = vrot.slane %v1449_v32, 9  ;;  %v1554_v59 = vmax.f32 %v1442_v5, %v2112_v50  ;;  %v2158_v29 = vpop.f32.mrb[10].mxu0 }
 0x1c3   : > { %v2157_v30 = vadd.f32 %v2156_v52, %v2155_v27  ;;  %v2159_v34 = vpop.f32.mrb[11].mxu0 }
 0x1c4   : > { %v2115_v43 = vrot.slane %v1451_v40, 9  ;;  %v1555_v57 = vmax.f32 %v1450_v26, %v2113_v33  ;;  %v1556_v63 = vmax.f32 %v1449_v32, %v2114_v53  ;;  %v1570_v44 = vpack.c.bf16 %v1554_v59, %v1554_v59 }
 0x1c5   : > { %v1323_v51 = vadd.f32 %v2157_v30, %v2832_v37  ;;  %v2160_v62 = vadd.f32 %v2159_v34, %v2158_v29 }
 0x1c6   : > { %v1557_v48 = vmax.f32 %v1451_v40, %v2115_v43  ;;  %v1571_v41 = vpack.c.bf16 %v1555_v57, %v1555_v57  ;;  %v1572_v7 = vpack.c.bf16 %v1556_v63, %v1556_v63  ;;  %v1632_v58 = vrot.slane %v1570_v44, %v2840_v6 }
 0x1c7   : > { %v1388_v9 = vadd.f32 %v2843_v10, %v1323_v51  ;;  %v1326_v11 = vadd.f32 %v2160_v62, %v2832_v37 }
 0x1c8   : > { %v1573_v12 = vpack.c.bf16 %v1557_v48, %v1557_v48  ;;  %v1639_v14 = vrot.slane %v1571_v41, %v2840_v6  ;;  %v1646_v15 = vrot.slane %v1572_v7, %v2840_v6  ;;  %v1744_v17 = vrot.slane %v1632_v58, %v2840_v6 }
 0x1c9   : > { %v1391_v16 = vadd.f32 %v2847_v46, %v1326_v11  ;;  %v1406_v55 = vmax.f32 %v1388_v9, 0.0 }
 0x1ca   : > { %v1653_v45 = vrot.slane %v1573_v12, %v2840_v6  ;;  %v1751_v42 = vrot.slane %v1639_v14, %v2840_v6  ;;  %v1758_v36 = vrot.slane %v1646_v15, %v2840_v6  ;;  %v1826_v28 = vunpack.c.l.b16 %v1744_v17 }
 0x1cb   : > { %v1407_v18 = vmax.f32 %v1391_v16, 0.0 }
 0x1cc   : > { %v1765_v10 = vrot.slane %v1653_v45, %v2840_v6  ;;  %v1827_v37 = vunpack.c.l.b16 %v1751_v42  ;;  %v1828_v35 = vunpack.c.l.b16 %v1758_v36 }
 0x1cd   : > { %v1412_v3 = vmax.f32 %v1406_v55, %v1407_v18 }
 0x1ce   : > { %v1829_v13 = vunpack.c.l.b16 %v1765_v10  ;;  %v1847_v19 = vrot.slane %v1827_v37, 7  ;;  %v1849_v54 = vrot.slane %v1828_v35, 6 }
 0x1cf   : > { %v1452_v46 = vcombine.high %v1412_v3, %v1412_v3  ;;  %v1459_v47 = vrot.slane %v1412_v3, %v2840_v6 }
 0x1d0   : > { %v1848_v56 = vsel %vm1839_vm11, %v1847_v19, %v1826_v28  ;;  %v1851_v1 = vrot.slane %v1829_v13, 5 }
 0x1d1   : > { %v1850_v20 = vsel %vm1842_vm12, %v1849_v54, %v1848_v56  ;;  %v1466_v21 = vrot.slane %v1452_v46, %v2840_v6  ;;  %v1467_v0 = vcombine.high %v1459_v47, %v1459_v47  ;;  %v2116_v24 = vrot.slane %v1459_v47, 9 }
 0x1d2   : > { %v1852_v38 = vsel %vm1845_vm13, %v1851_v1, %v1850_v20 }
 0x1d3   : > { %v1866_v8 = vpack.c.b16 %v1852_v38, %v1852_v38  ;;  %v1468_v23 = vcombine.high %v1466_v21, %v1466_v21  ;;  %v2117_v2 = vrot.slane %v1467_v0, 9  ;;  %v2118_v49 = vrot.slane %v1466_v21, 9 }
 0x1d4   : > { %v1558_v22 = vmax.f32 %v1459_v47, %v2116_v24 }
 0x1d5   : > { %v1882_v61 = vrot.slane %v1866_v8, %v2840_v6  ;;  %v2119_v25 = vrot.slane %v1468_v23, 9  ;;  %v1559_v60 = vmax.f32 %v1467_v0, %v2117_v2  ;;  %v1560_v4 = vmax.f32 %v1466_v21, %v2118_v49 }
 0x1d6   : > { %v1574_v39 = vpack.c.bf16 %v1558_v22, %v1558_v22 }
 0x1d7   : > { %1903 = vst.msk [vmem:[%s2878_s13 + $0x2] sm:$0x3] %vm1901_vm14, %v1882_v61  ;;  %v1561_v5 = vmax.f32 %v1468_v23, %v2119_v25  ;;  %v1575_v31 = vpack.c.bf16 %v1559_v60, %v1559_v60  ;;  %v1576_v32 = vpack.c.bf16 %v1560_v4, %v1560_v4 }
 0x1d8   : > { %v1660_v26 = vrot.slane %v1574_v39, %v2840_v6 }
 0x1d9   : > { %v1577_v50 = vpack.c.bf16 %v1561_v5, %v1561_v5  ;;  %v1667_v27 = vrot.slane %v1575_v31, %v2840_v6  ;;  %v1674_v52 = vrot.slane %v1576_v32, %v2840_v6 }
 0x1da   : > { %v1772_v33 = vrot.slane %v1660_v26, %v2840_v6 }
 0x1db   : > { %v1681_v40 = vrot.slane %v1577_v50, %v2840_v6  ;;  %v1779_v53 = vrot.slane %v1667_v27, %v2840_v6  ;;  %v1786_v59 = vrot.slane %v1674_v52, %v2840_v6 }
 0x1dc   : > { %v1830_v43 = vunpack.c.l.b16 %v1772_v33 }
 0x1dd   : > { %v1793_v29 = vrot.slane %v1681_v40, %v2840_v6  ;;  %v1831_v30 = vunpack.c.l.b16 %v1779_v53  ;;  %v1832_v34 = vunpack.c.l.b16 %v1786_v59 }
 0x1df   : > { %v1833_v57 = vunpack.c.l.b16 %v1793_v29  ;;  %v1853_v63 = vrot.slane %v1831_v30, 7  ;;  %v1855_v44 = vrot.slane %v1832_v34, 6 }
 0x1e1   : > { %v1854_v51 = vsel %vm1839_vm11, %v1853_v63, %v1830_v43  ;;  %v1857_v62 = vrot.slane %v1833_v57, 5 }
 0x1e2   : > { %v1856_v48 = vsel %vm1842_vm12, %v1855_v44, %v1854_v51 }
 0x1e3   : > { %v1858_v41 = vsel %vm1845_vm13, %v1857_v62, %v1856_v48 }
 0x1e4   : > { %v1867_v7 = vpack.c.b16 %v1858_v41, %v1858_v41 }
 0x1e6   : > { %v1889_v58 = vrot.slane %v1867_v7, %v2840_v6 }
 0x1e8   : > { %1904 = vst.msk [vmem:[%s2878_s13 + $0x4] sm:$0x3] %vm1901_vm14, %v1889_v58 }
 0x1e9 PF: > { %s13_s12 = sadd.s32 1, %s2253_s12  }
 0x1ea   : > { %p10_p4 = scmp.ge.s32.totalorder %s13_s12, 4  }
 0x1ec   :  { %12 = sbr.rel (!%p10_p4) target bundleno = 1 (0x1), region = 64 }

// kernel: tomato_forward.4
= control target key start
LH: loop header
LB: loop body
LE: loop exit
PB: predicated region body
PF: predicated region fallthrough
CT: control target
= control target key end

     0   :  { %s5346_s12 = smov 0   ;;  %s6185_s0 = inlined_call_operand.vmem [shape: bf16[2,18,18,3], index: 0, kind: input, shape index: {}]   ;;  %s6186_s1 = inlined_call_operand.vmem [shape: bf16[27,32], index: 1, kind: input, shape index: {}]   ;;  %s6187_s2 = inlined_call_operand.vmem [shape: f32[1,32], index: 2, kind: input, shape index: {}]   ;;  %s6188_s3 = inlined_call_operand.vmem [shape: bf16[2,8,8,32], index: 3, kind: output, shape index: {}]  }
   0x1 LB: > { %s4271_s13 = sadd.s32 4294967295, %s5314_s12   ;;  %p4275_p0 = scmp.ge.s32.totalorder %s5314_s12, 1  ;;  %s5314_s12 = sphi %s5346_s12, %s13_s12  }
   0x2   : > { %p137_p1 = scmp.lt.s32.totalorder %s5314_s12, 3 }
   0x4   : > { %p138_p2 = pnand %p4275_p0, %p137_p1 }
   0x5   : > { %p161_p3 = scmp.lt.s32.totalorder (!%p138_p2), %s4271_s13, 1  ;;  %vm927_vm0 = vcmask (!%p138_p2), 1046528   ;;  %s5316_s18 = smov (!%p138_p2), 9   ;;  %vm493_vm1 = vsmask.f32 (!%p138_p2), 7424  ;;  %vm300_vm2 = vcmask (!%p138_p2), 23552  }
   0x6   : > { %141 = sbr.rel (%p138_p2) target bundleno = 648 (0x288), region = 32  ;;  %s5317_s19 = smov (!%p138_p2), 6   ;;  %vm734_vm3 = vcmask (!%p138_p2), 48152   ;;  %vm1024_vm4 = vcmask (!%p138_p2), 72752   ;;  %vm1202_vm5 = vcmask (!%p138_p2), 97352   ;;  %vm1635_vm6 = vcmask (!%p138_p2), 121952  }
   0x7   : > { %s5318_s20 = smov (!%p138_p2), 3   ;;  %s5319_s21 = smov (!%p138_p2), 12   ;;  %vm1924_vm7 = vcmask (!%p138_p2), 146552   ;;  %vm2102_vm8 = vcmask (!%p138_p2), 171152   ;;  %vm2535_vm9 = vcmask (!%p138_p2), 195752   ;;  %vm2824_vm10 = vcmask (!%p138_p2), 220352  }
   0x8   : > { %s5320_s22 = smov (!%p138_p2), 15   ;;  %s5321_s23 = smov (!%p138_p2), 18   ;;  %vm2879_vm11 = vcmask (!%p138_p2), 220160   ;;  %vm2928_vm12 = vcmask (!%p138_p2), 1044480   ;;  %vm2929_vm13 = vcmask (!%p138_p2), 1045504   ;;  %vm4073_vm14 = vcmask (!%p138_p2), 1041409  }
   0x9   : > { %s5322_s24 = smov (!%p138_p2), 21   ;;  %s5323_s25 = smov (!%p138_p2), 24   ;;  %vm4076_vm15 = vcmask (!%p138_p2), 1042434  }
   0xd   : > { %s6190_s13 = smov (!%p161_p3, %s4271_s13), 1 }
   0xe   : > { %s5047_s14 = smul.u32 216, %s6190_s13  ;;  %s4924_s5 = sshll.u32 %s6190_s13, 5 }
   0xf   : > { %s6042_s8 = scalar_lea.vmem %s6188_s3, %s4924_s5 }
  0x10   : > { %s5360_s17 = scalar_lea.vmem %s6185_s0, %s5047_s14 }
  0x11   : > { %v5066_v0 = vld [vmem:[%s5360_s17 + $0x6c] sm:$0xff]   ;;  %v5068_v2 = vld [vmem:[%s5360_s17 + $0x60] sm:$0xfe]   ;;  %v5069_v3 = vld [vmem:[%s5360_s17 + $0x68] ss:$0 sps:$4 sm:$0x11]  }
  0x12   : > { %v5067_v1 = vld [vmem:[%s5360_s17 + $0xc] sm:$0xff]   ;;  %1170 = vrot.lane.b32.xlu1 %v5066_v0, %s5316_s18  ;;  %v952_v5 = vrot.slane %v5068_v2, 1  ;;  %v953_v6 = vrot.slane %v5069_v3, 1  ;;  %v5070_v7 = vld [vmem:[%s5360_s17] sm:$0xfe]   ;;  %v5084_v58 = vld [vmem:[%s5360_s17 + $0x78] sm:$0xff]  }
  0x13   : > { %1154 = vrot.lane.b32.xlu0 %v5067_v1, %s5316_s18  ;;  %v5076_v4 = vld [vmem:[%s5360_s17 + $0xc] sm:$0xff]   ;;  %v5071_v8 = vld [vmem:[%s5360_s17 + $0x8] ss:$0 sps:$4 sm:$0x11]   ;;  %v928_v11 = vrot.slane %v5070_v7, 1  ;;  %v5078_v26 = vld [vmem:[%s5360_s17] sm:$0xff]  }
  0x14   : > { %v507_v9 = vshrl.u32 %v5076_v4, 16  ;;  %v954_v10 = vsel %vm927_vm0, %v952_v5, %v953_v6  ;;  %v5072_v12 = vld [vmem:[%s5360_s17 + $0x6c] sm:$0xfe]   ;;  %v509_v13 = vshll.u32 %v5076_v4, 16  ;;  %v929_v14 = vrot.slane %v5071_v8, 1  ;;  %v5082_v38 = vld [vmem:[%s5360_s17 + $0x60] sm:$0xff]  }
  0x15   : > { %v5073_v15 = vld [vmem:[%s5360_s17 + $0x74] ss:$0 sps:$4 sm:$0x11]   ;;  %v955_v16 = vrot.slane %v5072_v12, 1  ;;  %v5074_v20 = vld [vmem:[%s5360_s17 + $0xc] sm:$0xfe]  }
  0x16   : > { %992 = vrot.lane.b32.xlu1 %v954_v10, %s5317_s19  ;;  %v511_v17 = vrot.slane %v509_v13, 1  ;;  %v930_v18 = vsel %vm927_vm0, %v928_v11, %v929_v14  ;;  %v956_v19 = vrot.slane %v5073_v15, 1  ;;  %v5075_v21 = vld [vmem:[%s5360_s17 + $0x14] ss:$0 sps:$4 sm:$0x11]   ;;  %v931_v23 = vrot.slane %v5074_v20, 1 }
  0x17   : > { %976 = vrot.lane.b32.xlu0 %v930_v18, %s5317_s19  ;;  %v932_v24 = vrot.slane %v5075_v21, 1  ;;  %v5077_v25 = vld [vmem:[%s5360_s17 + $0x14] ss:$0 sps:$4 sm:$0x11]   ;;  %v495_v31 = vshrl.u32 %v5078_v26, 16  ;;  %v497_v32 = vshll.u32 %v5078_v26, 16 }
  0x18   : > { %v957_v22 = vsel %vm927_vm0, %v955_v16, %v956_v19  ;;  %v512_v27 = vor.u32 %v511_v17, %v507_v9  ;;  %v514_v29 = vshll.u32 %v5077_v25, 16  ;;  %v5079_v30 = vld [vmem:[%s5360_s17 + $0x8] ss:$0 sps:$4 sm:$0x11]   ;;  %v5080_v36 = vld [vmem:[%s5360_s17 + $0x6c] sm:$0xff]   ;;  %v591_v47 = vshrl.u32 %v5082_v38, 16 }
  0x19   : > { %v933_v28 = vsel %vm927_vm0, %v931_v23, %v932_v24  ;;  %v499_v34 = vrot.slane %v497_v32, 1  ;;  %v502_v35 = vshll.u32 %v5079_v30, 16  ;;  %v5081_v37 = vld [vmem:[%s5360_s17 + $0x74] ss:$0 sps:$4 sm:$0x11]   ;;  %v603_v42 = vshrl.u32 %v5080_v36, 16 }
  0x1a   : > { %994 = vrot.lane.b32.xlu1 %v957_v22, %s5317_s19  ;;  %v516_v33 = vrot.slane %v514_v29, 1  ;;  %v605_v43 = vshll.u32 %v5080_v36, 16  ;;  %v610_v44 = vshll.u32 %v5081_v37, 16  ;;  %v5083_v45 = vld [vmem:[%s5360_s17 + $0x68] ss:$0 sps:$4 sm:$0x11]  }
  0x1b   : > { %978 = vrot.lane.b32.xlu0 %v933_v28, %s5317_s19  ;;  %v500_v40 = vor.u32 %v499_v34, %v495_v31  ;;  %v504_v41 = vrot.slane %v502_v35, 1  ;;  %v593_v48 = vshll.u32 %v5082_v38, 16  ;;  %v598_v51 = vshll.u32 %v5083_v45, 16  ;;  %v5086_v53 = vld [vmem:[%s5360_s17 + $0x6c] sm:$0xff]   ;;  %v5085_v62 = vld [vmem:[%s5360_s17 + $0x18] sm:$0xff]  }
  0x1c   : > { %v517_v39 = vsel %vm493_vm1, %v512_v27, %v516_v33  ;;  %v607_v49 = vrot.slane %v605_v43, 1  ;;  %v612_v50 = vrot.slane %v610_v44, 1  ;;  %v5087_v56 = vld [vmem:[%s5360_s17 + $0x74] ss:$0 sps:$4 sm:$0x11]   ;;  %v1492_v59 = vshrl.u32 %v5086_v53, 16 }
  0x1d   : > { %v505_v46 = vsel %vm493_vm1, %v500_v40, %v504_v41  ;;  %v595_v52 = vrot.slane %v593_v48, 1  ;;  %v600_v55 = vrot.slane %v598_v51, 1  ;;  %v1494_v60 = vshll.u32 %v5086_v53, 16  ;;  %v5088_v0 = vld [vmem:[%s5360_s17 + $0xc] sm:$0xff]   ;;  %v5090_v7 = vld [vmem:[%s5360_s17 + $0x78] sm:$0xff]  }
  0x1e   : > { %688 = vrot.lane.b32.xlu1 %v517_v39, %s5318_s20  ;;  %v608_v54 = vor.u32 %v607_v49, %v603_v42  ;;  %v1499_v63 = vshll.u32 %v5087_v56, 16  ;;  %v5089_v3 = vld [vmem:[%s5360_s17 + $0x14] ss:$0 sps:$4 sm:$0x11]   ;;  %v1396_v5 = vshrl.u32 %v5088_v0, 16  ;;  %v1398_v6 = vshll.u32 %v5088_v0, 16 }
  0x1f   : > { %686 = vrot.lane.b32.xlu0 %v505_v46, %s5318_s20  ;;  %v596_v57 = vor.u32 %v595_v52, %v591_v47  ;;  %v1496_v2 = vrot.slane %v1494_v60, 1  ;;  %v1403_v9 = vshll.u32 %v5089_v3, 16  ;;  %v5091_v10 = vld [vmem:[%s5360_s17 + $0x80] ss:$0 sps:$4 sm:$0x11]   ;;  %v1504_v12 = vshrl.u32 %v5090_v7, 16 }
  0x20   : > { %v613_v61 = vsel %vm493_vm1, %v608_v54, %v612_v50  ;;  %v1501_v4 = vrot.slane %v1499_v63, 1  ;;  %v1400_v11 = vrot.slane %v1398_v6, 1  ;;  %v1506_v13 = vshll.u32 %v5090_v7, 16  ;;  %v5092_v14 = vld [vmem:[%s5360_s17 + $0x18] sm:$0xff]   ;;  %v5094_v28 = vld [vmem:[%s5360_s17 + $0x6c] sm:$0xfe]  }
  0x21   : > { %v601_v1 = vsel %vm493_vm1, %v596_v57, %v600_v55  ;;  %v1497_v8 = vor.u32 %v1496_v2, %v1492_v59  ;;  %v1405_v16 = vrot.slane %v1403_v9, 1  ;;  %v1511_v17 = vshll.u32 %v5091_v10, 16  ;;  %v5093_v20 = vld [vmem:[%s5360_s17 + $0x20] ss:$0 sps:$4 sm:$0x11]   ;;  %v5106_v49 = vld [vmem:[%s5360_s17 + $0x78] sm:$0xff]  }
  0x22   : > { %704 = vrot.lane.b32.xlu1 %v613_v61, %s5318_s20  ;;  %v1401_v18 = vor.u32 %v1400_v11, %v1396_v5  ;;  %v1508_v19 = vrot.slane %v1506_v13, 1  ;;  %v1408_v21 = vshrl.u32 %v5092_v14, 16  ;;  %v1410_v22 = vshll.u32 %v5092_v14, 16  ;;  %v5095_v29 = vld [vmem:[%s5360_s17 + $0x74] ss:$0 sps:$4 sm:$0x11]  }
  0x23   : > { %702 = vrot.lane.b32.xlu0 %v601_v1, %s5318_s20  ;;  %v1502_v15 = vsel %vm493_vm1, %v1497_v8, %v1501_v4  ;;  %v1513_v23 = vrot.slane %v1511_v17, 1  ;;  %v1415_v27 = vshll.u32 %v5093_v20, 16  ;;  %v1852_v33 = vrot.slane %v5094_v28, 1  ;;  %v5096_v34 = vld [vmem:[%s5360_s17 + $0xc] sm:$0xfe]   ;;  %v5108_v52 = vld [vmem:[%s5360_s17 + $0x18] sm:$0xff]  }
  0x24   : > { %v1406_v24 = vsel %vm493_vm1, %v1401_v18, %v1405_v16  ;;  %v1509_v25 = vor.u32 %v1508_v19, %v1504_v12  ;;  %v1412_v26 = vrot.slane %v1410_v22, 1  ;;  %v1853_v35 = vrot.slane %v5095_v29, 1  ;;  %v5097_v36 = vld [vmem:[%s5360_s17 + $0x14] ss:$0 sps:$4 sm:$0x11]   ;;  %v5102_v53 = vld [vmem:[%s5360_s17 + $0x78] sm:$0xff]  }
  0x25   : > { %v1417_v32 = vrot.slane %v1415_v27, 1  ;;  %v1828_v38 = vrot.slane %v5096_v34, 1  ;;  %v1829_v39 = vrot.slane %v5097_v36, 1  ;;  %v5098_v40 = vld [vmem:[%s5360_s17 + $0x78] sm:$0xfe]   ;;  %v2392_v56 = vshrl.u32 %v5106_v49, 16 }
  0x26   : > { %1172 = vrot.lane.b32.xlu1 %v5084_v58, %s5316_s18  ;;  %v1514_v30 = vsel %vm493_vm1, %v1509_v25, %v1513_v23  ;;  %v1413_v31 = vor.u32 %v1412_v26, %v1408_v21  ;;  %v5099_v41 = vld [vmem:[%s5360_s17 + $0x80] ss:$0 sps:$4 sm:$0x11]   ;;  %v1854_v42 = vsel %vm927_vm0, %v1852_v33, %v1853_v35  ;;  %v1855_v44 = vrot.slane %v5098_v40, 1  ;;  %v5100_v46 = vld [vmem:[%s5360_s17 + $0x18] sm:$0xfe]  }
  0x27   : > { %1156 = vrot.lane.b32.xlu0 %v5085_v62, %s5316_s18  ;;  %v1830_v43 = vsel %vm927_vm0, %v1828_v38, %v1829_v39  ;;  %v1856_v45 = vrot.slane %v5099_v41, 1  ;;  %v5101_v47 = vld [vmem:[%s5360_s17 + $0x20] ss:$0 sps:$4 sm:$0x11]   ;;  %v1831_v48 = vrot.slane %v5100_v46, 1  ;;  %v5103_v55 = vld [vmem:[%s5360_s17 + $0x18] sm:$0xff]  }
  0x28   : > { %v1418_v37 = vsel %vm493_vm1, %v1413_v31, %v1417_v32  ;;  %v1832_v51 = vrot.slane %v5101_v47, 1  ;;  %v2394_v57 = vshll.u32 %v5106_v49, 16  ;;  %v5107_v58 = vld [vmem:[%s5360_s17 + $0x80] ss:$0 sps:$4 sm:$0x11]   ;;  %v2296_v59 = vshrl.u32 %v5108_v52, 16 }
  0x29   : > { %v1857_v50 = vsel %vm927_vm0, %v1855_v44, %v1856_v45  ;;  %v2298_v61 = vshll.u32 %v5108_v52, 16  ;;  %v5104_v62 = vld [vmem:[%s5360_s17 + $0x84] sm:$0xff]   ;;  %v2399_v63 = vshll.u32 %v5107_v58, 16  ;;  %v5109_v0 = vld [vmem:[%s5360_s17 + $0x20] ss:$0 sps:$4 sm:$0x11]  }
  0x2a   : > { %1603 = vrot.lane.b32.xlu1 %v1502_v15, %s5319_s21  ;;  %v1833_v54 = vsel %vm927_vm0, %v1831_v48, %v1832_v51  ;;  %v2396_v60 = vrot.slane %v2394_v57, 1  ;;  %v5105_v1 = vld [vmem:[%s5360_s17 + $0x24] sm:$0xff]   ;;  %v2303_v5 = vshll.u32 %v5109_v0, 16  ;;  %v5111_v6 = vld [vmem:[%s5360_s17 + $0x8c] ss:$0 sps:$4 sm:$0x11]  }
  0x2b   : > { %1587 = vrot.lane.b32.xlu0 %v1406_v24, %s5319_s21  ;;  %v2300_v2 = vrot.slane %v2298_v61, 1  ;;  %v5110_v3 = vld [vmem:[%s5360_s17 + $0x84] sm:$0xff]   ;;  %v2401_v4 = vrot.slane %v2399_v63, 1  ;;  %v2411_v13 = vshll.u32 %v5111_v6, 16  ;;  %v5118_v14 = vld [vmem:[%s5360_s17 + $0x78] sm:$0xff]  }
  0x2c   : > { %v5112_v7 = vld [vmem:[%s5360_s17 + $0x24] sm:$0xff]   ;;  %v2397_v8 = vor.u32 %v2396_v60, %v2392_v56  ;;  %v2404_v9 = vshrl.u32 %v5110_v3, 16  ;;  %v2406_v10 = vshll.u32 %v5110_v3, 16  ;;  %v2305_v12 = vrot.slane %v2303_v5, 1  ;;  %v5114_v25 = vld [vmem:[%s5360_s17 + $0x78] sm:$0xfe]  }
  0x2d   : > { %v2301_v11 = vor.u32 %v2300_v2, %v2296_v59  ;;  %v5113_v16 = vld [vmem:[%s5360_s17 + $0x2c] ss:$0 sps:$4 sm:$0x11]   ;;  %v2308_v17 = vshrl.u32 %v5112_v7, 16  ;;  %v2310_v18 = vshll.u32 %v5112_v7, 16  ;;  %v2413_v19 = vrot.slane %v2411_v13, 1 }
  0x2e   : > { %1605 = vrot.lane.b32.xlu1 %v1514_v30, %s5319_s21  ;;  %v2408_v15 = vrot.slane %v2406_v10, 1  ;;  %v615_v20 = vshrl.u32 %v5118_v14, 16  ;;  %v2402_v21 = vsel %vm493_vm1, %v2397_v8, %v2401_v4  ;;  %v2315_v24 = vshll.u32 %v5113_v16, 16  ;;  %v5115_v27 = vld [vmem:[%s5360_s17 + $0x80] ss:$0 sps:$4 sm:$0x11]  }
  0x2f   : > { %1589 = vrot.lane.b32.xlu0 %v1418_v37, %s5319_s21  ;;  %v2312_v23 = vrot.slane %v2310_v18, 1  ;;  %v2306_v26 = vsel %vm493_vm1, %v2301_v11, %v2305_v12  ;;  %v617_v28 = vshll.u32 %v5118_v14, 16  ;;  %v2752_v31 = vrot.slane %v5114_v25, 1  ;;  %v5120_v32 = vld [vmem:[%s5360_s17 + $0x18] sm:$0xff]   ;;  %v5122_v51 = vld [vmem:[%s5360_s17 + $0x84] sm:$0xfe]  }
  0x30   : > { %v2409_v22 = vor.u32 %v2408_v15, %v2404_v9  ;;  %v2317_v30 = vrot.slane %v2315_v24, 1  ;;  %v2753_v33 = vrot.slane %v5115_v27, 1  ;;  %v5116_v34 = vld [vmem:[%s5360_s17 + $0x18] sm:$0xfe]   ;;  %v519_v46 = vshrl.u32 %v5120_v32, 16  ;;  %v5126_v52 = vld [vmem:[%s5360_s17 + $0x84] sm:$0xff]  }
  0x31   : > { %v2313_v29 = vor.u32 %v2312_v23, %v2308_v17  ;;  %v5117_v35 = vld [vmem:[%s5360_s17 + $0x20] ss:$0 sps:$4 sm:$0x11]   ;;  %v2728_v38 = vrot.slane %v5116_v34, 1  ;;  %v619_v41 = vrot.slane %v617_v28, 1  ;;  %v521_v47 = vshll.u32 %v5120_v32, 16 }
  0x32   : > { %1892 = vrot.lane.b32.xlu1 %v1854_v42, %s5320_s22  ;;  %v2414_v36 = vsel %vm493_vm1, %v2409_v22, %v2413_v19  ;;  %v2729_v39 = vrot.slane %v5117_v35, 1  ;;  %v5119_v40 = vld [vmem:[%s5360_s17 + $0x80] ss:$0 sps:$4 sm:$0x11]   ;;  %v2754_v44 = vsel %vm927_vm0, %v2752_v31, %v2753_v33  ;;  %v2755_v56 = vrot.slane %v5122_v51, 1  ;;  %v5128_v57 = vld [vmem:[%s5360_s17 + $0x24] sm:$0xff]  }
  0x33   : > { %1876 = vrot.lane.b32.xlu0 %v1830_v43, %s5320_s22  ;;  %v2318_v37 = vsel %vm493_vm1, %v2313_v29, %v2317_v30  ;;  %v622_v42 = vshll.u32 %v5119_v40, 16  ;;  %v5121_v43 = vld [vmem:[%s5360_s17 + $0x20] ss:$0 sps:$4 sm:$0x11]   ;;  %v620_v45 = vor.u32 %v619_v41, %v615_v20  ;;  %v5124_v61 = vld [vmem:[%s5360_s17 + $0x24] sm:$0xfe]  }
  0x34   : > { %v2730_v48 = vsel %vm927_vm0, %v2728_v38, %v2729_v39  ;;  %v2731_v0 = vrot.slane %v5124_v61, 1  ;;  %v5127_v2 = vld [vmem:[%s5360_s17 + $0x8c] ss:$0 sps:$4 sm:$0x11]   ;;  %v627_v3 = vshrl.u32 %v5126_v52, 16  ;;  %v629_v4 = vshll.u32 %v5126_v52, 16 }
  0x35   : > { %v624_v49 = vrot.slane %v622_v42, 1  ;;  %v634_v6 = vshll.u32 %v5127_v2, 16  ;;  %v5129_v7 = vld [vmem:[%s5360_s17 + $0x2c] ss:$0 sps:$4 sm:$0x11]   ;;  %v531_v10 = vshrl.u32 %v5128_v57, 16 }
  0x36   : > { %1894 = vrot.lane.b32.xlu1 %v1857_v50, %s5320_s22  ;;  %v526_v50 = vshll.u32 %v5121_v43, 16  ;;  %v631_v9 = vrot.slane %v629_v4, 1  ;;  %v533_v11 = vshll.u32 %v5128_v57, 16  ;;  %v538_v13 = vshll.u32 %v5129_v7, 16  ;;  %v5130_v16 = vld [vmem:[%s5360_s17 + $0x78] sm:$0xfe]  }
  0x37   : > { %1878 = vrot.lane.b32.xlu0 %v1833_v54, %s5320_s22  ;;  %v5123_v54 = vld [vmem:[%s5360_s17 + $0x8c] ss:$0 sps:$4 sm:$0x11]   ;;  %v625_v58 = vsel %vm493_vm1, %v620_v45, %v624_v49  ;;  %v636_v12 = vrot.slane %v634_v6, 1  ;;  %v5132_v23 = vld [vmem:[%s5360_s17 + $0x18] sm:$0xfe]  }
  0x38   : > { %v2756_v60 = vrot.slane %v5123_v54, 1  ;;  %v632_v14 = vor.u32 %v631_v9, %v627_v3  ;;  %v535_v15 = vrot.slane %v533_v11, 1  ;;  %v5131_v17 = vld [vmem:[%s5360_s17 + $0x80] ss:$0 sps:$4 sm:$0x11]   ;;  %v540_v18 = vrot.slane %v538_v13, 1 }
  0x39   : > { %v959_v22 = vrot.slane %v5131_v17, 1  ;;  %v5133_v24 = vld [vmem:[%s5360_s17 + $0x20] ss:$0 sps:$4 sm:$0x11]   ;;  %v5142_v27 = vld [vmem:[%s5360_s17 + $0x84] sm:$0xff]   ;;  %v5141_v51 = vld [vmem:[%s5360_s17 + $0x30] sm:$0xff]  }
  0x3a   : > { %2070 = vrot.lane.b32.xlu1 %v5102_v53, %s5321_s23  ;;  %v523_v53 = vrot.slane %v521_v47, 1  ;;  %v2757_v5 = vsel %vm927_vm0, %v2755_v56, %v2756_v60  ;;  %v637_v19 = vsel %vm493_vm1, %v632_v14, %v636_v12  ;;  %v536_v20 = vor.u32 %v535_v15, %v531_v10  ;;  %v5134_v30 = vld [vmem:[%s5360_s17 + $0x84] sm:$0xfe]   ;;  %v5135_v31 = vld [vmem:[%s5360_s17 + $0x8c] ss:$0 sps:$4 sm:$0x11]  }
  0x3b   : > { %2054 = vrot.lane.b32.xlu0 %v5103_v55, %s5321_s23  ;;  %v528_v55 = vrot.slane %v526_v50, 1  ;;  %v935_v29 = vrot.slane %v5133_v24, 1  ;;  %v961_v33 = vrot.slane %v5134_v30, 1  ;;  %v962_v34 = vrot.slane %v5135_v31, 1  ;;  %v5136_v35 = vld [vmem:[%s5360_s17 + $0x24] sm:$0xfe]  }
  0x3c   : > { %v524_v59 = vor.u32 %v523_v53, %v519_v46  ;;  %v541_v25 = vsel %vm493_vm1, %v536_v20, %v540_v18  ;;  %v937_v39 = vrot.slane %v5136_v35, 1  ;;  %v1518_v40 = vshll.u32 %v5142_v27, 16  ;;  %v5138_v42 = vld [vmem:[%s5360_s17 + $0x84] sm:$0xff]   ;;  %v5140_v50 = vld [vmem:[%s5360_s17 + $0x90] sm:$0xff]  }
  0x3d   : > { %v963_v38 = vsel %vm927_vm0, %v961_v33, %v962_v34  ;;  %v5144_v43 = vld [vmem:[%s5360_s17 + $0x24] sm:$0xff]   ;;  %v5145_v53 = vld [vmem:[%s5360_s17 + $0x2c] ss:$0 sps:$4 sm:$0x11]   ;;  %v5156_v30 = vld [vmem:[%s5360_s17 + $0x30] sm:$0xfe]  }
  0x3e   : > { %2072 = vrot.lane.b32.xlu1 %v5104_v62, %s5321_s23  ;;  %v5125_v62 = vld [vmem:[%s5360_s17 + $0x2c] ss:$0 sps:$4 sm:$0x11]   ;;  %v529_v63 = vsel %vm493_vm1, %v524_v59, %v528_v55  ;;  %v1520_v46 = vrot.slane %v1518_v40, 1  ;;  %v1420_v47 = vshrl.u32 %v5144_v43, 16  ;;  %v1422_v49 = vshll.u32 %v5144_v43, 16 }
  0x3f   : > { %2056 = vrot.lane.b32.xlu0 %v5105_v1, %s5321_s23  ;;  %v2732_v1 = vrot.slane %v5125_v62, 1  ;;  %v5146_v55 = vld [vmem:[%s5360_s17 + $0x90] sm:$0xff]   ;;  %v5147_v59 = vld [vmem:[%s5360_s17 + $0x98] ss:$0 sps:$4 sm:$0x11]   ;;  %v1837_v34 = vrot.slane %v5156_v30, 1 }
  0x40   : > { %v1424_v54 = vrot.slane %v1422_v49, 1  ;;  %v1528_v60 = vshrl.u32 %v5146_v55, 16  ;;  %v1530_v62 = vshll.u32 %v5146_v55, 16  ;;  %v5149_v2 = vld [vmem:[%s5360_s17 + $0x38] ss:$0 sps:$4 sm:$0x11]  }
  0x41   : > { %v2733_v8 = vsel %vm927_vm0, %v2731_v0, %v2732_v1  ;;  %v1535_v1 = vshll.u32 %v5147_v59, 16  ;;  %v5150_v12 = vld [vmem:[%s5360_s17 + $0x84] sm:$0xfe]   ;;  %v5151_v13 = vld [vmem:[%s5360_s17 + $0x8c] ss:$0 sps:$4 sm:$0x11]  }
  0x42   : > { %2503 = vrot.lane.b32.xlu1 %v2402_v21, %s5322_s24  ;;  %v958_v21 = vrot.slane %v5130_v16, 1  ;;  %v1425_v61 = vor.u32 %v1424_v54, %v1420_v47  ;;  %v1532_v3 = vrot.slane %v1530_v62, 1  ;;  %v1858_v16 = vrot.slane %v5150_v12, 1  ;;  %v5152_v17 = vld [vmem:[%s5360_s17 + $0x24] sm:$0xfe]   ;;  %v5158_v40 = vld [vmem:[%s5360_s17 + $0x90] sm:$0xff]  }
  0x43   : > { %2487 = vrot.lane.b32.xlu0 %v2306_v26, %s5322_s24  ;;  %v934_v26 = vrot.slane %v5132_v23, 1  ;;  %v1537_v7 = vrot.slane %v1535_v1, 1  ;;  %v5153_v20 = vld [vmem:[%s5360_s17 + $0x2c] ss:$0 sps:$4 sm:$0x11]   ;;  %v5162_v23 = vld [vmem:[%s5360_s17 + $0x90] sm:$0xff]  }
  0x44   : > { %v960_v28 = vsel %vm927_vm0, %v958_v21, %v959_v22  ;;  %v1533_v10 = vor.u32 %v1532_v3, %v1528_v60  ;;  %v1834_v22 = vrot.slane %v5152_v17, 1  ;;  %v1835_v24 = vrot.slane %v5153_v20, 1  ;;  %v5159_v43 = vld [vmem:[%s5360_s17 + $0x30] sm:$0xff]   ;;  %v5165_v47 = vld [vmem:[%s5360_s17 + $0x38] ss:$0 sps:$4 sm:$0x11]  }
  0x45   : > { %v936_v32 = vsel %vm927_vm0, %v934_v26, %v935_v29  ;;  %v5155_v26 = vld [vmem:[%s5360_s17 + $0x98] ss:$0 sps:$4 sm:$0x11]   ;;  %v2416_v33 = vshrl.u32 %v5162_v23, 16  ;;  %v2418_v35 = vshll.u32 %v5162_v23, 16  ;;  %v5166_v49 = vld [vmem:[%s5360_s17 + $0x9c] sm:$0xff]  }
  0x46   : > { %2505 = vrot.lane.b32.xlu1 %v2414_v36, %s5322_s24  ;;  %v5137_v36 = vld [vmem:[%s5360_s17 + $0x2c] ss:$0 sps:$4 sm:$0x11]   ;;  %v1538_v18 = vsel %vm493_vm1, %v1533_v10, %v1537_v7  ;;  %v1862_v29 = vrot.slane %v5155_v26, 1  ;;  %v1836_v31 = vsel %vm927_vm0, %v1834_v22, %v1835_v24  ;;  %v2430_v55 = vshll.u32 %v5166_v49, 16  ;;  %v5174_v3 = vld [vmem:[%s5360_s17 + $0x90] sm:$0xff]  }
  0x47   : > { %2489 = vrot.lane.b32.xlu0 %v2318_v37, %s5322_s24  ;;  %v1516_v37 = vshrl.u32 %v5142_v27, 16  ;;  %v938_v41 = vrot.slane %v5137_v36, 1  ;;  %v5167_v54 = vld [vmem:[%s5360_s17 + $0xa4] ss:$0 sps:$4 sm:$0x11]   ;;  %v2428_v59 = vshrl.u32 %v5166_v49, 16 }
  0x48   : > { %v2435_v60 = vshll.u32 %v5167_v54, 16  ;;  %v5173_v20 = vld [vmem:[%s5360_s17 + $0x38] ss:$0 sps:$4 sm:$0x11]   ;;  %v5185_v49 = vld [vmem:[%s5360_s17 + $0x60] sm:$0xff]  }
  0x49   : > { %v939_v45 = vsel %vm927_vm0, %v937_v39, %v938_v41  ;;  %v1521_v56 = vor.u32 %v1520_v46, %v1516_v37  ;;  %v5164_v37 = vld [vmem:[%s5360_s17 + $0x30] sm:$0xff]   ;;  %v2420_v41 = vrot.slane %v2418_v35, 1  ;;  %v2735_v26 = vrot.slane %v5173_v20, 1  ;;  %309 = vst.msk [vmem:[#allocation2 + $0x40] sm:$0xff] %vm300_vm2, %v5185_v49  ;;  %v5204_v49 = vld [vmem:[%s5360_s17 + $0x3c] sm:$0xff]  }
  0x4a   : > { %2792 = vrot.lane.b32.xlu1 %v2754_v44, %s5323_s25  ;;  %v5139_v44 = vld [vmem:[%s5360_s17 + $0x24] sm:$0xff]   ;;  %v5178_v35 = vld [vmem:[%s5360_s17 + $0xc] sm:$0xff]  }
  0x4b   : > { %2776 = vrot.lane.b32.xlu0 %v2730_v48, %s5323_s25  ;;  %v5143_v48 = vld [vmem:[%s5360_s17 + $0x8c] ss:$0 sps:$4 sm:$0x11]   ;;  %302 = vst.msk [vmem:[#allocation2 + $0x8] sm:$0xff] %vm300_vm2, %v5178_v35 }
  0x4c   : > { %v1523_v52 = vshll.u32 %v5143_v48, 16 }
  0x4e   : > { %706 = vrot.lane.b32.xlu1 %v625_v58, %s5318_s20  ;;  %v1525_v57 = vrot.slane %v1523_v52, 1  ;;  %v1427_v58 = vshll.u32 %v5145_v53, 16  ;;  %v2327_v53 = vshll.u32 %v5165_v47, 16  ;;  %v5184_v47 = vld [vmem:[%s5360_s17 + $0x6c] sm:$0xff]  }
  0x4f   : > { %690 = vrot.lane.b32.xlu0 %v529_v63, %s5318_s20  ;;  %v5148_v63 = vld [vmem:[%s5360_s17 + $0x30] sm:$0xff]   ;;  %310 = vst.msk [vmem:[#allocation2 + $0x48] sm:$0xff] %vm300_vm2, %v5184_v47  ;;  %v5202_v47 = vld [vmem:[%s5360_s17 + $0x9c] sm:$0xff]  }
  0x50   : > { %v1429_v0 = vrot.slane %v1427_v58, 1  ;;  %v1432_v4 = vshrl.u32 %v5148_v63, 16  ;;  %v1526_v6 = vsel %vm493_vm1, %v1521_v56, %v1525_v57  ;;  %v5168_v56 = vld [vmem:[%s5360_s17 + $0x3c] sm:$0xff]   ;;  %v2421_v57 = vor.u32 %v2420_v41, %v2416_v33  ;;  %v5177_v33 = vld [vmem:[%s5360_s17 + $0x38] ss:$0 sps:$4 sm:$0x11]  }
  0x51   : > { %v2329_v58 = vrot.slane %v2327_v53, 1  ;;  %v2332_v1 = vshrl.u32 %v5168_v56, 16  ;;  %v5179_v41 = vld [vmem:[%s5360_s17] sm:$0xff]  }
  0x52   : > { %2794 = vrot.lane.b32.xlu1 %v2757_v5, %s5323_s25  ;;  %v1434_v5 = vshll.u32 %v5148_v63, 16  ;;  %v1430_v9 = vsel %vm493_vm1, %v1425_v61, %v1429_v0  ;;  %v5169_v61 = vld [vmem:[%s5360_s17 + $0x44] ss:$0 sps:$4 sm:$0x11]   ;;  %v2432_v0 = vrot.slane %v2430_v55, 1  ;;  %301 = vst.msk [vmem:[#allocation2] sm:$0xff] %vm300_vm2, %v5179_v41 }
  0x53   : > { %2778 = vrot.lane.b32.xlu0 %v2733_v8, %s5323_s25  ;;  %v1439_v8 = vshll.u32 %v5149_v2, 16  ;;  %v2334_v2 = vshll.u32 %v5168_v56, 16  ;;  %v5182_v55 = vld [vmem:[%s5360_s17 + $0x3c] sm:$0xfe]  }
  0x54   : > { %v1436_v11 = vrot.slane %v1434_v5, 1  ;;  %v2339_v5 = vshll.u32 %v5169_v61, 16  ;;  %v2433_v12 = vor.u32 %v2432_v0, %v2428_v59  ;;  %v5183_v56 = vld [vmem:[%s5360_s17 + $0x44] ss:$0 sps:$4 sm:$0x11]  }
  0x55   : > { %v1441_v14 = vrot.slane %v1439_v8, 1  ;;  %v2336_v7 = vrot.slane %v2334_v2, 1  ;;  %v5170_v8 = vld [vmem:[%s5360_s17 + $0x90] sm:$0xfe]   ;;  %v2738_v59 = vrot.slane %v5183_v56, 1  ;;  %v1444_v56 = vshrl.u32 %v5204_v49, 16 }
  0x56   : > { %708 = vrot.lane.b32.xlu1 %v637_v19, %s5318_s20  ;;  %v1437_v15 = vor.u32 %v1436_v11, %v1432_v4  ;;  %v1859_v19 = vrot.slane %v5151_v13, 1  ;;  %v2437_v4 = vrot.slane %v2435_v60, 1  ;;  %v2341_v13 = vrot.slane %v2339_v5, 1  ;;  %v5187_v2 = vld [vmem:[%s5360_s17 + $0xa4] ss:$0 sps:$4 sm:$0x11]  }
  0x57   : > { %692 = vrot.lane.b32.xlu0 %v541_v25, %s5318_s20  ;;  %v5154_v25 = vld [vmem:[%s5360_s17 + $0x90] sm:$0xfe]   ;;  %v2758_v17 = vrot.slane %v5170_v8, 1  ;;  %v658_v5 = vshll.u32 %v5187_v2, 16 }
  0x58   : > { %v1442_v21 = vsel %vm493_vm1, %v1437_v15, %v1441_v14  ;;  %v1860_v27 = vsel %vm927_vm0, %v1858_v16, %v1859_v19  ;;  %v639_v14 = vshrl.u32 %v5174_v3, 16  ;;  %v2337_v16 = vor.u32 %v2336_v7, %v2332_v1  ;;  %v5172_v19 = vld [vmem:[%s5360_s17 + $0x30] sm:$0xfe]  }
  0x59   : > { %v2734_v23 = vrot.slane %v5172_v19, 1 }
  0x5a   : > { %996 = vrot.lane.b32.xlu1 %v960_v28, %s5317_s19  ;;  %v1861_v28 = vrot.slane %v5154_v25, 1  ;;  %v2438_v25 = vsel %vm493_vm1, %v2433_v12, %v2437_v4  ;;  %v2342_v30 = vsel %vm493_vm1, %v2337_v16, %v2341_v13  ;;  %v660_v12 = vrot.slane %v658_v5, 1 }
  0x5b   : > { %980 = vrot.lane.b32.xlu0 %v936_v32, %s5317_s19  ;;  %v5157_v32 = vld [vmem:[%s5360_s17 + $0x38] ss:$0 sps:$4 sm:$0x11]  }
  0x5c   : > { %v1838_v36 = vrot.slane %v5157_v32, 1 }
  0x5e   : > { %998 = vrot.lane.b32.xlu1 %v963_v38, %s5317_s19  ;;  %v1863_v38 = vsel %vm927_vm0, %v1861_v28, %v1862_v29  ;;  %v1839_v39 = vsel %vm927_vm0, %v1837_v34, %v1838_v36 }
  0x5f   : > { %982 = vrot.lane.b32.xlu0 %v939_v45, %s5317_s19  ;;  %v2322_v45 = vshll.u32 %v5164_v37, 16 }
  0x61   : > { %v2324_v48 = vrot.slane %v2322_v45, 1 }
  0x62   : > { %1174 = vrot.lane.b32.xlu1 %v5138_v42, %s5316_s18  ;;  %v2320_v42 = vshrl.u32 %v5164_v37, 16 }
  0x63   : > { %1158 = vrot.lane.b32.xlu0 %v5139_v44, %s5316_s18  ;;  %v5163_v44 = vld [vmem:[%s5360_s17 + $0x98] ss:$0 sps:$4 sm:$0x11]  }
  0x64   : > { %v2423_v46 = vshll.u32 %v5163_v44, 16  ;;  %v2325_v62 = vor.u32 %v2324_v48, %v2320_v42  ;;  %v2736_v42 = vsel %vm927_vm0, %v2734_v23, %v2735_v26  ;;  %v5181_v48 = vld [vmem:[%s5360_s17 + $0xa4] ss:$0 sps:$4 sm:$0x11]   ;;  %v5192_v23 = vld [vmem:[%s5360_s17 + $0x30] sm:$0xfe]  }
  0x65   : > { %v2762_v54 = vrot.slane %v5181_v48, 1  ;;  %v5203_v48 = vld [vmem:[%s5360_s17 + $0xa4] ss:$0 sps:$4 sm:$0x11]  }
  0x66   : > { %1176 = vrot.lane.b32.xlu1 %v5140_v50, %s5316_s18  ;;  %v5160_v50 = vld [vmem:[%s5360_s17 + $0x9c] sm:$0xff]   ;;  %v2425_v52 = vrot.slane %v2423_v46, 1  ;;  %v2330_v15 = vsel %vm493_vm1, %v2325_v62, %v2329_v58  ;;  %v2737_v58 = vrot.slane %v5182_v55, 1 }
  0x67   : > { %1160 = vrot.lane.b32.xlu0 %v5141_v51, %s5316_s18  ;;  %v5161_v51 = vld [vmem:[%s5360_s17 + $0x3c] sm:$0xff]  }
  0x68   : > { %v2426_v10 = vsel %vm493_vm1, %v2421_v57, %v2425_v52  ;;  %v5180_v46 = vld [vmem:[%s5360_s17 + $0x9c] sm:$0xfe]   ;;  %v2739_v1 = vsel %vm927_vm0, %v2737_v58, %v2738_v59 }
  0x69   : > { %v5186_v52 = vld [vmem:[%s5360_s17 + $0x9c] sm:$0xff]  }
  0x6a   : > { %1607 = vrot.lane.b32.xlu1 %v1526_v6, %s5319_s21  ;;  %v5176_v6 = vld [vmem:[%s5360_s17 + $0x30] sm:$0xff]   ;;  %v651_v62 = vshrl.u32 %v5186_v52, 16  ;;  %v653_v0 = vshll.u32 %v5186_v52, 16  ;;  %v1542_v52 = vshll.u32 %v5202_v47, 16 }
  0x6b   : > { %1591 = vrot.lane.b32.xlu0 %v1430_v9, %s5319_s21  ;;  %v5171_v9 = vld [vmem:[%s5360_s17 + $0x98] ss:$0 sps:$4 sm:$0x11]   ;;  %v543_v24 = vshrl.u32 %v5176_v6, 16  ;;  %v545_v29 = vshll.u32 %v5176_v6, 16 }
  0x6c   : > { %v655_v4 = vrot.slane %v653_v0, 1  ;;  %v5189_v6 = vld [vmem:[%s5360_s17 + $0x44] ss:$0 sps:$4 sm:$0x11]   ;;  %v1544_v59 = vrot.slane %v1542_v52, 1  ;;  %v5219_v52 = vld [vmem:[%s5360_s17 + $0x48] sm:$0xff]  }
  0x6d   : > { %v547_v34 = vrot.slane %v545_v29, 1 }
  0x6e   : > { %1609 = vrot.lane.b32.xlu1 %v1538_v18, %s5319_s21  ;;  %v2759_v18 = vrot.slane %v5171_v9, 1  ;;  %v656_v9 = vor.u32 %v655_v4, %v651_v62  ;;  %v5206_v62 = vld [vmem:[%s5360_s17 + $0xa8] sm:$0xff]  }
  0x6f   : > { %1593 = vrot.lane.b32.xlu0 %v1442_v21, %s5319_s21  ;;  %v641_v21 = vshll.u32 %v5174_v3, 16  ;;  %v5188_v3 = vld [vmem:[%s5360_s17 + $0x3c] sm:$0xff]   ;;  %v1552_v4 = vshrl.u32 %v5206_v62, 16  ;;  %v1554_v5 = vshll.u32 %v5206_v62, 16 }
  0x70   : > { %v2760_v36 = vsel %vm927_vm0, %v2758_v17, %v2759_v18  ;;  %v555_v7 = vshrl.u32 %v5188_v3, 16  ;;  %v557_v8 = vshll.u32 %v5188_v3, 16  ;;  %v5191_v17 = vld [vmem:[%s5360_s17 + $0x98] ss:$0 sps:$4 sm:$0x11]  }
  0x71   : > { %v643_v28 = vrot.slane %v641_v21, 1  ;;  %v965_v21 = vrot.slane %v5191_v17, 1 }
  0x72   : > { %1896 = vrot.lane.b32.xlu1 %v1860_v27, %s5320_s22  ;;  %v5175_v27 = vld [vmem:[%s5360_s17 + $0x98] ss:$0 sps:$4 sm:$0x11]   ;;  %v559_v13 = vrot.slane %v557_v8, 1 }
  0x73   : > { %1880 = vrot.lane.b32.xlu0 %v1836_v31, %s5320_s22  ;;  %v646_v32 = vshll.u32 %v5175_v27, 16 }
  0x74   : > { %v560_v18 = vor.u32 %v559_v13, %v555_v7 }
  0x76   : > { %1898 = vrot.lane.b32.xlu1 %v1863_v38, %s5320_s22  ;;  %v644_v38 = vor.u32 %v643_v28, %v639_v14  ;;  %v562_v14 = vshll.u32 %v5189_v6, 16  ;;  %v940_v28 = vrot.slane %v5192_v23, 1  ;;  %v5208_v6 = vld [vmem:[%s5360_s17 + $0x48] sm:$0xff]   ;;  %v5211_v23 = vld [vmem:[%s5360_s17 + $0xa4] ss:$0 sps:$4 sm:$0x11]  }
  0x77   : > { %1882 = vrot.lane.b32.xlu0 %v1839_v39, %s5320_s22  ;;  %v648_v39 = vrot.slane %v646_v32, 1 }
  0x78   : > { %v564_v19 = vrot.slane %v562_v14, 1  ;;  %v1556_v14 = vrot.slane %v1554_v5, 1  ;;  %v5231_v5 = vld [vmem:[%s5360_s17 + $0x54] sm:$0xff]  }
  0x7a   : > { %2074 = vrot.lane.b32.xlu1 %v5158_v40, %s5321_s23  ;;  %v550_v40 = vshll.u32 %v5177_v33, 16  ;;  %v5196_v33 = vld [vmem:[%s5360_s17 + $0x3c] sm:$0xfe]  }
  0x7b   : > { %2058 = vrot.lane.b32.xlu0 %v5159_v43, %s5321_s23  ;;  %v548_v43 = vor.u32 %v547_v34, %v543_v24  ;;  %v5193_v24 = vld [vmem:[%s5360_s17 + $0x38] ss:$0 sps:$4 sm:$0x11]  }
  0x7c   : > { %v552_v45 = vrot.slane %v550_v40, 1  ;;  %v941_v29 = vrot.slane %v5193_v24, 1 }
  0x7e   : > { %2076 = vrot.lane.b32.xlu1 %v5160_v50, %s5321_s23  ;;  %v649_v50 = vsel %vm493_vm1, %v644_v38, %v648_v39  ;;  %v553_v53 = vsel %vm493_vm1, %v548_v43, %v552_v45  ;;  %v943_v38 = vrot.slane %v5196_v33, 1  ;;  %v5198_v39 = vld [vmem:[%s5360_s17 + $0x9c] sm:$0xff]  }
  0x7f   : > { %2060 = vrot.lane.b32.xlu0 %v5161_v51, %s5321_s23  ;;  %v2761_v51 = vrot.slane %v5180_v46, 1  ;;  %v5200_v46 = vld [vmem:[%s5360_s17 + $0xa8] sm:$0xff]  }
  0x81   : > { %v2763_v61 = vsel %vm927_vm0, %v2761_v51, %v2762_v54  ;;  %v1540_v51 = vshrl.u32 %v5202_v47, 16  ;;  %v5205_v54 = vld [vmem:[%s5360_s17 + $0x44] ss:$0 sps:$4 sm:$0x11]  }
  0x82   : > { %2507 = vrot.lane.b32.xlu1 %v2426_v10, %s5322_s24 }
  0x83   : > { %2491 = vrot.lane.b32.xlu0 %v2330_v15, %s5322_s24  ;;  %v5190_v15 = vld [vmem:[%s5360_s17 + $0x90] sm:$0xfe]   ;;  %v1545_v2 = vor.u32 %v1544_v59, %v1540_v51 }
  0x84   : > { %v5560_v63 = vpop.permute.xlu1 %1170  ;;  %v964_v20 = vrot.slane %v5190_v15, 1  ;;  %v1456_v15 = vshrl.u32 %v5208_v6, 16  ;;  %v5221_v59 = vld [vmem:[%s5360_s17 + $0x54] sm:$0xff]  }
  0x85   : > { %v5569_v11 = vpop.permute.xlu0 %1154 }
  0x86   : > { %2509 = vrot.lane.b32.xlu1 %v2438_v25, %s5322_s24  ;;  %v565_v25 = vsel %vm493_vm1, %v560_v18, %v564_v19  ;;  %v1557_v19 = vor.u32 %v1556_v14, %v1552_v4  ;;  %v5227_v4 = vld [vmem:[%s5360_s17 + $0x50] ss:$0 sps:$4 sm:$0x11]  }
  0x87   : > { %2493 = vrot.lane.b32.xlu0 %v2342_v30, %s5322_s24  ;;  %v5194_v30 = vld [vmem:[%s5360_s17 + $0x9c] sm:$0xfe]  }
  0x88   : > { %v5575_v22 = vpop.permute.xlu1 %992  ;;  %v967_v32 = vrot.slane %v5194_v30, 1  ;;  %v5212_v30 = vld [vmem:[%s5360_s17 + $0x3c] sm:$0xfe]  }
  0x89   : > { %v977_v31 = vpop.permute.xlu0 %976 }
  0x8a   : > { %2796 = vrot.lane.b32.xlu1 %v2760_v36, %s5323_s25  ;;  %v5197_v36 = vld [vmem:[%s5360_s17 + $0x44] ss:$0 sps:$4 sm:$0x11]  }
  0x8b   : > { %2780 = vrot.lane.b32.xlu0 %v2736_v42, %s5323_s25  ;;  %v944_v41 = vrot.slane %v5197_v36, 1  ;;  %v5199_v42 = vld [vmem:[%s5360_s17 + $0x3c] sm:$0xff]   ;;  %v5214_v36 = vld [vmem:[%s5360_s17 + $0xa8] sm:$0xfe]  }
  0x8c   : > { %v995_v37 = vpop.permute.xlu1 %994 }
  0x8d   : > { %v979_v44 = vpop.permute.xlu0 %978  ;;  %v945_v43 = vsel %vm927_vm0, %v943_v38, %v944_v41 }
  0x8e   : > { %710 = vrot.lane.b32.xlu1 %v649_v50, %s5318_s20  ;;  %v5201_v50 = vld [vmem:[%s5360_s17 + $0x48] sm:$0xff]  }
  0x8f   : > { %694 = vrot.lane.b32.xlu0 %v553_v53, %s5318_s20  ;;  %v1547_v53 = vshll.u32 %v5203_v48, 16 }
  0x90   : > { %v689_v57 = vpop.permute.xlu1 %688 }
  0x91   : > { %736 = vst.msk [vmem:[#allocation2 + $0x8] sm:$0xff] %vm734_vm3, %v689_v57  ;;  %v687_v60 = vpop.permute.xlu0 %686  ;;  %v1446_v57 = vshll.u32 %v5204_v49, 16  ;;  %v5218_v49 = vld [vmem:[%s5360_s17 + $0xa8] sm:$0xff]  }
  0x92   : > { %1026 = vst.msk [vmem:[#allocation2 + $0x8] sm:$0xff] %vm1024_vm4, %v979_v44  ;;  %2798 = vrot.lane.b32.xlu1 %v2763_v61, %s5323_s25  ;;  %v1451_v61 = vshll.u32 %v5205_v54, 16  ;;  %v5223_v54 = vld [vmem:[%s5360_s17 + $0x18] sm:$0xff]  }
  0x93   : > { %735 = vst.msk [vmem:[#allocation2] sm:$0xff] %vm734_vm3, %v687_v60  ;;  %2782 = vrot.lane.b32.xlu0 %v2739_v1, %s5323_s25  ;;  %v1549_v60 = vrot.slane %v1547_v53, 1  ;;  %v1448_v0 = vrot.slane %v1446_v57, 1  ;;  %v5207_v1 = vld [vmem:[%s5360_s17 + $0xb0] ss:$0 sps:$4 sm:$0x11]  }
  0x94   : > { %1025 = vst.msk [vmem:[#allocation2] sm:$0xff] %vm1024_vm4, %v977_v31  ;;  %v705_v10 = vpop.permute.xlu1 %704  ;;  %v5195_v31 = vld [vmem:[%s5360_s17 + $0xa4] ss:$0 sps:$4 sm:$0x11]   ;;  %v1453_v3 = vrot.slane %v1451_v61, 1  ;;  %v5224_v57 = vld [vmem:[%s5360_s17 + $0xa8] sm:$0xff]  }
  0x95   : > { %1203 = vst.msk [vmem:[#allocation2] sm:$0xff] %vm1202_vm5, %v5569_v11  ;;  %v703_v16 = vpop.permute.xlu0 %702  ;;  %v661_v11 = vsel %vm493_vm1, %v656_v9, %v660_v12  ;;  %v968_v35 = vrot.slane %v5195_v31, 1  ;;  %v1449_v8 = vor.u32 %v1448_v0, %v1444_v56  ;;  %v1559_v9 = vshll.u32 %v5207_v1, 16  ;;  %v5213_v31 = vld [vmem:[%s5360_s17 + $0x44] ss:$0 sps:$4 sm:$0x11]  }
  0x96   : > { %744 = vst.msk [vmem:[#allocation2 + $0x48] sm:$0xff] %vm734_vm3, %v705_v10  ;;  %743 = vst.msk [vmem:[#allocation2 + $0x40] sm:$0xff] %vm734_vm3, %v703_v16  ;;  %712 = vrot.lane.b32.xlu1 %v661_v11, %s5318_s20  ;;  %v5209_v10 = vld [vmem:[%s5360_s17 + $0x50] ss:$0 sps:$4 sm:$0x11]   ;;  %v1550_v13 = vsel %vm493_vm1, %v1545_v2, %v1549_v60  ;;  %v1458_v16 = vshll.u32 %v5208_v6, 16 }
  0x97   : > { %1034 = vst.msk [vmem:[#allocation2 + $0x48] sm:$0xff] %vm1024_vm4, %v995_v37  ;;  %1033 = vst.msk [vmem:[#allocation2 + $0x40] sm:$0xff] %vm1024_vm4, %v5575_v22  ;;  %696 = vrot.lane.b32.xlu0 %v565_v25, %s5318_s20  ;;  %v966_v22 = vsel %vm927_vm0, %v964_v20, %v965_v21  ;;  %v969_v40 = vsel %vm927_vm0, %v967_v32, %v968_v35  ;;  %v1454_v17 = vsel %vm493_vm1, %v1449_v8, %v1453_v3  ;;  %v5210_v21 = vld [vmem:[%s5360_s17 + $0x9c] sm:$0xfe]   ;;  %v5220_v56 = vld [vmem:[%s5360_s17 + $0xb4] sm:$0xff]  }
  0x98   : > { %v1173_v26 = vpop.permute.xlu1 %1172  ;;  %1211 = vst.msk [vmem:[#allocation2 + $0x40] sm:$0xff] %vm1202_vm5, %v5560_v63  ;;  %v942_v63 = vsel %vm927_vm0, %v940_v28, %v941_v29  ;;  %v1561_v11 = vrot.slane %v1559_v9, 1  ;;  %v1463_v18 = vshll.u32 %v5209_v10, 16  ;;  %v1460_v20 = vrot.slane %v1458_v16, 1  ;;  %v5226_v0 = vld [vmem:[%s5360_s17 + $0x48] sm:$0xff]   ;;  %v5228_v1 = vld [vmem:[%s6186_s1] sm:$0xff]  }
  0x99   : > { %1212 = vst.msk [vmem:[#allocation2 + $0x48] sm:$0xff] %vm1202_vm5, %v1173_v26  ;;  %v1157_v27 = vpop.permute.xlu0 %1156  ;;  %v1864_v28 = vrot.slane %v5210_v21, 1  ;;  %v1865_v29 = vrot.slane %v5211_v23, 1  ;;  %v1840_v32 = vrot.slane %v5212_v30, 1  ;;  %v1841_v35 = vrot.slane %v5213_v31, 1  ;;  %v5229_v2 = vld [vmem:[%s5360_s17 + $0xb4] sm:$0xff]   ;;  %5007 = vmatprep.subr.bf16.mxu0 %v5228_v1  ;;  %5043 = vmatprep.subr.bf16.mxu1 %v5228_v1 }
  0x9a   : > { %1204 = vst.msk [vmem:[#allocation2 + $0x8] sm:$0xff] %vm1202_vm5, %v1157_v27  ;;  %1000 = vrot.lane.b32.xlu1 %v966_v22, %s5317_s19  ;;  %v1465_v25 = vrot.slane %v1463_v18, 1  ;;  %v1562_v27 = vsel %vm493_vm1, %v1557_v19, %v1561_v11  ;;  %v1461_v22 = vor.u32 %v1460_v20, %v1456_v15  ;;  %v2440_v60 = vshrl.u32 %v5224_v57, 16  ;;  %5008 = vmatpush3.bf16.msra.mxu0 %v5228_v1  ;;  %v5233_v11 = vld [vmem:[%s5360_s17 + $0x84] sm:$0xff]  }
  0x9b   : > { %984 = vrot.lane.b32.xlu0 %v942_v63, %s5317_s19  ;;  %303 = vst.msk [vmem:[#allocation2 + $0x10] sm:$0xff] %vm300_vm2, %v5223_v54  ;;  %v2442_v61 = vshll.u32 %v5224_v57, 16  ;;  %v2344_v9 = vshrl.u32 %v5226_v0, 16  ;;  %v2346_v10 = vshll.u32 %v5226_v0, 16  ;;  %5045 = vmatpush3.bf16.msra.mxu1 %v5228_v1  ;;  %v2452_v16 = vshrl.u32 %v5229_v2, 16  ;;  %312 = vst.msk [vmem:[#allocation2 + $0x58] sm:$0xff] %vm300_vm2, %v5233_v11 }
  0x9c   : > { %v1604_v34 = vpop.permute.xlu1 %1603  ;;  %v1466_v63 = vsel %vm493_vm1, %v1461_v22, %v1465_v25  ;;  %v5234_v22 = vld [vmem:[%s5360_s17 + $0x24] sm:$0xff]  }
  0x9d   : > { %1644 = vst.msk [vmem:[#allocation2 + $0x40] sm:$0xff] %vm1635_vm6, %v1604_v34  ;;  %v1588_v37 = vpop.permute.xlu0 %1587  ;;  %v1866_v34 = vsel %vm927_vm0, %v1864_v28, %v1865_v29  ;;  %v2348_v15 = vrot.slane %v2346_v10, 1  ;;  %v2358_v29 = vshll.u32 %v5231_v5, 16 }
  0x9e   : > { %1636 = vst.msk [vmem:[#allocation2] sm:$0xff] %vm1635_vm6, %v1588_v37  ;;  %1002 = vrot.lane.b32.xlu1 %v969_v40, %s5317_s19  ;;  %v5215_v37 = vld [vmem:[%s5360_s17 + $0xb0] ss:$0 sps:$4 sm:$0x11]   ;;  %v1867_v40 = vrot.slane %v5214_v36, 1 }
  0x9f   : > { %986 = vrot.lane.b32.xlu0 %v945_v43, %s5317_s19  ;;  %v1868_v41 = vrot.slane %v5215_v37, 1  ;;  %v5217_v43 = vld [vmem:[%s5360_s17 + $0x50] ss:$0 sps:$4 sm:$0x11]   ;;  %304 = vst.msk [vmem:[#allocation2 + $0x18] sm:$0xff] %vm300_vm2, %v5234_v22 }
  0xa0   : > { %v1606_v44 = vpop.permute.xlu1 %1605  ;;  %v1844_v48 = vrot.slane %v5217_v43, 1 }
  0xa1   : > { %1645 = vst.msk [vmem:[#allocation2 + $0x48] sm:$0xff] %vm1635_vm6, %v1606_v44  ;;  %v1590_v45 = vpop.permute.xlu0 %1589 }
  0xa2   : > { %1637 = vst.msk [vmem:[#allocation2 + $0x8] sm:$0xff] %vm1635_vm6, %v1590_v45  ;;  %1178 = vrot.lane.b32.xlu1 %v5198_v39, %s5316_s18  ;;  %v1842_v39 = vsel %vm927_vm0, %v1840_v32, %v1841_v35  ;;  %v1869_v45 = vsel %vm927_vm0, %v1867_v40, %v1868_v41  ;;  %v5235_v35 = vld [vmem:[%s6186_s1 + $0x8] sm:$0x3f]   ;;  %v5324_v40 = vmov 65535  }
  0xa3   : > { %1162 = vrot.lane.b32.xlu0 %v5199_v42, %s5316_s18  ;;  %v5216_v42 = vld [vmem:[%s5360_s17 + $0x48] sm:$0xfe]   ;;  %v2930_v41 = vsel %vm2928_vm12, 4294967295, %v5324_v40 }
  0xa4   : > { %v1893_v55 = vpop.permute.xlu1 %1892 }
  0xa5   : > { %1933 = vst.msk [vmem:[#allocation2 + $0x40] sm:$0xff] %vm1924_vm7, %v1893_v55  ;;  %v1877_v58 = vpop.permute.xlu0 %1876 }
  0xa6   : > { %1925 = vst.msk [vmem:[#allocation2] sm:$0xff] %vm1924_vm7, %v1877_v58  ;;  %1180 = vrot.lane.b32.xlu1 %v5200_v46, %s5316_s18  ;;  %v1843_v46 = vrot.slane %v5216_v42, 1  ;;  %v5225_v58 = vld [vmem:[%s5360_s17 + $0xb0] ss:$0 sps:$4 sm:$0x11]   ;;  %v5240_v42 = vld [vmem:[%s5360_s17 + $0xa8] sm:$0xff]  }
  0xa7   : > { %1164 = vrot.lane.b32.xlu0 %v5201_v50, %s5316_s18  ;;  %v5222_v50 = vld [vmem:[%s5360_s17 + $0x78] sm:$0xff]   ;;  %v2447_v62 = vshll.u32 %v5225_v58, 16  ;;  %v665_v57 = vshll.u32 %v5240_v42, 16 }
  0xa8   : > { %v1895_v7 = vpop.permute.xlu1 %1894  ;;  %v1845_v51 = vsel %vm927_vm0, %v1843_v46, %v1844_v48  ;;  %311 = vst.msk [vmem:[#allocation2 + $0x50] sm:$0xff] %vm300_vm2, %v5222_v50  ;;  %v5236_v46 = vld [vmem:[%s5360_s17 + $0xa8] sm:$0xfe]   ;;  %v663_v48 = vshrl.u32 %v5240_v42, 16 }
  0xa9   : > { %1934 = vst.msk [vmem:[#allocation2 + $0x48] sm:$0xff] %vm1924_vm7, %v1895_v7  ;;  %v1879_v12 = vpop.permute.xlu0 %1878  ;;  %v2444_v7 = vrot.slane %v2442_v61, 1  ;;  %v2449_v8 = vrot.slane %v2447_v62, 1  ;;  %v667_v1 = vrot.slane %v665_v57, 1 }
  0xaa   : > { %1926 = vst.msk [vmem:[#allocation2 + $0x8] sm:$0xff] %vm1924_vm7, %v1879_v12  ;;  %1611 = vrot.lane.b32.xlu1 %v1550_v13, %s5319_s21  ;;  %v2351_v12 = vshll.u32 %v5227_v4, 16  ;;  %v5230_v13 = vld [vmem:[%s5360_s17 + $0xbc] ss:$0 sps:$4 sm:$0x11]  }
  0xab   : > { %1595 = vrot.lane.b32.xlu0 %v1454_v17, %s5319_s21  ;;  %v2445_v14 = vor.u32 %v2444_v7, %v2440_v60  ;;  %v2454_v17 = vshll.u32 %v5229_v2, 16  ;;  %v2459_v20 = vshll.u32 %v5230_v13, 16  ;;  %v5241_v60 = vld [vmem:[%s5360_s17 + $0xb0] ss:$0 sps:$4 sm:$0x11]   ;;  %v668_v7 = vor.u32 %v667_v1, %v663_v48 }
  0xac   : > { %v2071_v24 = vpop.permute.xlu1 %2070  ;;  %v2353_v19 = vrot.slane %v2351_v12, 1  ;;  %v5248_v12 = vld [vmem:[%s5360_s17 + $0xb4] sm:$0xff]  }
  0xad   : > { %2111 = vst.msk [vmem:[#allocation2 + $0x40] sm:$0xff] %vm2102_vm8, %v2071_v24  ;;  %v2055_v26 = vpop.permute.xlu0 %2054  ;;  %v2450_v23 = vsel %vm493_vm1, %v2445_v14, %v2449_v8  ;;  %v2349_v24 = vor.u32 %v2348_v15, %v2344_v9  ;;  %v2456_v25 = vrot.slane %v2454_v17, 1  ;;  %v2461_v28 = vrot.slane %v2459_v20, 1  ;;  %v5243_v8 = vld [vmem:[%s5360_s17 + $0x50] ss:$0 sps:$4 sm:$0x11]  }
  0xae   : > { %2103 = vst.msk [vmem:[#allocation2] sm:$0xff] %vm2102_vm8, %v2055_v26  ;;  %1613 = vrot.lane.b32.xlu1 %v1562_v27, %s5319_s21  ;;  %v5232_v26 = vld [vmem:[%s5360_s17 + $0x5c] ss:$0 sps:$4 sm:$0x11]   ;;  %v2356_v27 = vshrl.u32 %v5231_v5, 16  ;;  %v670_v5 = vshll.u32 %v5241_v60, 16 }
  0xaf   : > { %1597 = vrot.lane.b32.xlu0 %v1466_v63, %s5319_s21  ;;  %v2354_v30 = vsel %vm493_vm1, %v2349_v24, %v2353_v19  ;;  %v2457_v31 = vor.u32 %v2456_v25, %v2452_v16  ;;  %v2363_v63 = vshll.u32 %v5232_v26, 16  ;;  %v574_v14 = vshll.u32 %v5243_v8, 16  ;;  %v5244_v16 = vld [vmem:[%s5360_s17 + $0xb4] sm:$0xfe]  }
  0xb0   : > { %v2073_v33 = vpop.permute.xlu1 %2072  ;;  %v672_v10 = vrot.slane %v670_v5, 1  ;;  %v675_v19 = vshrl.u32 %v5248_v12, 16  ;;  %v5246_v24 = vld [vmem:[%s5360_s17 + $0x54] sm:$0xfe]  }
  0xb1   : > { %2112 = vst.msk [vmem:[#allocation2 + $0x48] sm:$0xff] %vm2102_vm8, %v2073_v33  ;;  %v2057_v38 = vpop.permute.xlu0 %2056  ;;  %v5247_v26 = vld [vmem:[%s5360_s17 + $0x5c] ss:$0 sps:$4 sm:$0x11]   ;;  %v2743_v22 = vrot.slane %v5246_v24, 1 }
  0xb2   : > { %2104 = vst.msk [vmem:[#allocation2 + $0x8] sm:$0xff] %vm2102_vm8, %v2057_v38  ;;  %1900 = vrot.lane.b32.xlu1 %v1866_v34, %s5320_s22  ;;  %v2360_v34 = vrot.slane %v2358_v29, 1  ;;  %v2462_v38 = vsel %vm493_vm1, %v2457_v31, %v2461_v28  ;;  %v673_v17 = vsel %vm493_vm1, %v668_v7, %v672_v10  ;;  %v677_v29 = vshll.u32 %v5248_v12, 16  ;;  %v5259_v5 = vld [vmem:[%s5360_s17 + $0x5c] ss:$0 sps:$4 sm:$0x11]  }
  0xb3   : > { %1884 = vrot.lane.b32.xlu0 %v1842_v39, %s5320_s22  ;;  %v2365_v39 = vrot.slane %v2363_v63, 1  ;;  %v2744_v31 = vrot.slane %v5247_v26, 1  ;;  %v5260_v10 = vld [vmem:[%s5360_s17 + $0xb4] sm:$0xff]   ;;  %v5267_v24 = vld [vmem:[%s5360_s17 + $0x5c] ss:$0 sps:$4 sm:$0x11]  }
  0xb4   : > { %v2504_v44 = vpop.permute.xlu1 %2503  ;;  %v2361_v43 = vor.u32 %v2360_v34, %v2356_v27  ;;  %v5250_v34 = vld [vmem:[%s5360_s17 + $0x54] sm:$0xff]  }
  0xb5   : > { %2544 = vst.msk [vmem:[#allocation2 + $0x40] sm:$0xff] %vm2535_vm9, %v2504_v44  ;;  %v2488_v47 = vpop.permute.xlu0 %2487  ;;  %v2931_v44 = vsel %vm2929_vm13, %v2930_v41, 0  ;;  %v581_v40 = vshll.u32 %v5250_v34, 16 }
  0xb6   : > { %2536 = vst.msk [vmem:[#allocation2] sm:$0xff] %vm2535_vm9, %v2488_v47  ;;  %1902 = vrot.lane.b32.xlu1 %v1869_v45, %s5320_s22  ;;  %v2933_v45 = vand.u32 %v5235_v35, %v2931_v44  ;;  %v5237_v47 = vld [vmem:[%s5360_s17 + $0xb0] ss:$0 sps:$4 sm:$0x11]   ;;  %v2745_v35 = vsel %vm927_vm0, %v2743_v22, %v2744_v31  ;;  %v1475_v31 = vshll.u32 %v5267_v24, 16 }
  0xb7   : > { %1886 = vrot.lane.b32.xlu0 %v1845_v51, %s5320_s22  ;;  %v5242_v51 = vld [vmem:[%s5360_s17 + $0x48] sm:$0xff]   ;;  %v2765_v54 = vrot.slane %v5237_v47, 1  ;;  %v5253_v47 = vld [vmem:[%s5360_s17 + $0xb0] ss:$0 sps:$4 sm:$0x11]  }
  0xb8   : > { %v2506_v53 = vpop.permute.xlu1 %2505  ;;  %5009 = vmatprep.subr.bf16.mxu0 %v2933_v45  ;;  %5044 = vmatprep.subr.bf16.mxu1 %v2933_v45  ;;  %v567_v2 = vshrl.u32 %v5242_v51, 16  ;;  %v569_v9 = vshll.u32 %v5242_v51, 16  ;;  %v5254_v51 = vld [vmem:[%s5360_s17 + $0x48] sm:$0xfe]  }
  0xb9   : > { %2545 = vst.msk [vmem:[#allocation2 + $0x48] sm:$0xff] %vm2535_vm9, %v2506_v53  ;;  %v2490_v55 = vpop.permute.xlu0 %2489  ;;  %v2764_v53 = vrot.slane %v5236_v46, 1  ;;  %5010 = vmatpush3.bf16.msra.mxu0 %v2933_v45  ;;  %5046 = vmatpush3.bf16.msra.mxu1 %v2933_v45  ;;  %v5252_v45 = vld [vmem:[%s5360_s17 + $0xa8] sm:$0xfe]   ;;  %v583_v46 = vrot.slane %v581_v40, 1 }
  0xba   : > { %2537 = vst.msk [vmem:[#allocation2 + $0x8] sm:$0xff] %vm2535_vm9, %v2490_v55  ;;  %2078 = vrot.lane.b32.xlu1 %v5218_v49, %s5321_s23  ;;  %v2366_v49 = vsel %vm493_vm1, %v2361_v43, %v2365_v39  ;;  %v5238_v55 = vld [vmem:[%s5360_s17 + $0x48] sm:$0xfe]   ;;  %v571_v13 = vrot.slane %v569_v9, 1  ;;  %v579_v39 = vshrl.u32 %v5250_v34, 16  ;;  %v950_v9 = vrot.slane %v5259_v5, 1 }
  0xbb   : > { %2062 = vrot.lane.b32.xlu0 %v5219_v52, %s5321_s23  ;;  %v2766_v58 = vsel %vm927_vm0, %v2764_v53, %v2765_v54  ;;  %v971_v53 = vrot.slane %v5253_v47, 1  ;;  %v5255_v54 = vld [vmem:[%s5360_s17 + $0x50] ss:$0 sps:$4 sm:$0x11]  }
  0xbc   : > { %v2793_v3 = vpop.permute.xlu1 %2792  ;;  %v572_v20 = vor.u32 %v571_v13, %v567_v2  ;;  %v947_v60 = vrot.slane %v5255_v54, 1  ;;  %v5269_v34 = vld [vmem:[%s5360_s17 + $0xc8] ss:$0 sps:$4 sm:$0x11]  }
  0xbd   : > { %2833 = vst.msk [vmem:[#allocation2 + $0x40] sm:$0xff] %vm2824_vm10, %v2793_v3  ;;  %v2777_v6 = vpop.permute.xlu0 %2776  ;;  %v5273_v54 = vld [vmem:[%s5360_s17 + $0xbc] ss:$0 sps:$4 sm:$0x11]  }
  0xbe   : > { %2825 = vst.msk [vmem:[#allocation2] sm:$0xff] %vm2824_vm10, %v2777_v6  ;;  %2080 = vrot.lane.b32.xlu1 %v5220_v56, %s5321_s23  ;;  %v5239_v56 = vld [vmem:[%s5360_s17 + $0x50] ss:$0 sps:$4 sm:$0x11]  }
  0xbf   : > { %2064 = vrot.lane.b32.xlu0 %v5221_v59, %s5321_s23  ;;  %v2740_v59 = vrot.slane %v5238_v55, 1  ;;  %v2741_v61 = vrot.slane %v5239_v56, 1  ;;  %v946_v56 = vrot.slane %v5254_v51, 1 }
  0xc0   : > { %v707_v18 = vpop.permute.xlu1 %706 }
  0xc1   : > { %745 = vst.msk [vmem:[#allocation2 + $0x50] sm:$0xff] %vm734_vm3, %v707_v18  ;;  %v691_v21 = vpop.permute.xlu0 %690  ;;  %v2742_v6 = vsel %vm927_vm0, %v2740_v59, %v2741_v61  ;;  %v5245_v18 = vld [vmem:[%s5360_s17 + $0xbc] ss:$0 sps:$4 sm:$0x11]   ;;  %v5256_v61 = vld [vmem:[%s5360_s17 + $0xb4] sm:$0xfe]  }
  0xc2   : > { %737 = vst.msk [vmem:[#allocation2 + $0x10] sm:$0xff] %vm734_vm3, %v691_v21  ;;  %2511 = vrot.lane.b32.xlu1 %v2450_v23, %s5322_s24  ;;  %v576_v21 = vrot.slane %v574_v14, 1  ;;  %v2767_v23 = vrot.slane %v5244_v16, 1  ;;  %v2768_v25 = vrot.slane %v5245_v18, 1  ;;  %v973_v1 = vrot.slane %v5256_v61, 1  ;;  %v5261_v14 = vld [vmem:[%s5360_s17 + $0x54] sm:$0xff]  }
  0xc3   : > { %2495 = vrot.lane.b32.xlu0 %v2354_v30, %s5322_s24  ;;  %v5264_v16 = vld [vmem:[%s5360_s17 + $0xb4] sm:$0xff]  }
  0xc4   : > { %v2795_v32 = vpop.permute.xlu1 %2794  ;;  %v2849_v33 = vld [vmem:[#allocation2 + $0x40] sm:$0xff]  ;;  %v577_v27 = vsel %vm493_vm1, %v572_v20, %v576_v21  ;;  %v2769_v30 = vsel %vm927_vm0, %v2767_v23, %v2768_v25  ;;  %v5266_v18 = vld [vmem:[%s5360_s17 + $0x54] sm:$0xff]   ;;  %v1566_v20 = vshll.u32 %v5264_v16, 16 }
  0xc5   : > { %2834 = vst.msk [vmem:[#allocation2 + $0x48] sm:$0xff] %vm2824_vm10, %v2795_v32  ;;  %v2779_v36 = vpop.permute.xlu0 %2778  ;;  %v2841_v37 = vld [vmem:[#allocation2] sm:$0xff]  ;;  %5027 = vmatprep.mubr.msk.bf16.mxu1 %vm2879_vm11, %v2849_v33  ;;  %v5249_v32 = vld [vmem:[%s5360_s17 + $0xbc] ss:$0 sps:$4 sm:$0x11]   ;;  %v679_v33 = vrot.slane %v677_v29, 1 }
  0xc6   : > { %2826 = vst.msk [vmem:[#allocation2 + $0x8] sm:$0xff] %vm2824_vm10, %v2779_v36  ;;  %5011 = vmatprep.mubr.msk.bf16.mxu0 %vm2879_vm11, %v2841_v37  ;;  %2513 = vrot.lane.b32.xlu1 %v2462_v38, %s5322_s24  ;;  %v682_v36 = vshll.u32 %v5249_v32, 16  ;;  %v5251_v37 = vld [vmem:[%s5360_s17 + $0x5c] ss:$0 sps:$4 sm:$0x11]   ;;  %v1468_v25 = vshrl.u32 %v5266_v18, 16 }
  0xc7   : > { %2497 = vrot.lane.b32.xlu0 %v2366_v49, %s5322_s24  ;;  %v680_v38 = vor.u32 %v679_v33, %v675_v19  ;;  %v586_v43 = vshll.u32 %v5251_v37, 16  ;;  %v1564_v19 = vshrl.u32 %v5264_v16, 16  ;;  %v1470_v26 = vshll.u32 %v5266_v18, 16  ;;  %v5263_v32 = vld [vmem:[%s5360_s17 + $0x60] sm:$0xff]   ;;  %v5274_v61 = vld [vmem:[%s5360_s17 + $0x54] sm:$0xfe]  }
  0xc8   : > { %v709_v50 = vpop.permute.xlu1 %708  ;;  %v684_v42 = vrot.slane %v682_v36, 1  ;;  %v1568_v22 = vrot.slane %v1566_v20, 1  ;;  %v5288_v20 = vld [vmem:[%s5360_s17 + $0x60] sm:$0xff]  }
  0xc9   : > { %746 = vst.msk [vmem:[#allocation2 + $0x58] sm:$0xff] %vm734_vm3, %v709_v50  ;;  %v693_v52 = vpop.permute.xlu0 %692  ;;  %v588_v49 = vrot.slane %v586_v43, 1  ;;  %v970_v50 = vrot.slane %v5252_v45, 1 }
  0xca   : > { %738 = vst.msk [vmem:[#allocation2 + $0x18] sm:$0xff] %vm734_vm3, %v693_v52  ;;  %2800 = vrot.lane.b32.xlu1 %v2766_v58, %s5323_s25  ;;  %v685_v48 = vsel %vm493_vm1, %v680_v38, %v684_v42  ;;  %v584_v52 = vor.u32 %v583_v46, %v579_v39  ;;  %v1569_v33 = vor.u32 %v1568_v22, %v1564_v19  ;;  %v1477_v38 = vrot.slane %v1475_v31, 1  ;;  %v5271_v46 = vld [vmem:[%s5360_s17 + $0x68] ss:$0 sps:$4 sm:$0x11]  }
  0xcb   : > { %2784 = vrot.lane.b32.xlu0 %v2742_v6, %s5323_s25  ;;  %v972_v59 = vsel %vm927_vm0, %v970_v50, %v971_v53  ;;  %v1487_v51 = vshll.u32 %v5271_v46, 16  ;;  %v5272_v53 = vld [vmem:[%s5360_s17 + $0xb4] sm:$0xfe]   ;;  %v2368_v31 = vshrl.u32 %v5288_v20, 16 }
  0xcc   : > { %v997_v62 = vpop.permute.xlu1 %996  ;;  %v2850_v0 = vld [vmem:[#allocation2 + $0x48] sm:$0xff]  ;;  %v589_v58 = vsel %vm493_vm1, %v584_v52, %v588_v49  ;;  %v5291_v46 = vld [vmem:[%s5360_s17 + $0xd4] ss:$0 sps:$4 sm:$0x11]  }
  0xcd   : > { %1035 = vst.msk [vmem:[#allocation2 + $0x50] sm:$0xff] %vm1024_vm4, %v997_v62  ;;  %v981_v3 = vpop.permute.xlu0 %980  ;;  %v2842_v4 = vld [vmem:[#allocation2 + $0x8] sm:$0xff]  ;;  %5028 = vmatmul.mubr.msk.bf16.vlgmr.msra.gmra.mrb[0].mxu1 %vm2879_vm11, %v2850_v0  ;;  %v5257_v62 = vld [vmem:[%s5360_s17 + $0xbc] ss:$0 sps:$4 sm:$0x11]   ;;  %v948_v0 = vsel %vm927_vm0, %v946_v56, %v947_v60  ;;  %v1871_v60 = vrot.slane %v5273_v54, 1 }
  0xce   : > { %1027 = vst.msk [vmem:[#allocation2 + $0x10] sm:$0xff] %vm1024_vm4, %v981_v3  ;;  %5012 = vmatmul.mubr.msk.bf16.vlgmr.msra.gmra.mrb[0].mxu0 %vm2879_vm11, %v2842_v4  ;;  %714 = vrot.lane.b32.xlu1 %v673_v17, %s5318_s20  ;;  %v974_v2 = vrot.slane %v5257_v62, 1  ;;  %v5258_v3 = vld [vmem:[%s5360_s17 + $0x54] sm:$0xfe]   ;;  %v5262_v17 = vld [vmem:[%s5360_s17 + $0xc0] sm:$0xff]  }
  0xcf   : > { %698 = vrot.lane.b32.xlu0 %v577_v27, %s5318_s20  ;;  %v949_v8 = vrot.slane %v5258_v3, 1  ;;  %v5275_v62 = vld [vmem:[%s5360_s17 + $0x5c] ss:$0 sps:$4 sm:$0x11]  }
  0xd0   : > { %v999_v15 = vpop.permute.xlu1 %998  ;;  %v975_v7 = vsel %vm927_vm0, %v973_v1, %v974_v2  ;;  %v1846_v2 = vrot.slane %v5274_v61, 1 }
  0xd1   : > { %1036 = vst.msk [vmem:[#allocation2 + $0x58] sm:$0xff] %vm1024_vm4, %v999_v15  ;;  %v983_v11 = vpop.permute.xlu0 %982  ;;  %v951_v13 = vsel %vm927_vm0, %v949_v8, %v950_v9  ;;  %v5276_v8 = vld [vmem:[%s5360_s17 + $0xc0] sm:$0xfe]   ;;  %v5277_v9 = vld [vmem:[%s5360_s17 + $0xc8] ss:$0 sps:$4 sm:$0x11]  }
  0xd2   : > { %1028 = vst.msk [vmem:[#allocation2 + $0x18] sm:$0xff] %vm1024_vm4, %v983_v11  ;;  %2802 = vrot.lane.b32.xlu1 %v2769_v30, %s5323_s25  ;;  %v5265_v11 = vld [vmem:[%s5360_s17 + $0xbc] ss:$0 sps:$4 sm:$0x11]   ;;  %v1472_v30 = vrot.slane %v1470_v26, 1 }
  0xd3   : > { %2786 = vrot.lane.b32.xlu0 %v2745_v35, %s5323_s25  ;;  %v1571_v23 = vshll.u32 %v5265_v11, 16 }
  0xd4   : > { %v1175_v28 = vpop.permute.xlu1 %1174  ;;  %v1473_v37 = vor.u32 %v1472_v30, %v1468_v25 }
  0xd5   : > { %1213 = vst.msk [vmem:[#allocation2 + $0x50] sm:$0xff] %vm1202_vm5, %v1175_v28  ;;  %v1159_v63 = vpop.permute.xlu0 %1158  ;;  %v5268_v28 = vld [vmem:[%s5360_s17 + $0xc0] sm:$0xff]   ;;  %v1573_v29 = vrot.slane %v1571_v23, 1 }
  0xd6   : > { %1205 = vst.msk [vmem:[#allocation2 + $0x10] sm:$0xff] %vm1202_vm5, %v1159_v63  ;;  %716 = vrot.lane.b32.xlu1 %v685_v48, %s5318_s20  ;;  %v5270_v63 = vld [vmem:[%s5360_s17 + $0x60] sm:$0xff]   ;;  %v1576_v35 = vshrl.u32 %v5268_v28, 16  ;;  %v1578_v36 = vshll.u32 %v5268_v28, 16  ;;  %v1478_v50 = vsel %vm493_vm1, %v1473_v37, %v1477_v38  ;;  %v5282_v28 = vld [vmem:[%s5360_s17 + $0xcc] sm:$0xff]  }
  0xd7   : > { %700 = vrot.lane.b32.xlu0 %v589_v58, %s5318_s20  ;;  %v1480_v40 = vshrl.u32 %v5270_v63, 16  ;;  %v1482_v45 = vshll.u32 %v5270_v63, 16  ;;  %v1489_v58 = vrot.slane %v1487_v51, 1  ;;  %v5280_v23 = vld [vmem:[%s5360_s17 + $0xc0] sm:$0xff]   ;;  %v2370_v63 = vshll.u32 %v5288_v20, 16  ;;  %v5283_v37 = vld [vmem:[%s5360_s17 + $0x6c] sm:$0xff]  }
  0xd8   : > { %v1177_v41 = vpop.permute.xlu1 %1176  ;;  %v1580_v43 = vrot.slane %v1578_v36, 1  ;;  %v5290_v36 = vld [vmem:[%s5360_s17 + $0xcc] sm:$0xff]  }
  0xd9   : > { %1214 = vst.msk [vmem:[#allocation2 + $0x58] sm:$0xff] %vm1202_vm5, %v1177_v41  ;;  %v1161_v44 = vpop.permute.xlu0 %1160  ;;  %v1574_v41 = vsel %vm493_vm1, %v1569_v33, %v1573_v29  ;;  %v1484_v49 = vrot.slane %v1482_v45, 1  ;;  %v5287_v29 = vld [vmem:[%s5360_s17 + $0xc8] ss:$0 sps:$4 sm:$0x11]   ;;  %v5294_v45 = vld [vmem:[%s5360_s17 + $0x9c] sm:$0xff]  }
  0xda   : > { %1206 = vst.msk [vmem:[#allocation2 + $0x18] sm:$0xff] %vm1202_vm5, %v1161_v44  ;;  %1004 = vrot.lane.b32.xlu1 %v972_v59, %s5317_s19  ;;  %v1583_v44 = vshll.u32 %v5269_v34, 16  ;;  %v1581_v47 = vor.u32 %v1580_v43, %v1576_v35  ;;  %v1870_v59 = vrot.slane %v5272_v53, 1  ;;  %v2471_v34 = vshll.u32 %v5287_v29, 16 }
  0xdb   : > { %988 = vrot.lane.b32.xlu0 %v948_v0, %s5317_s19  ;;  %v1485_v56 = vor.u32 %v1484_v49, %v1480_v40  ;;  %v5284_v0 = vld [vmem:[%s5360_s17 + $0x90] sm:$0xff]   ;;  %v5289_v35 = vld [vmem:[%s5360_s17 + $0x68] ss:$0 sps:$4 sm:$0x11]   ;;  %314 = vst.msk [vmem:[#allocation2 + $0x68] sm:$0xff] %vm300_vm2, %v5294_v45 }
  0xdc   : > { %v1608_v55 = vpop.permute.xlu1 %1607  ;;  %v1585_v48 = vrot.slane %v1583_v44, 1  ;;  %v1872_v5 = vsel %vm927_vm0, %v1870_v59, %v1871_v60  ;;  %313 = vst.msk [vmem:[#allocation2 + $0x60] sm:$0xff] %vm300_vm2, %v5284_v0  ;;  %v5292_v40 = vld [vmem:[%s5360_s17 + $0x6c] sm:$0xff]   ;;  %v2375_v43 = vshll.u32 %v5289_v35, 16  ;;  %v2476_v44 = vshrl.u32 %v5290_v36, 16 }
  0xdd   : > { %1646 = vst.msk [vmem:[#allocation2 + $0x50] sm:$0xff] %vm1635_vm6, %v1608_v55  ;;  %v1592_v57 = vpop.permute.xlu0 %1591  ;;  %v1490_v1 = vsel %vm493_vm1, %v1485_v56, %v1489_v58  ;;  %v2483_v56 = vshll.u32 %v5291_v46, 16  ;;  %v2380_v58 = vshrl.u32 %v5292_v40, 16  ;;  %v2382_v59 = vshll.u32 %v5292_v40, 16 }
  0xde   : > { %1638 = vst.msk [vmem:[#allocation2 + $0x10] sm:$0xff] %vm1635_vm6, %v1592_v57  ;;  %1006 = vrot.lane.b32.xlu1 %v975_v7, %s5317_s19  ;;  %v1586_v55 = vsel %vm493_vm1, %v1581_v47, %v1585_v48  ;;  %v2478_v47 = vshll.u32 %v5290_v36, 16  ;;  %v2377_v49 = vrot.slane %v2375_v43, 1 }
  0xdf   : > { %990 = vrot.lane.b32.xlu0 %v951_v13, %s5317_s19  ;;  %v5278_v13 = vld [vmem:[%s5360_s17 + $0x60] sm:$0xfe]   ;;  %v2485_v61 = vrot.slane %v2483_v56, 1 }
  0xe0   : > { %v1610_v4 = vpop.permute.xlu1 %1609  ;;  %v1849_v18 = vrot.slane %v5278_v13, 1 }
  0xe1   : > { %1647 = vst.msk [vmem:[#allocation2 + $0x58] sm:$0xff] %vm1635_vm6, %v1610_v4  ;;  %v1594_v6 = vpop.permute.xlu0 %1593  ;;  %v5285_v4 = vld [vmem:[%s5360_s17 + $0x30] sm:$0xff]  }
  0xe2   : > { %1639 = vst.msk [vmem:[#allocation2 + $0x18] sm:$0xff] %vm1635_vm6, %v1594_v6  ;;  %1182 = vrot.lane.b32.xlu1 %v5260_v10, %s5316_s18  ;;  %v1847_v6 = vrot.slane %v5275_v62, 1  ;;  %v1873_v10 = vrot.slane %v5276_v8, 1 }
  0xe3   : > { %1166 = vrot.lane.b32.xlu0 %v5261_v14, %s5316_s18  ;;  %305 = vst.msk [vmem:[#allocation2 + $0x20] sm:$0xff] %vm300_vm2, %v5285_v4 }
  0xe4   : > { %v1897_v12 = vpop.permute.xlu1 %1896  ;;  %v1848_v14 = vsel %vm927_vm0, %v1846_v2, %v1847_v6  ;;  %v5295_v2 = vld [vmem:[%s5360_s17 + $0x3c] sm:$0xff]  }
  0xe5   : > { %1935 = vst.msk [vmem:[#allocation2 + $0x50] sm:$0xff] %vm1924_vm7, %v1897_v12  ;;  %v1881_v15 = vpop.permute.xlu0 %1880  ;;  %v1874_v12 = vrot.slane %v5277_v9, 1  ;;  %v5296_v6 = vld [vmem:[%s5360_s17 + $0xc0] sm:$0xfe]  }
  0xe6   : > { %1927 = vst.msk [vmem:[#allocation2 + $0x10] sm:$0xff] %vm1924_vm7, %v1881_v15  ;;  %1184 = vrot.lane.b32.xlu1 %v5262_v17, %s5316_s18  ;;  %v5279_v15 = vld [vmem:[%s5360_s17 + $0x68] ss:$0 sps:$4 sm:$0x11]   ;;  %v5286_v17 = vld [vmem:[%s5360_s17 + $0xc0] sm:$0xff]   ;;  %v2770_v13 = vrot.slane %v5296_v6, 1 }
  0xe7   : > { %1168 = vrot.lane.b32.xlu0 %v5263_v32, %s5316_s18  ;;  %v1875_v11 = vsel %vm927_vm0, %v1873_v10, %v1874_v12  ;;  %v2464_v24 = vshrl.u32 %v5286_v17, 16  ;;  %v2466_v30 = vshll.u32 %v5286_v17, 16  ;;  %306 = vst.msk [vmem:[#allocation2 + $0x28] sm:$0xff] %vm300_vm2, %v5295_v2  ;;  %v5297_v9 = vld [vmem:[%s5360_s17 + $0xc8] ss:$0 sps:$4 sm:$0x11]  }
  0xe8   : > { %v1899_v21 = vpop.permute.xlu1 %1898  ;;  %v5305_v10 = vld [vmem:[%s5360_s17 + $0x48] sm:$0xff]   ;;  %v5298_v17 = vld [vmem:[%s5360_s17 + $0x60] sm:$0xfe]  }
  0xe9   : > { %1936 = vst.msk [vmem:[#allocation2 + $0x58] sm:$0xff] %vm1924_vm7, %v1899_v21  ;;  %v1883_v27 = vpop.permute.xlu0 %1882  ;;  %v1850_v21 = vrot.slane %v5279_v15, 1  ;;  %v2468_v33 = vrot.slane %v2466_v30, 1 }
  0xea   : > { %1928 = vst.msk [vmem:[#allocation2 + $0x18] sm:$0xff] %vm1924_vm7, %v1883_v27  ;;  %1615 = vrot.lane.b32.xlu1 %v1574_v41, %s5319_s21  ;;  %v5281_v27 = vld [vmem:[%s5360_s17 + $0x60] sm:$0xff]  }
  0xeb   : > { %1599 = vrot.lane.b32.xlu0 %v1478_v50, %s5319_s21  ;;  %v1851_v25 = vsel %vm927_vm0, %v1849_v18, %v1850_v21  ;;  %v2469_v41 = vor.u32 %v2468_v33, %v2464_v24  ;;  %307 = vst.msk [vmem:[#allocation2 + $0x30] sm:$0xff] %vm300_vm2, %v5305_v10 }
  0xec   : > { %v2075_v39 = vpop.permute.xlu1 %2074 }
  0xed   : > { %2113 = vst.msk [vmem:[#allocation2 + $0x50] sm:$0xff] %vm2102_vm8, %v2075_v39  ;;  %v2059_v42 = vpop.permute.xlu0 %2058  ;;  %v2372_v39 = vrot.slane %v2370_v63, 1 }
  0xee   : > { %2105 = vst.msk [vmem:[#allocation2 + $0x10] sm:$0xff] %vm2102_vm8, %v2059_v42  ;;  %1617 = vrot.lane.b32.xlu1 %v1586_v55, %s5319_s21  ;;  %v2473_v42 = vrot.slane %v2471_v34, 1  ;;  %v2480_v55 = vrot.slane %v2478_v47, 1 }
  0xef   : > { %1601 = vrot.lane.b32.xlu0 %v1490_v1, %s5319_s21  ;;  %v2373_v48 = vor.u32 %v2372_v39, %v2368_v31  ;;  %v2384_v1 = vrot.slane %v2382_v59, 1  ;;  %v5302_v31 = vld [vmem:[%s5360_s17 + $0x6c] sm:$0xfe]  }
  0xf0   : > { %v2077_v52 = vpop.permute.xlu1 %2076  ;;  %v2481_v60 = vor.u32 %v2480_v55, %v2476_v44  ;;  %v2749_v34 = vrot.slane %v5302_v31, 1 }
  0xf1   : > { %2114 = vst.msk [vmem:[#allocation2 + $0x58] sm:$0xff] %vm2102_vm8, %v2077_v52  ;;  %v2061_v57 = vpop.permute.xlu0 %2060  ;;  %v2474_v52 = vsel %vm493_vm1, %v2469_v41, %v2473_v42  ;;  %v2378_v0 = vsel %vm493_vm1, %v2373_v48, %v2377_v49  ;;  %v2385_v8 = vor.u32 %v2384_v1, %v2380_v58 }
  0xf2   : > { %2106 = vst.msk [vmem:[#allocation2 + $0x18] sm:$0xff] %vm2102_vm8, %v2061_v57  ;;  %1904 = vrot.lane.b32.xlu1 %v1872_v5, %s5320_s22  ;;  %v5293_v57 = vld [vmem:[%s5360_s17 + $0x74] ss:$0 sps:$4 sm:$0x11]  }
  0xf3   : > { %1888 = vrot.lane.b32.xlu0 %v1848_v14, %s5320_s22  ;;  %v2387_v62 = vshll.u32 %v5293_v57, 16  ;;  %v5306_v14 = vld [vmem:[%s5360_s17 + $0xb4] sm:$0xff]  }
  0xf4   : > { %v2508_v3 = vpop.permute.xlu1 %2507  ;;  %316 = vst.msk [vmem:[#allocation2 + $0x78] sm:$0xff] %vm300_vm2, %v5306_v14 }
  0xf5   : > { %2546 = vst.msk [vmem:[#allocation2 + $0x50] sm:$0xff] %vm2535_vm9, %v2508_v3  ;;  %v2492_v7 = vpop.permute.xlu0 %2491  ;;  %v2486_v3 = vsel %vm493_vm1, %v2481_v60, %v2485_v61  ;;  %v2389_v4 = vrot.slane %v2387_v62, 1 }
  0xf6   : > { %2538 = vst.msk [vmem:[#allocation2 + $0x10] sm:$0xff] %vm2535_vm9, %v2492_v7  ;;  %1906 = vrot.lane.b32.xlu1 %v1875_v11, %s5320_s22  ;;  %v5304_v7 = vld [vmem:[%s5360_s17 + $0xa8] sm:$0xff]  }
  0xf7   : > { %1890 = vrot.lane.b32.xlu0 %v1851_v25, %s5320_s22  ;;  %315 = vst.msk [vmem:[#allocation2 + $0x70] sm:$0xff] %vm300_vm2, %v5304_v7  ;;  %v2390_v15 = vsel %vm493_vm1, %v2385_v8, %v2389_v4  ;;  %v5299_v11 = vld [vmem:[%s5360_s17 + $0x68] ss:$0 sps:$4 sm:$0x11]   ;;  %vm4082_vm1 = vcmask 1044484  }
  0xf8   : > { %v2510_v16 = vpop.permute.xlu1 %2509  ;;  %v2747_v24 = vrot.slane %v5299_v11, 1 }
  0xf9   : > { %2547 = vst.msk [vmem:[#allocation2 + $0x58] sm:$0xff] %vm2535_vm9, %v2510_v16  ;;  %v2494_v19 = vpop.permute.xlu0 %2493  ;;  %v2771_v16 = vrot.slane %v5297_v9, 1 }
  0xfa   : > { %2539 = vst.msk [vmem:[#allocation2 + $0x18] sm:$0xff] %vm2535_vm9, %v2494_v19  ;;  %2082 = vrot.lane.b32.xlu1 %v5280_v23, %s5321_s23  ;;  %v2746_v23 = vrot.slane %v5298_v17, 1 }
  0xfb   : > { %2066 = vrot.lane.b32.xlu0 %v5281_v27, %s5321_s23  ;;  %v2772_v21 = vsel %vm927_vm0, %v2770_v13, %v2771_v16  ;;  %v5301_v27 = vld [vmem:[%s5360_s17 + $0xd4] ss:$0 sps:$4 sm:$0x11]  }
  0xfc   : > { %v2797_v26 = vpop.permute.xlu1 %2796  ;;  %v2774_v30 = vrot.slane %v5301_v27, 1 }
  0xfd   : > { %2835 = vst.msk [vmem:[#allocation2 + $0x50] sm:$0xff] %vm2824_vm10, %v2797_v26  ;;  %v2781_v22 = vpop.permute.xlu0 %2780  ;;  %v5300_v26 = vld [vmem:[%s5360_s17 + $0xcc] sm:$0xfe]  }
  0xfe   : > { %2827 = vst.msk [vmem:[#allocation2 + $0x10] sm:$0xff] %vm2824_vm10, %v2781_v22  ;;  %2084 = vrot.lane.b32.xlu1 %v5282_v28, %s5321_s23  ;;  %v5307_v22 = vld [vmem:[%s5360_s17 + $0x54] sm:$0xff]   ;;  %v2748_v28 = vsel %vm927_vm0, %v2746_v23, %v2747_v24  ;;  %v2773_v29 = vrot.slane %v5300_v26, 1 }
  0xff   : > { %2068 = vrot.lane.b32.xlu0 %v5283_v37, %s5321_s23  ;;  %308 = vst.msk [vmem:[#allocation2 + $0x38] sm:$0xff] %vm300_vm2, %v5307_v22  ;;  %vm4085_vm2 = vcmask 1045509  }
 0x100   : > { %v711_v32 = vpop.permute.xlu1 %710  ;;  %v2775_v33 = vsel %vm927_vm0, %v2773_v29, %v2774_v30 }
 0x101   : > { %747 = vst.msk [vmem:[#allocation2 + $0x60] sm:$0xff] %vm734_vm3, %v711_v32  ;;  %v695_v38 = vpop.permute.xlu0 %694  ;;  %v5303_v32 = vld [vmem:[%s5360_s17 + $0x74] ss:$0 sps:$4 sm:$0x11]  }
 0x102   : > { %739 = vst.msk [vmem:[#allocation2 + $0x20] sm:$0xff] %vm734_vm3, %v695_v38  ;;  %2515 = vrot.lane.b32.xlu1 %v2474_v52, %s5322_s24  ;;  %v2750_v36 = vrot.slane %v5303_v32, 1 }
 0x103   : > { %2499 = vrot.lane.b32.xlu0 %v2378_v0, %s5322_s24 }
 0x104   : > { %v2799_v50 = vpop.permute.xlu1 %2798  ;;  %v2851_v51 = vld [vmem:[#allocation2 + $0x50] sm:$0xff]  ;;  %v2751_v38 = vsel %vm927_vm0, %v2749_v34, %v2750_v36  ;;  %vm4079_vm0 = vcmask 1043459  }
 0x105   : > { %2836 = vst.msk [vmem:[#allocation2 + $0x58] sm:$0xff] %vm2824_vm10, %v2799_v50  ;;  %v2783_v53 = vpop.permute.xlu0 %2782  ;;  %v2843_v54 = vld [vmem:[#allocation2 + $0x10] sm:$0xff]  ;;  %5031 = vmatprep.mubr.msk.bf16.mxu1 %vm2879_vm11, %v2851_v51 }
 0x106   : > { %2828 = vst.msk [vmem:[#allocation2 + $0x18] sm:$0xff] %vm2824_vm10, %v2783_v53  ;;  %5015 = vmatprep.mubr.msk.bf16.mxu0 %vm2879_vm11, %v2843_v54  ;;  %2517 = vrot.lane.b32.xlu1 %v2486_v3, %s5322_s24 }
 0x107   : > { %2501 = vrot.lane.b32.xlu0 %v2390_v15, %s5322_s24 }
 0x108   : > { %v713_v5 = vpop.permute.xlu1 %712 }
 0x109   : > { %748 = vst.msk [vmem:[#allocation2 + $0x68] sm:$0xff] %vm734_vm3, %v713_v5  ;;  %v697_v12 = vpop.permute.xlu0 %696 }
 0x10a   : > { %740 = vst.msk [vmem:[#allocation2 + $0x28] sm:$0xff] %vm734_vm3, %v697_v12  ;;  %2804 = vrot.lane.b32.xlu1 %v2772_v21, %s5323_s25 }
 0x10b   : > { %2788 = vrot.lane.b32.xlu0 %v2748_v28, %s5323_s25 }
 0x10c   : > { %v1001_v18 = vpop.permute.xlu1 %1000  ;;  %v2852_v20 = vld [vmem:[#allocation2 + $0x58] sm:$0xff] }
 0x10d   : > { %v2844_v19 = vld [vmem:[#allocation2 + $0x18] sm:$0xff]  ;;  %1037 = vst.msk [vmem:[#allocation2 + $0x60] sm:$0xff] %vm1024_vm4, %v1001_v18  ;;  %5032 = vmatmul.mubr.msk.bf16.gmra.mrb[4].mxu1 %vm2879_vm11, %v2852_v20  ;;  %v985_v25 = vpop.permute.xlu0 %984 }
 0x10e   : > { %5016 = vmatmul.mubr.msk.bf16.gmra.mrb[4].mxu0 %vm2879_vm11, %v2844_v19  ;;  %1029 = vst.msk [vmem:[#allocation2 + $0x20] sm:$0xff] %vm1024_vm4, %v985_v25  ;;  %2806 = vrot.lane.b32.xlu1 %v2775_v33, %s5323_s25 }
 0x10f   : > { %2790 = vrot.lane.b32.xlu0 %v2751_v38, %s5323_s25  ;;  %v5325_v38 = vmov 1983009808  }
 0x110   : > { %v1003_v63 = vpop.permute.xlu1 %1002 }
 0x111   : > { %1038 = vst.msk [vmem:[#allocation2 + $0x68] sm:$0xff] %vm1024_vm4, %v1003_v63  ;;  %v987_v35 = vpop.permute.xlu0 %986 }
 0x112   : > { %1030 = vst.msk [vmem:[#allocation2 + $0x28] sm:$0xff] %vm1024_vm4, %v987_v35 }
 0x114   : > { %v1179_v37 = vpop.permute.xlu1 %1178 }
 0x115   : > { %1215 = vst.msk [vmem:[#allocation2 + $0x60] sm:$0xff] %vm1202_vm5, %v1179_v37  ;;  %v1163_v39 = vpop.permute.xlu0 %1162 }
 0x116   : > { %1207 = vst.msk [vmem:[#allocation2 + $0x20] sm:$0xff] %vm1202_vm5, %v1163_v39  ;;  %v3162_v39 = vunpack.c.l.s4 %v5325_v38 }
 0x118   : > { %v1181_v40 = vpop.permute.xlu1 %1180 }
 0x119   : > { %1216 = vst.msk [vmem:[#allocation2 + $0x68] sm:$0xff] %vm1202_vm5, %v1181_v40  ;;  %v1165_v41 = vpop.permute.xlu0 %1164  ;;  %v3164_v40 = vlaneseq }
 0x11a   : > { %1208 = vst.msk [vmem:[#allocation2 + $0x28] sm:$0xff] %vm1202_vm5, %v1165_v41  ;;  %v6004_v41 = vld [vmem:[%s6187_s2] ss:$0 sm:$0xff] }
 0x11c   : > { %v1612_v42 = vpop.permute.xlu1 %1611 }
 0x11d   : > { %1648 = vst.msk [vmem:[#allocation2 + $0x60] sm:$0xff] %vm1635_vm6, %v1612_v42  ;;  %v1596_v43 = vpop.permute.xlu0 %1595  ;;  %v3163_v42 = vunpack.c.0.s8 %v3162_v39 }
 0x11e   : > { %1640 = vst.msk [vmem:[#allocation2 + $0x20] sm:$0xff] %vm1635_vm6, %v1596_v43  ;;  %v3165_v43 = vshrl.u32 %v3164_v40, 7 }
 0x120   : > { %v1614_v44 = vpop.permute.xlu1 %1613 }
 0x121   : > { %1649 = vst.msk [vmem:[#allocation2 + $0x68] sm:$0xff] %vm1635_vm6, %v1614_v44  ;;  %v1598_v45 = vpop.permute.xlu0 %1597 }
 0x122   : > { %1641 = vst.msk [vmem:[#allocation2 + $0x28] sm:$0xff] %vm1635_vm6, %v1598_v45 }
 0x124   : > { %v1901_v46 = vpop.permute.xlu1 %1900 }
 0x125   : > { %1937 = vst.msk [vmem:[#allocation2 + $0x60] sm:$0xff] %vm1924_vm7, %v1901_v46  ;;  %v1885_v47 = vpop.permute.xlu0 %1884 }
 0x126   : > { %1929 = vst.msk [vmem:[#allocation2 + $0x20] sm:$0xff] %vm1924_vm7, %v1885_v47 }
 0x128   : > { %v1903_v48 = vpop.permute.xlu1 %1902 }
 0x129   : > { %1938 = vst.msk [vmem:[#allocation2 + $0x68] sm:$0xff] %vm1924_vm7, %v1903_v48  ;;  %v1887_v49 = vpop.permute.xlu0 %1886 }
 0x12a   : > { %1930 = vst.msk [vmem:[#allocation2 + $0x28] sm:$0xff] %vm1924_vm7, %v1887_v49 }
 0x12c   : > { %v2079_v50 = vpop.permute.xlu1 %2078 }
 0x12d   : > { %2115 = vst.msk [vmem:[#allocation2 + $0x60] sm:$0xff] %vm2102_vm8, %v2079_v50  ;;  %v2063_v51 = vpop.permute.xlu0 %2062 }
 0x12e   : > { %2107 = vst.msk [vmem:[#allocation2 + $0x20] sm:$0xff] %vm2102_vm8, %v2063_v51  ;;  %v6009_v51 = vsub.s32 %v3163_v42, %v3165_v43 }
 0x130   : > { %v2081_v52 = vpop.permute.xlu1 %2080 }
 0x131   : > { %2116 = vst.msk [vmem:[#allocation2 + $0x68] sm:$0xff] %vm2102_vm8, %v2081_v52  ;;  %v2065_v53 = vpop.permute.xlu0 %2064 }
 0x132   : > { %2108 = vst.msk [vmem:[#allocation2 + $0x28] sm:$0xff] %vm2102_vm8, %v2065_v53 }
 0x134   : > { %v2512_v54 = vpop.permute.xlu1 %2511 }
 0x135   : > { %2548 = vst.msk [vmem:[#allocation2 + $0x60] sm:$0xff] %vm2535_vm9, %v2512_v54  ;;  %v2496_v55 = vpop.permute.xlu0 %2495 }
 0x136   : > { %2540 = vst.msk [vmem:[#allocation2 + $0x20] sm:$0xff] %vm2535_vm9, %v2496_v55 }
 0x138   : > { %v2514_v56 = vpop.permute.xlu1 %2513 }
 0x139   : > { %2549 = vst.msk [vmem:[#allocation2 + $0x68] sm:$0xff] %vm2535_vm9, %v2514_v56  ;;  %v2498_v57 = vpop.permute.xlu0 %2497 }
 0x13a   : > { %2541 = vst.msk [vmem:[#allocation2 + $0x28] sm:$0xff] %vm2535_vm9, %v2498_v57 }
 0x13c   : > { %v2801_v58 = vpop.permute.xlu1 %2800 }
 0x13d   : > { %2837 = vst.msk [vmem:[#allocation2 + $0x60] sm:$0xff] %vm2824_vm10, %v2801_v58  ;;  %v2785_v59 = vpop.permute.xlu0 %2784 }
 0x13e   : > { %2829 = vst.msk [vmem:[#allocation2 + $0x20] sm:$0xff] %vm2824_vm10, %v2785_v59 }
 0x140   : > { %v715_v60 = vpop.permute.xlu1 %714 }
 0x141   : > { %749 = vst.msk [vmem:[#allocation2 + $0x70] sm:$0xff] %vm734_vm3, %v715_v60  ;;  %v699_v62 = vpop.permute.xlu0 %698 }
 0x142   : > { %741 = vst.msk [vmem:[#allocation2 + $0x30] sm:$0xff] %vm734_vm3, %v699_v62 }
 0x144   : > { %v2853_v61 = vld [vmem:[#allocation2 + $0x60] sm:$0xff]  ;;  %v2803_v0 = vpop.permute.xlu1 %2802 }
 0x145   : > { %5035 = vmatprep.mubr.msk.bf16.mxu1 %vm2879_vm11, %v2853_v61  ;;  %2838 = vst.msk [vmem:[#allocation2 + $0x68] sm:$0xff] %vm2824_vm10, %v2803_v0  ;;  %v2845_v1 = vld [vmem:[#allocation2 + $0x20] sm:$0xff]  ;;  %v2787_v2 = vpop.permute.xlu0 %2786 }
 0x146   : > { %5019 = vmatprep.mubr.msk.bf16.mxu0 %vm2879_vm11, %v2845_v1  ;;  %2830 = vst.msk [vmem:[#allocation2 + $0x28] sm:$0xff] %vm2824_vm10, %v2787_v2 }
 0x148   : > { %v717_v3 = vpop.permute.xlu1 %716 }
 0x149   : > { %750 = vst.msk [vmem:[#allocation2 + $0x78] sm:$0xff] %vm734_vm3, %v717_v3  ;;  %v701_v5 = vpop.permute.xlu0 %700 }
 0x14a   : > { %742 = vst.msk [vmem:[#allocation2 + $0x38] sm:$0xff] %vm734_vm3, %v701_v5  ;;  %vm4088_vm3 = vcmask 1046534  }
 0x14c   : > { %v2854_v4 = vld [vmem:[#allocation2 + $0x68] sm:$0xff]  ;;  %v1005_v6 = vpop.permute.xlu1 %1004 }
 0x14d   : > { %5036 = vmatmul.mubr.msk.bf16.gmra.mrb[8].mxu1 %vm2879_vm11, %v2854_v4  ;;  %1039 = vst.msk [vmem:[#allocation2 + $0x70] sm:$0xff] %vm1024_vm4, %v1005_v6  ;;  %v2846_v7 = vld [vmem:[#allocation2 + $0x28] sm:$0xff]  ;;  %v989_v8 = vpop.permute.xlu0 %988 }
 0x14e   : > { %5020 = vmatmul.mubr.msk.bf16.gmra.mrb[8].mxu0 %vm2879_vm11, %v2846_v7  ;;  %1031 = vst.msk [vmem:[#allocation2 + $0x30] sm:$0xff] %vm1024_vm4, %v989_v8 }
 0x150   : > { %v1007_v9 = vpop.permute.xlu1 %1006 }
 0x151   : > { %1040 = vst.msk [vmem:[#allocation2 + $0x78] sm:$0xff] %vm1024_vm4, %v1007_v9  ;;  %v991_v10 = vpop.permute.xlu0 %990 }
 0x152   : > { %1032 = vst.msk [vmem:[#allocation2 + $0x38] sm:$0xff] %vm1024_vm4, %v991_v10  ;;  %vm4091_vm4 = vcmask 1047559  }
 0x154   : > { %v1183_v12 = vpop.permute.xlu1 %1182 }
 0x155   : > { %1217 = vst.msk [vmem:[#allocation2 + $0x70] sm:$0xff] %vm1202_vm5, %v1183_v12  ;;  %v1167_v13 = vpop.permute.xlu0 %1166 }
 0x156   : > { %1209 = vst.msk [vmem:[#allocation2 + $0x30] sm:$0xff] %vm1202_vm5, %v1167_v13 }
 0x158   : > { %v1185_v14 = vpop.permute.xlu1 %1184 }
 0x159   : > { %1218 = vst.msk [vmem:[#allocation2 + $0x78] sm:$0xff] %vm1202_vm5, %v1185_v14  ;;  %v1169_v15 = vpop.permute.xlu0 %1168 }
 0x15a   : > { %1210 = vst.msk [vmem:[#allocation2 + $0x38] sm:$0xff] %vm1202_vm5, %v1169_v15  ;;  %vm4207_vm5 = vcmask 257024  }
 0x15c   : > { %v1616_v16 = vpop.permute.xlu1 %1615 }
 0x15d   : > { %1650 = vst.msk [vmem:[#allocation2 + $0x70] sm:$0xff] %vm1635_vm6, %v1616_v16  ;;  %v1600_v17 = vpop.permute.xlu0 %1599 }
 0x15e   : > { %1642 = vst.msk [vmem:[#allocation2 + $0x30] sm:$0xff] %vm1635_vm6, %v1600_v17 }
 0x160   : > { %v1618_v11 = vpop.permute.xlu1 %1617 }
 0x161   : > { %1651 = vst.msk [vmem:[#allocation2 + $0x78] sm:$0xff] %vm1635_vm6, %v1618_v11  ;;  %v1602_v18 = vpop.permute.xlu0 %1601 }
 0x162   : > { %1643 = vst.msk [vmem:[#allocation2 + $0x38] sm:$0xff] %vm1635_vm6, %v1602_v18 }
 0x164   : > { %v1905_v19 = vpop.permute.xlu1 %1904 }
 0x165   : > { %1939 = vst.msk [vmem:[#allocation2 + $0x70] sm:$0xff] %vm1924_vm7, %v1905_v19  ;;  %v1889_v20 = vpop.permute.xlu0 %1888 }
 0x166   : > { %1931 = vst.msk [vmem:[#allocation2 + $0x30] sm:$0xff] %vm1924_vm7, %v1889_v20 }
 0x168   : > { %v1907_v21 = vpop.permute.xlu1 %1906 }
 0x169   : > { %1940 = vst.msk [vmem:[#allocation2 + $0x78] sm:$0xff] %vm1924_vm7, %v1907_v21  ;;  %v1891_v23 = vpop.permute.xlu0 %1890 }
 0x16a   : > { %1932 = vst.msk [vmem:[#allocation2 + $0x38] sm:$0xff] %vm1924_vm7, %v1891_v23 }
 0x16c   : > { %v2083_v24 = vpop.permute.xlu1 %2082 }
 0x16d   : > { %2117 = vst.msk [vmem:[#allocation2 + $0x70] sm:$0xff] %vm2102_vm8, %v2083_v24  ;;  %v2067_v25 = vpop.permute.xlu0 %2066 }
 0x16e   : > { %2109 = vst.msk [vmem:[#allocation2 + $0x30] sm:$0xff] %vm2102_vm8, %v2067_v25 }
 0x170   : > { %v2085_v26 = vpop.permute.xlu1 %2084 }
 0x171   : > { %2118 = vst.msk [vmem:[#allocation2 + $0x78] sm:$0xff] %vm2102_vm8, %v2085_v26  ;;  %v2069_v27 = vpop.permute.xlu0 %2068 }
 0x172   : > { %2110 = vst.msk [vmem:[#allocation2 + $0x38] sm:$0xff] %vm2102_vm8, %v2069_v27 }
 0x174   : > { %v2516_v22 = vpop.permute.xlu1 %2515 }
 0x175   : > { %2550 = vst.msk [vmem:[#allocation2 + $0x70] sm:$0xff] %vm2535_vm9, %v2516_v22  ;;  %v2500_v28 = vpop.permute.xlu0 %2499 }
 0x176   : > { %2542 = vst.msk [vmem:[#allocation2 + $0x30] sm:$0xff] %vm2535_vm9, %v2500_v28 }
 0x178   : > { %v2518_v29 = vpop.permute.xlu1 %2517 }
 0x179   : > { %2551 = vst.msk [vmem:[#allocation2 + $0x78] sm:$0xff] %vm2535_vm9, %v2518_v29  ;;  %v2502_v30 = vpop.permute.xlu0 %2501 }
 0x17a   : > { %2543 = vst.msk [vmem:[#allocation2 + $0x38] sm:$0xff] %vm2535_vm9, %v2502_v30 }
 0x17c   : > { %v2805_v31 = vpop.permute.xlu1 %2804 }
 0x17d   : > { %2839 = vst.msk [vmem:[#allocation2 + $0x70] sm:$0xff] %vm2824_vm10, %v2805_v31  ;;  %v2789_v63 = vpop.permute.xlu0 %2788 }
 0x17e   : > { %2831 = vst.msk [vmem:[#allocation2 + $0x30] sm:$0xff] %vm2824_vm10, %v2789_v63 }
 0x180   : > { %v2807_v32 = vpop.permute.xlu1 %2806 }
 0x181   : > { %2840 = vst.msk [vmem:[#allocation2 + $0x78] sm:$0xff] %vm2824_vm10, %v2807_v32  ;;  %v2791_v33 = vpop.permute.xlu0 %2790 }
 0x182   : > { %2832 = vst.msk [vmem:[#allocation2 + $0x38] sm:$0xff] %vm2824_vm10, %v2791_v33 }
 0x184   : > { %v2855_v34 = vld [vmem:[#allocation2 + $0x70] sm:$0xff] }
 0x185   : > { %5039 = vmatprep.mubr.msk.bf16.mxu1 %vm2879_vm11, %v2855_v34  ;;  %v2847_v35 = vld [vmem:[#allocation2 + $0x30] sm:$0xff] }
 0x186   : > { %5023 = vmatprep.mubr.msk.bf16.mxu0 %vm2879_vm11, %v2847_v35 }
 0x188   : > { %v2856_v36 = vld [vmem:[#allocation2 + $0x78] sm:$0xff] }
 0x189   : > { %5040 = vmatmul.mubr.msk.bf16.gmra.mrb[12].mxu1 %vm2879_vm11, %v2856_v36  ;;  %v2848_v37 = vld [vmem:[#allocation2 + $0x38] sm:$0xff] }
 0x18a   : > { %5024 = vmatmul.mubr.msk.bf16.gmra.mrb[12].mxu0 %vm2879_vm11, %v2848_v37 }
 0x1a0   : > { %v5029_v45 = vpop.f32.mrb[0].mxu1 }
 0x1a1   : > { %v5013_v44 = vpop.f32.mrb[0].mxu0  ;;  %v3042_v47 = vadd.f32 %v5029_v45, %v6004_v41  ;;  %v3033_v49 = vpop.f32.mrb[1].mxu1 }
 0x1a2   : > { %v2978_v46 = vadd.f32 %v5013_v44, %v6004_v41  ;;  %v2969_v48 = vpop.f32.mrb[1].mxu0  ;;  %v3034_v52 = vadd.f32 %v6004_v41, %v3033_v49  ;;  %v5030_v54 = vpop.f32.mrb[2].mxu1 }
 0x1a3   : > { %v2970_v50 = vadd.f32 %v6004_v41, %v2969_v48  ;;  %v5014_v53 = vpop.f32.mrb[2].mxu0  ;;  %v3114_v56 = vmax.f32 %v3042_v47, 0.0  ;;  %v3045_v58 = vadd.f32 %v5030_v54, %v6004_v41  ;;  %v3036_v60 = vpop.f32.mrb[3].mxu1 }
 0x1a4   : > { %v3098_v55 = vmax.f32 %v2978_v46, 0.0  ;;  %v2981_v57 = vadd.f32 %v5014_v53, %v6004_v41  ;;  %v2972_v59 = vpop.f32.mrb[3].mxu0  ;;  %v3112_v62 = vmax.f32 %v3034_v52, 0.0  ;;  %v3037_v1 = vadd.f32 %v6004_v41, %v3036_v60 }
 0x1a5   : > { %v3096_v61 = vmax.f32 %v2970_v50, 0.0  ;;  %v2973_v0 = vadd.f32 %v6004_v41, %v2972_v59  ;;  %v3115_v3 = vmax.f32 %v3045_v58, 0.0 }
 0x1a6   : > { %v3099_v2 = vmax.f32 %v2981_v57, 0.0  ;;  %v3136_v5 = vmax.f32 %v3112_v62, %v3114_v56  ;;  %v3113_v7 = vmax.f32 %v3037_v1, 0.0 }
 0x1a7   : > { %v3128_v4 = vmax.f32 %v3096_v61, %v3098_v55  ;;  %v3097_v6 = vmax.f32 %v2973_v0, 0.0 }
 0x1a8   : > { %v3296_v10 = vcombine.high %v3136_v5, %v3136_v5  ;;  %v3303_v12 = vrot.slane %v3136_v5, %v6009_v51  ;;  %v6018_v14 = vmax.f32 %v3113_v7, %v3115_v3 }
 0x1a9   : > { %v3160_v8 = vcombine.high %v3128_v4, %v3128_v4  ;;  %v3167_v9 = vrot.slane %v3128_v4, %v6009_v51  ;;  %v3129_v13 = vmax.f32 %v3097_v6, %v3099_v2 }
 0x1aa   : > { %v3310_v11 = vrot.slane %v3296_v10, %v6009_v51  ;;  %v3311_v18 = vcombine.high %v3303_v12, %v3303_v12  ;;  %v4826_v19 = vrot.slane %v3303_v12, 9  ;;  %v3313_v10 = vcombine.high %v6018_v14, %v6018_v14 }
 0x1ab   : > { %v3174_v15 = vrot.slane %v3160_v8, %v6009_v51  ;;  %v3175_v16 = vcombine.high %v3167_v9, %v3167_v9  ;;  %v4794_v17 = vrot.slane %v3167_v9, 9  ;;  %v3177_v31 = vcombine.high %v3129_v13, %v3129_v13 }
 0x1ac   : > { %v3312_v25 = vcombine.high %v3310_v11, %v3310_v11  ;;  %v4827_v26 = vrot.slane %v3311_v18, 9  ;;  %v4828_v27 = vrot.slane %v3310_v11, 9  ;;  %v3720_v22 = vmax.f32 %v3303_v12, %v4826_v19 }
 0x1ad   : > { %v3176_v20 = vcombine.high %v3174_v15, %v3174_v15  ;;  %v4795_v21 = vrot.slane %v3175_v16, 9  ;;  %v4796_v23 = vrot.slane %v3174_v15, 9  ;;  %v3688_v24 = vmax.f32 %v3167_v9, %v4794_v17 }
 0x1ae   : > { %v4829_v63 = vrot.slane %v3312_v25, 9  ;;  %v3721_v32 = vmax.f32 %v3311_v18, %v4827_v26  ;;  %v3722_v33 = vmax.f32 %v3310_v11, %v4828_v27  ;;  %v3184_v34 = vrot.slane %v3129_v13, %v6009_v51 }
 0x1af   : > { %v4797_v28 = vrot.slane %v3176_v20, 9  ;;  %v3689_v29 = vmax.f32 %v3175_v16, %v4795_v21  ;;  %v3690_v30 = vmax.f32 %v3174_v15, %v4796_v23  ;;  %v4925_v36 = vpack.c.bf16 %v3688_v24, %v3688_v24 }
 0x1b0   : > { %v3723_v39 = vmax.f32 %v3312_v25, %v4829_v63  ;;  %v4957_v40 = vpack.c.bf16 %v3720_v22, %v3720_v22  ;;  %v4958_v42 = vpack.c.bf16 %v3721_v32, %v3721_v32  ;;  %v4959_v43 = vpack.c.bf16 %v3722_v33, %v3722_v33 }
 0x1b1   : > { %v3691_v35 = vmax.f32 %v3176_v20, %v4797_v28  ;;  %v4926_v37 = vpack.c.bf16 %v3689_v29, %v3689_v29  ;;  %v4927_v38 = vpack.c.bf16 %v3690_v30, %v3690_v30  ;;  %v3191_v47 = vrot.slane %v3177_v31, %v6009_v51 }
 0x1b2   : > { %v4960_v48 = vpack.c.bf16 %v3723_v39, %v3723_v39  ;;  %v4041_v49 = vunpack.c.l.b16 %v4958_v42  ;;  %v4042_v50 = vunpack.c.l.b16 %v4959_v43  ;;  %v3192_v52 = vcombine.high %v3184_v34, %v3184_v34 }
 0x1b3   : > { %v4928_v44 = vpack.c.bf16 %v3691_v35, %v3691_v35  ;;  %v4009_v45 = vunpack.c.l.b16 %v4926_v37  ;;  %v4010_v46 = vunpack.c.l.b16 %v4927_v38  ;;  %v4008_v53 = vunpack.c.l.b16 %v4925_v36 }
 0x1b4   : > { %v3193_v56 = vcombine.high %v3191_v47, %v3191_v47  ;;  %v4798_v58 = vrot.slane %v3184_v34, 9  ;;  %v4135_v60 = vrot.slane %v4041_v49, 7  ;;  %v4799_v61 = vrot.slane %v3192_v52, 9 }
 0x1b5   : > { %v4011_v54 = vunpack.c.l.b16 %v4928_v44  ;;  %v4072_v55 = vrot.slane %v4009_v45, 7  ;;  %v4075_v57 = vrot.slane %v4010_v46, 6  ;;  %v4800_v62 = vrot.slane %v3191_v47, 9 }
 0x1b6   : > { %v4040_v0 = vunpack.c.l.b16 %v4957_v40  ;;  %v4043_v1 = vunpack.c.l.b16 %v4960_v48  ;;  %v4137_v2 = vrot.slane %v4042_v50, 6  ;;  %v4801_v3 = vrot.slane %v3193_v56, 9 }
 0x1b7   : > { %v4074_v59 = vsel %vm4073_vm14, %v4072_v55, %v4008_v53  ;;  %v4078_v4 = vrot.slane %v4011_v54, 5  ;;  %v3692_v5 = vmax.f32 %v3184_v34, %v4798_v58  ;;  %v3693_v6 = vmax.f32 %v3192_v52, %v4799_v61 }
 0x1b8   : > { %v3694_v7 = vmax.f32 %v3191_v47, %v4800_v62  ;;  %v4077_v8 = vsel %vm4076_vm15, %v4075_v57, %v4074_v59  ;;  %v3695_v9 = vmax.f32 %v3193_v56, %v4801_v3  ;;  %v3320_v12 = vrot.slane %v6018_v14, %v6009_v51 }
 0x1b9   : > { %v4136_v13 = vsel %vm4073_vm14, %v4135_v60, %v4040_v0  ;;  %v4929_v15 = vpack.c.bf16 %v3692_v5, %v3692_v5  ;;  %v4930_v16 = vpack.c.bf16 %v3693_v6, %v3693_v6  ;;  %v3327_v18 = vrot.slane %v3313_v10, %v6009_v51 }
 0x1ba   : > { %v4931_v17 = vpack.c.bf16 %v3694_v7, %v3694_v7  ;;  %v4932_v11 = vpack.c.bf16 %v3695_v9, %v3695_v9  ;;  %v3328_v19 = vcombine.high %v3320_v12, %v3320_v12  ;;  %v4830_v20 = vrot.slane %v3320_v12, 9 }
 0x1bb   : > { %v4012_v21 = vunpack.c.l.b16 %v4929_v15  ;;  %v4013_v23 = vunpack.c.l.b16 %v4930_v16  ;;  %v4080_v25 = vsel %vm4079_vm0, %v4078_v4, %v4077_v8  ;;  %v3329_v27 = vcombine.high %v3327_v18, %v3327_v18 }
 0x1bc   : > { %v4014_v24 = vunpack.c.l.b16 %v4931_v17  ;;  %v4015_v26 = vunpack.c.l.b16 %v4932_v11  ;;  %v4831_v22 = vrot.slane %v3328_v19, 9  ;;  %v4832_v14 = vrot.slane %v3327_v18, 9 }
 0x1bd   : > { %v4138_v28 = vsel %vm4076_vm15, %v4137_v2, %v4136_v13  ;;  %v4139_v29 = vrot.slane %v4043_v1, 5  ;;  %v4081_v30 = vrot.slane %v4012_v21, 4  ;;  %v3724_v31 = vmax.f32 %v3320_v12, %v4830_v20 }
 0x1be   : > { %v4084_v63 = vrot.slane %v4013_v23, 3  ;;  %v4833_v32 = vrot.slane %v3329_v27, 9  ;;  %v3725_v33 = vmax.f32 %v3328_v19, %v4831_v22  ;;  %v3726_v34 = vmax.f32 %v3327_v18, %v4832_v14 }
 0x1bf   : > { %v4083_v35 = vsel %vm4082_vm1, %v4081_v30, %v4080_v25  ;;  %v4087_v36 = vrot.slane %v4014_v24, 2  ;;  %v4090_v37 = vrot.slane %v4015_v26, 1  ;;  %v4961_v38 = vpack.c.bf16 %v3724_v31, %v3724_v31 }
 0x1c0   : > { %v4086_v39 = vsel %vm4085_vm2, %v4084_v63, %v4083_v35  ;;  %v3727_v40 = vmax.f32 %v3329_v27, %v4833_v32  ;;  %v4962_v42 = vpack.c.bf16 %v3725_v33, %v3725_v33  ;;  %v4963_v43 = vpack.c.bf16 %v3726_v34, %v3726_v34 }
 0x1c1   : > { %v4089_v44 = vsel %vm4088_vm3, %v4087_v36, %v4086_v39  ;;  %v4044_v45 = vunpack.c.l.b16 %v4961_v38  ;;  %v4140_v46 = vsel %vm4079_vm0, %v4139_v29, %v4138_v28 }
 0x1c2   : > { %v4092_v47 = vsel %vm4091_vm4, %v4090_v37, %v4089_v44  ;;  %v4964_v48 = vpack.c.bf16 %v3727_v40, %v3727_v40  ;;  %v4045_v49 = vunpack.c.l.b16 %v4962_v42  ;;  %v4046_v50 = vunpack.c.l.b16 %v4963_v43 }
 0x1c3   : > { %v4191_v52 = vpack.c.b16 %v4092_v47, %v4092_v47  ;;  %v4141_v53 = vrot.slane %v4044_v45, 4 }
 0x1c4   : > { %v4047_v54 = vunpack.c.l.b16 %v4964_v48  ;;  %v4143_v55 = vrot.slane %v4045_v49, 3  ;;  %v4145_v57 = vrot.slane %v4046_v50, 2 }
 0x1c5   : > { %4208 = vst.msk [vmem:[%s6042_s8] sm:$0xf] %vm4207_vm5, %v4191_v52  ;;  %v4142_v56 = vsel %vm4082_vm1, %v4141_v53, %v4140_v46 }
 0x1c6   : > { %v4144_v58 = vsel %vm4085_vm2, %v4143_v55, %v4142_v56  ;;  %v4147_v59 = vrot.slane %v4047_v54, 1 }
 0x1c7   : > { %v4146_v60 = vsel %vm4088_vm3, %v4145_v57, %v4144_v58 }
 0x1c8   : > { %v4148_v61 = vsel %vm4091_vm4, %v4147_v59, %v4146_v60 }
 0x1c9   : > { %v4195_v62 = vpack.c.b16 %v4148_v61, %v4148_v61 }
 0x1cb   : > { %4212 = vst.msk [vmem:[%s6042_s8 + $0x10] sm:$0xf] %vm4207_vm5, %v4195_v62 }
 0x1e0   : > { %v5033_v1 = vpop.f32.mrb[4].mxu1 }
 0x1e1   : > { %v5017_v0 = vpop.f32.mrb[4].mxu0  ;;  %v3058_v3 = vadd.f32 %v5033_v1, %v6004_v41  ;;  %v3049_v5 = vpop.f32.mrb[5].mxu1 }
 0x1e2   : > { %v2994_v2 = vadd.f32 %v5017_v0, %v6004_v41  ;;  %v2985_v4 = vpop.f32.mrb[5].mxu0  ;;  %v3050_v7 = vadd.f32 %v6004_v41, %v3049_v5  ;;  %v5034_v9 = vpop.f32.mrb[6].mxu1 }
 0x1e3   : > { %v2986_v6 = vadd.f32 %v6004_v41, %v2985_v4  ;;  %v5018_v8 = vpop.f32.mrb[6].mxu0  ;;  %v3118_v12 = vmax.f32 %v3058_v3, 0.0  ;;  %v3061_v15 = vadd.f32 %v5034_v9, %v6004_v41  ;;  %v3052_v17 = vpop.f32.mrb[7].mxu1 }
 0x1e4   : > { %v3102_v10 = vmax.f32 %v2994_v2, 0.0  ;;  %v2997_v13 = vadd.f32 %v5018_v8, %v6004_v41  ;;  %v2988_v16 = vpop.f32.mrb[7].mxu0  ;;  %v3116_v18 = vmax.f32 %v3050_v7, 0.0  ;;  %v3053_v20 = vadd.f32 %v6004_v41, %v3052_v17 }
 0x1e5   : > { %v3100_v11 = vmax.f32 %v2986_v6, 0.0  ;;  %v2989_v19 = vadd.f32 %v6004_v41, %v2988_v16  ;;  %v3119_v23 = vmax.f32 %v3061_v15, 0.0 }
 0x1e6   : > { %v3103_v21 = vmax.f32 %v2997_v13, 0.0  ;;  %v3138_v25 = vmax.f32 %v3116_v18, %v3118_v12  ;;  %v3117_v27 = vmax.f32 %v3053_v20, 0.0 }
 0x1e7   : > { %v3130_v24 = vmax.f32 %v3100_v11, %v3102_v10  ;;  %v3101_v26 = vmax.f32 %v2989_v19, 0.0 }
 0x1e8   : > { %v3330_v28 = vcombine.high %v3138_v25, %v3138_v25  ;;  %v3337_v29 = vrot.slane %v3138_v25, %v6009_v51  ;;  %v6063_v31 = vmax.f32 %v3117_v27, %v3119_v23 }
 0x1e9   : > { %v3194_v22 = vcombine.high %v3130_v24, %v3130_v24  ;;  %v3201_v14 = vrot.slane %v3130_v24, %v6009_v51  ;;  %v3131_v30 = vmax.f32 %v3101_v26, %v3103_v21 }
 0x1ea   : > { %v3344_v34 = vrot.slane %v3330_v28, %v6009_v51  ;;  %v3345_v35 = vcombine.high %v3337_v29, %v3337_v29  ;;  %v4834_v36 = vrot.slane %v3337_v29, 9  ;;  %v3347_v28 = vcombine.high %v6063_v31, %v6063_v31 }
 0x1eb   : > { %v3208_v63 = vrot.slane %v3194_v22, %v6009_v51  ;;  %v3209_v32 = vcombine.high %v3201_v14, %v3201_v14  ;;  %v4802_v33 = vrot.slane %v3201_v14, 9  ;;  %v3211_v49 = vcombine.high %v3131_v30, %v3131_v30 }
 0x1ec   : > { %v3346_v42 = vcombine.high %v3344_v34, %v3344_v34  ;;  %v4835_v43 = vrot.slane %v3345_v35, 9  ;;  %v4836_v44 = vrot.slane %v3344_v34, 9  ;;  %v3728_v45 = vmax.f32 %v3337_v29, %v4834_v36 }
 0x1ed   : > { %v3210_v37 = vcombine.high %v3208_v63, %v3208_v63  ;;  %v4803_v38 = vrot.slane %v3209_v32, 9  ;;  %v4804_v39 = vrot.slane %v3208_v63, 9  ;;  %v3696_v40 = vmax.f32 %v3201_v14, %v4802_v33 }
 0x1ee   : > { %v4837_v50 = vrot.slane %v3346_v42, 9  ;;  %v3729_v52 = vmax.f32 %v3345_v35, %v4835_v43  ;;  %v3730_v53 = vmax.f32 %v3344_v34, %v4836_v44  ;;  %v3218_v54 = vrot.slane %v3131_v30, %v6009_v51 }
 0x1ef   : > { %v4805_v46 = vrot.slane %v3210_v37, 9  ;;  %v3697_v47 = vmax.f32 %v3209_v32, %v4803_v38  ;;  %v3698_v48 = vmax.f32 %v3208_v63, %v4804_v39  ;;  %v4933_v56 = vpack.c.bf16 %v3696_v40, %v3696_v40 }
 0x1f0   : > { %v3731_v59 = vmax.f32 %v3346_v42, %v4837_v50  ;;  %v4965_v60 = vpack.c.bf16 %v3728_v45, %v3728_v45  ;;  %v4966_v61 = vpack.c.bf16 %v3729_v52, %v3729_v52  ;;  %v4967_v62 = vpack.c.bf16 %v3730_v53, %v3730_v53 }
 0x1f1   : > { %v3699_v55 = vmax.f32 %v3210_v37, %v4805_v46  ;;  %v4934_v57 = vpack.c.bf16 %v3697_v47, %v3697_v47  ;;  %v4935_v58 = vpack.c.bf16 %v3698_v48, %v3698_v48  ;;  %v3225_v3 = vrot.slane %v3211_v49, %v6009_v51 }
 0x1f2   : > { %v4968_v4 = vpack.c.bf16 %v3731_v59, %v3731_v59  ;;  %v4049_v5 = vunpack.c.l.b16 %v4966_v61  ;;  %v4050_v6 = vunpack.c.l.b16 %v4967_v62  ;;  %v3226_v7 = vcombine.high %v3218_v54, %v3218_v54 }
 0x1f3   : > { %v4936_v0 = vpack.c.bf16 %v3699_v55, %v3699_v55  ;;  %v4017_v1 = vunpack.c.l.b16 %v4934_v57  ;;  %v4018_v2 = vunpack.c.l.b16 %v4935_v58  ;;  %v4016_v8 = vunpack.c.l.b16 %v4933_v56 }
 0x1f4   : > { %v3227_v12 = vcombine.high %v3225_v3, %v3225_v3  ;;  %v4806_v15 = vrot.slane %v3218_v54, 9  ;;  %v4149_v17 = vrot.slane %v4049_v5, 7  ;;  %v4807_v11 = vrot.slane %v3226_v7, 9 }
 0x1f5   : > { %v4019_v9 = vunpack.c.l.b16 %v4936_v0  ;;  %v4093_v10 = vrot.slane %v4017_v1, 7  ;;  %v4095_v13 = vrot.slane %v4018_v2, 6  ;;  %v4808_v18 = vrot.slane %v3225_v3, 9 }
 0x1f6   : > { %v4048_v19 = vunpack.c.l.b16 %v4965_v60  ;;  %v4051_v20 = vunpack.c.l.b16 %v4968_v4  ;;  %v4151_v21 = vrot.slane %v4050_v6, 6  ;;  %v4809_v23 = vrot.slane %v3227_v12, 9 }
 0x1f7   : > { %v4094_v16 = vsel %vm4073_vm14, %v4093_v10, %v4016_v8  ;;  %v4097_v24 = vrot.slane %v4019_v9, 5  ;;  %v3700_v25 = vmax.f32 %v3218_v54, %v4806_v15  ;;  %v3701_v26 = vmax.f32 %v3226_v7, %v4807_v11 }
 0x1f8   : > { %v3702_v27 = vmax.f32 %v3225_v3, %v4808_v18  ;;  %v4096_v22 = vsel %vm4076_vm15, %v4095_v13, %v4094_v16  ;;  %v3703_v14 = vmax.f32 %v3227_v12, %v4809_v23  ;;  %v3354_v29 = vrot.slane %v6063_v31, %v6009_v51 }
 0x1f9   : > { %v4150_v30 = vsel %vm4073_vm14, %v4149_v17, %v4048_v19  ;;  %v4937_v63 = vpack.c.bf16 %v3700_v25, %v3700_v25  ;;  %v4938_v32 = vpack.c.bf16 %v3701_v26, %v3701_v26  ;;  %v3361_v35 = vrot.slane %v3347_v28, %v6009_v51 }
 0x1fa   : > { %v4939_v33 = vpack.c.bf16 %v3702_v27, %v3702_v27  ;;  %v4940_v34 = vpack.c.bf16 %v3703_v14, %v3703_v14  ;;  %v3362_v36 = vcombine.high %v3354_v29, %v3354_v29  ;;  %v4838_v37 = vrot.slane %v3354_v29, 9 }
 0x1fb   : > { %v4020_v38 = vunpack.c.l.b16 %v4937_v63  ;;  %v4021_v39 = vunpack.c.l.b16 %v4938_v32  ;;  %v4098_v42 = vsel %vm4079_vm0, %v4097_v24, %v4096_v22  ;;  %v3363_v44 = vcombine.high %v3361_v35, %v3361_v35 }
 0x1fc   : > { %v4022_v40 = vunpack.c.l.b16 %v4939_v33  ;;  %v4023_v43 = vunpack.c.l.b16 %v4940_v34  ;;  %v4839_v45 = vrot.slane %v3362_v36, 9  ;;  %v4840_v46 = vrot.slane %v3361_v35, 9 }
 0x1fd   : > { %v4152_v31 = vsel %vm4076_vm15, %v4151_v21, %v4150_v30  ;;  %v4153_v47 = vrot.slane %v4051_v20, 5  ;;  %v4099_v48 = vrot.slane %v4020_v38, 4  ;;  %v3732_v49 = vmax.f32 %v3354_v29, %v4838_v37 }
 0x1fe   : > { %v4101_v50 = vrot.slane %v4021_v39, 3  ;;  %v4841_v52 = vrot.slane %v3363_v44, 9  ;;  %v3733_v53 = vmax.f32 %v3362_v36, %v4839_v45  ;;  %v3734_v54 = vmax.f32 %v3361_v35, %v4840_v46 }
 0x1ff   : > { %v4100_v55 = vsel %vm4082_vm1, %v4099_v48, %v4098_v42  ;;  %v4103_v56 = vrot.slane %v4022_v40, 2  ;;  %v4105_v57 = vrot.slane %v4023_v43, 1  ;;  %v4969_v58 = vpack.c.bf16 %v3732_v49, %v3732_v49 }
 0x200   : > { %v4102_v59 = vsel %vm4085_vm2, %v4101_v50, %v4100_v55  ;;  %v3735_v60 = vmax.f32 %v3363_v44, %v4841_v52  ;;  %v4970_v61 = vpack.c.bf16 %v3733_v53, %v3733_v53  ;;  %v4971_v62 = vpack.c.bf16 %v3734_v54, %v3734_v54 }
 0x201   : > { %v4104_v0 = vsel %vm4088_vm3, %v4103_v56, %v4102_v59  ;;  %v4052_v1 = vunpack.c.l.b16 %v4969_v58  ;;  %v4154_v2 = vsel %vm4079_vm0, %v4153_v47, %v4152_v31 }
 0x202   : > { %v4106_v3 = vsel %vm4091_vm4, %v4105_v57, %v4104_v0  ;;  %v4972_v4 = vpack.c.bf16 %v3735_v60, %v3735_v60  ;;  %v4053_v5 = vunpack.c.l.b16 %v4970_v61  ;;  %v4054_v6 = vunpack.c.l.b16 %v4971_v62 }
 0x203   : > { %v4192_v7 = vpack.c.b16 %v4106_v3, %v4106_v3  ;;  %v4155_v8 = vrot.slane %v4052_v1, 4 }
 0x204   : > { %v4055_v9 = vunpack.c.l.b16 %v4972_v4  ;;  %v4157_v10 = vrot.slane %v4053_v5, 3  ;;  %v4159_v13 = vrot.slane %v4054_v6, 2 }
 0x205   : > { %4209 = vst.msk [vmem:[%s6042_s8 + $0x4] sm:$0xf] %vm4207_vm5, %v4192_v7  ;;  %v4156_v12 = vsel %vm4082_vm1, %v4155_v8, %v4154_v2 }
 0x206   : > { %v4158_v15 = vsel %vm4085_vm2, %v4157_v10, %v4156_v12  ;;  %v4161_v16 = vrot.slane %v4055_v9, 1 }
 0x207   : > { %v4160_v17 = vsel %vm4088_vm3, %v4159_v13, %v4158_v15 }
 0x208   : > { %v4162_v11 = vsel %vm4091_vm4, %v4161_v16, %v4160_v17 }
 0x209   : > { %v4196_v18 = vpack.c.b16 %v4162_v11, %v4162_v11 }
 0x20b   : > { %4213 = vst.msk [vmem:[%s6042_s8 + $0x14] sm:$0xf] %vm4207_vm5, %v4196_v18 }
 0x220   : > { %v5037_v19 = vpop.f32.mrb[8].mxu1 }
 0x221   : > { %v3074_v20 = vadd.f32 %v5037_v19, %v6004_v41  ;;  %v3065_v21 = vpop.f32.mrb[9].mxu1  ;;  %v5021_v25 = vpop.f32.mrb[8].mxu0 }
 0x222   : > { %v3066_v23 = vadd.f32 %v6004_v41, %v3065_v21  ;;  %v5038_v24 = vpop.f32.mrb[10].mxu1  ;;  %v3010_v14 = vadd.f32 %v5021_v25, %v6004_v41  ;;  %v3001_v28 = vpop.f32.mrb[9].mxu0 }
 0x223   : > { %v3122_v26 = vmax.f32 %v3074_v20, 0.0  ;;  %v3077_v27 = vadd.f32 %v5038_v24, %v6004_v41  ;;  %v3068_v22 = vpop.f32.mrb[11].mxu1  ;;  %v3002_v63 = vadd.f32 %v6004_v41, %v3001_v28  ;;  %v5022_v32 = vpop.f32.mrb[10].mxu0 }
 0x224   : > { %v3120_v29 = vmax.f32 %v3066_v23, 0.0  ;;  %v3069_v30 = vadd.f32 %v6004_v41, %v3068_v22  ;;  %v3106_v34 = vmax.f32 %v3010_v14, 0.0  ;;  %v3013_v36 = vadd.f32 %v5022_v32, %v6004_v41  ;;  %v3004_v37 = vpop.f32.mrb[11].mxu0 }
 0x225   : > { %v3123_v33 = vmax.f32 %v3077_v27, 0.0  ;;  %v3104_v39 = vmax.f32 %v3002_v63, 0.0  ;;  %v3005_v40 = vadd.f32 %v6004_v41, %v3004_v37 }
 0x226   : > { %v3140_v35 = vmax.f32 %v3120_v29, %v3122_v26  ;;  %v3121_v38 = vmax.f32 %v3069_v30, 0.0  ;;  %v3107_v44 = vmax.f32 %v3013_v36, 0.0 }
 0x227   : > { %v3132_v46 = vmax.f32 %v3104_v39, %v3106_v34  ;;  %v3105_v31 = vmax.f32 %v3005_v40, 0.0 }
 0x228   : > { %v3364_v42 = vcombine.high %v3140_v35, %v3140_v35  ;;  %v3371_v43 = vrot.slane %v3140_v35, %v6009_v51  ;;  %v6101_v45 = vmax.f32 %v3121_v38, %v3123_v33 }
 0x229   : > { %v3228_v52 = vcombine.high %v3132_v46, %v3132_v46  ;;  %v3235_v53 = vrot.slane %v3132_v46, %v6009_v51  ;;  %v3133_v54 = vmax.f32 %v3105_v31, %v3107_v44 }
 0x22a   : > { %v3378_v47 = vrot.slane %v3364_v42, %v6009_v51  ;;  %v3379_v48 = vcombine.high %v3371_v43, %v3371_v43  ;;  %v4842_v49 = vrot.slane %v3371_v43, 9  ;;  %v3381_v50 = vcombine.high %v6101_v45, %v6101_v45 }
 0x22b   : > { %v6109_v55 = vrot.slane %v6101_v45, %v6009_v51  ;;  %v3242_v60 = vrot.slane %v3228_v52, %v6009_v51  ;;  %v3243_v61 = vcombine.high %v3235_v53, %v3235_v53  ;;  %v4810_v62 = vrot.slane %v3235_v53, 9 }
 0x22c   : > { %v3380_v56 = vcombine.high %v3378_v47, %v3378_v47  ;;  %v4843_v57 = vrot.slane %v3379_v48, 9  ;;  %v4844_v58 = vrot.slane %v3378_v47, 9  ;;  %v3736_v59 = vmax.f32 %v3371_v43, %v4842_v49 }
 0x22d   : > { %v3245_v0 = vcombine.high %v3133_v54, %v3133_v54  ;;  %v3244_v5 = vcombine.high %v3242_v60, %v3242_v60  ;;  %v4811_v6 = vrot.slane %v3243_v61, 9  ;;  %v4812_v7 = vrot.slane %v3242_v60, 9 }
 0x22e   : > { %v4845_v1 = vrot.slane %v3380_v56, 9  ;;  %v3737_v2 = vmax.f32 %v3379_v48, %v4843_v57  ;;  %v3738_v3 = vmax.f32 %v3378_v47, %v4844_v58  ;;  %v4973_v4 = vpack.c.bf16 %v3736_v59, %v3736_v59 }
 0x22f   : > { %v3704_v8 = vmax.f32 %v3235_v53, %v4810_v62  ;;  %v4813_v15 = vrot.slane %v3244_v5, 9  ;;  %v3705_v16 = vmax.f32 %v3243_v61, %v4811_v6  ;;  %v3706_v17 = vmax.f32 %v3242_v60, %v4812_v7 }
 0x230   : > { %v3739_v9 = vmax.f32 %v3380_v56, %v4845_v1  ;;  %v4974_v10 = vpack.c.bf16 %v3737_v2, %v3737_v2  ;;  %v4975_v12 = vpack.c.bf16 %v3738_v3, %v3738_v3  ;;  %v4056_v13 = vunpack.c.l.b16 %v4973_v4 }
 0x231   : > { %v4941_v11 = vpack.c.bf16 %v3704_v8, %v3704_v8  ;;  %v3252_v21 = vrot.slane %v3133_v54, %v6009_v51  ;;  %v3707_v23 = vmax.f32 %v3244_v5, %v4813_v15  ;;  %v4942_v24 = vpack.c.bf16 %v3705_v16, %v3705_v16 }
 0x232   : > { %v4976_v18 = vpack.c.bf16 %v3739_v9, %v3739_v9  ;;  %v4057_v19 = vunpack.c.l.b16 %v4974_v10  ;;  %v4058_v20 = vunpack.c.l.b16 %v4975_v12  ;;  %v4943_v25 = vpack.c.bf16 %v3706_v17, %v3706_v17 }
 0x233   : > { %v4024_v26 = vunpack.c.l.b16 %v4941_v11  ;;  %v3259_v28 = vrot.slane %v3245_v0, %v6009_v51  ;;  %v4944_v29 = vpack.c.bf16 %v3707_v23, %v3707_v23  ;;  %v4025_v30 = vunpack.c.l.b16 %v4942_v24 }
 0x234   : > { %v4059_v27 = vunpack.c.l.b16 %v4976_v18  ;;  %v4163_v22 = vrot.slane %v4057_v19, 7  ;;  %v4165_v14 = vrot.slane %v4058_v20, 6  ;;  %v4026_v63 = vunpack.c.l.b16 %v4943_v25 }
 0x235   : > { %v3260_v32 = vcombine.high %v3252_v21, %v3252_v21  ;;  %v3261_v35 = vcombine.high %v3259_v28, %v3259_v28  ;;  %v4814_v36 = vrot.slane %v3252_v21, 9  ;;  %v4027_v37 = vunpack.c.l.b16 %v4944_v29 }
 0x236   : > { %v4164_v33 = vsel %vm4073_vm14, %v4163_v22, %v4056_v13  ;;  %v4167_v34 = vrot.slane %v4059_v27, 5  ;;  %v4107_v38 = vrot.slane %v4025_v30, 7  ;;  %v4109_v39 = vrot.slane %v4026_v63, 6 }
 0x237   : > { %v4166_v40 = vsel %vm4076_vm15, %v4165_v14, %v4164_v33  ;;  %v4815_v42 = vrot.slane %v3260_v32, 9  ;;  %v4816_v43 = vrot.slane %v3259_v28, 9  ;;  %v4817_v44 = vrot.slane %v3261_v35, 9 }
 0x238   : > { %v3708_v45 = vmax.f32 %v3252_v21, %v4814_v36  ;;  %v4108_v46 = vsel %vm4073_vm14, %v4107_v38, %v4024_v26  ;;  %v4111_v31 = vrot.slane %v4027_v37, 5  ;;  %v3395_v47 = vrot.slane %v3381_v50, %v6009_v51 }
 0x239   : > { %v3396_v48 = vcombine.high %v6109_v55, %v6109_v55  ;;  %v4110_v49 = vsel %vm4076_vm15, %v4109_v39, %v4108_v46  ;;  %v3709_v52 = vmax.f32 %v3260_v32, %v4815_v42  ;;  %v3710_v53 = vmax.f32 %v3259_v28, %v4816_v43 }
 0x23a   : > { %v3711_v54 = vmax.f32 %v3261_v35, %v4817_v44  ;;  %v4945_v56 = vpack.c.bf16 %v3708_v45, %v3708_v45  ;;  %v4112_v57 = vsel %vm4079_vm0, %v4111_v31, %v4110_v49  ;;  %v3397_v58 = vcombine.high %v3395_v47, %v3395_v47 }
 0x23b   : > { %v4846_v59 = vrot.slane %v6109_v55, 9  ;;  %v4946_v60 = vpack.c.bf16 %v3709_v52, %v3709_v52  ;;  %v4947_v61 = vpack.c.bf16 %v3710_v53, %v3710_v53  ;;  %v4847_v0 = vrot.slane %v3396_v48, 9 }
 0x23c   : > { %v4948_v62 = vpack.c.bf16 %v3711_v54, %v3711_v54  ;;  %v4028_v1 = vunpack.c.l.b16 %v4945_v56  ;;  %v4848_v50 = vrot.slane %v3395_v47, 9  ;;  %v4849_v2 = vrot.slane %v3397_v58, 9 }
 0x23d   : > { %v3740_v3 = vmax.f32 %v6109_v55, %v4846_v59  ;;  %v4029_v4 = vunpack.c.l.b16 %v4946_v60  ;;  %v4030_v5 = vunpack.c.l.b16 %v4947_v61  ;;  %v3741_v7 = vmax.f32 %v3396_v48, %v4847_v0 }
 0x23e   : > { %v4031_v6 = vunpack.c.l.b16 %v4948_v62  ;;  %v4113_v8 = vrot.slane %v4028_v1, 4  ;;  %v3742_v9 = vmax.f32 %v3395_v47, %v4848_v50  ;;  %v3743_v10 = vmax.f32 %v3397_v58, %v4849_v2 }
 0x23f   : > { %v4977_v12 = vpack.c.bf16 %v3740_v3, %v3740_v3  ;;  %v4115_v13 = vrot.slane %v4029_v4, 3  ;;  %v4117_v15 = vrot.slane %v4030_v5, 2  ;;  %v4978_v16 = vpack.c.bf16 %v3741_v7, %v3741_v7 }
 0x240   : > { %v4114_v17 = vsel %vm4082_vm1, %v4113_v8, %v4112_v57  ;;  %v4979_v11 = vpack.c.bf16 %v3742_v9, %v3742_v9  ;;  %v4980_v18 = vpack.c.bf16 %v3743_v10, %v3743_v10  ;;  %v4119_v55 = vrot.slane %v4031_v6, 1 }
 0x241   : > { %v4060_v19 = vunpack.c.l.b16 %v4977_v12  ;;  %v4116_v20 = vsel %vm4085_vm2, %v4115_v13, %v4114_v17  ;;  %v4061_v21 = vunpack.c.l.b16 %v4978_v16  ;;  %v4168_v23 = vsel %vm4079_vm0, %v4167_v34, %v4166_v40 }
 0x242   : > { %v4118_v24 = vsel %vm4088_vm3, %v4117_v15, %v4116_v20  ;;  %v4062_v25 = vunpack.c.l.b16 %v4979_v11  ;;  %v4063_v26 = vunpack.c.l.b16 %v4980_v18 }
 0x243   : > { %v4169_v27 = vrot.slane %v4060_v19, 4  ;;  %v4120_v22 = vsel %vm4091_vm4, %v4119_v55, %v4118_v24  ;;  %v4171_v14 = vrot.slane %v4061_v21, 3 }
 0x244   : > { %v4193_v28 = vpack.c.b16 %v4120_v22, %v4120_v22  ;;  %v4173_v30 = vrot.slane %v4062_v25, 2  ;;  %v4175_v32 = vrot.slane %v4063_v26, 1 }
 0x245   : > { %v4170_v29 = vsel %vm4082_vm1, %v4169_v27, %v4168_v23 }
 0x246   : > { %v4172_v63 = vsel %vm4085_vm2, %v4171_v14, %v4170_v29  ;;  %4210 = vst.msk [vmem:[%s6042_s8 + $0x8] sm:$0xf] %vm4207_vm5, %v4193_v28 }
 0x247   : > { %v4174_v33 = vsel %vm4088_vm3, %v4173_v30, %v4172_v63 }
 0x248   : > { %v4176_v34 = vsel %vm4091_vm4, %v4175_v32, %v4174_v33 }
 0x249   : > { %v4197_v35 = vpack.c.b16 %v4176_v34, %v4176_v34 }
 0x24b   : > { %4214 = vst.msk [vmem:[%s6042_s8 + $0x18] sm:$0xf] %vm4207_vm5, %v4197_v35 }
 0x25c   : > { %v5041_v36 = vpop.f32.mrb[12].mxu1 }
 0x25d   : > { %v3090_v37 = vadd.f32 %v5041_v36, %v6004_v41  ;;  %v3081_v38 = vpop.f32.mrb[13].mxu1  ;;  %v5025_v42 = vpop.f32.mrb[12].mxu0 }
 0x25e   : > { %v3082_v39 = vadd.f32 %v6004_v41, %v3081_v38  ;;  %v5042_v40 = vpop.f32.mrb[14].mxu1  ;;  %v3026_v46 = vadd.f32 %v5025_v42, %v6004_v41  ;;  %v3017_v31 = vpop.f32.mrb[13].mxu0 }
 0x25f   : > { %v3126_v43 = vmax.f32 %v3090_v37, 0.0  ;;  %v3093_v44 = vadd.f32 %v5042_v40, %v6004_v41  ;;  %v3084_v45 = vpop.f32.mrb[15].mxu1  ;;  %v3018_v49 = vadd.f32 %v6004_v41, %v3017_v31  ;;  %v5026_v52 = vpop.f32.mrb[14].mxu0 }
 0x260   : > { %v3124_v47 = vmax.f32 %v3082_v39, 0.0  ;;  %v3085_v48 = vadd.f32 %v6004_v41, %v3084_v45  ;;  %v3110_v54 = vmax.f32 %v3026_v46, 0.0  ;;  %v3029_v57 = vadd.f32 %v5026_v52, %v6004_v41  ;;  %v3020_v58 = vpop.f32.mrb[15].mxu0 }
 0x261   : > { %v3127_v53 = vmax.f32 %v3093_v44, 0.0  ;;  %v3108_v60 = vmax.f32 %v3018_v49, 0.0  ;;  %v3021_v61 = vadd.f32 %v6004_v41, %v3020_v58 }
 0x262   : > { %v3142_v56 = vmax.f32 %v3124_v47, %v3126_v43  ;;  %v3125_v59 = vmax.f32 %v3085_v48, 0.0  ;;  %v3111_v1 = vmax.f32 %v3029_v57, 0.0 }
 0x263   : > { %v3134_v2 = vmax.f32 %v3108_v60, %v3110_v54  ;;  %v3109_v3 = vmax.f32 %v3021_v61, 0.0 }
 0x264   : > { %v3398_v62 = vcombine.high %v3142_v56, %v3142_v56  ;;  %v3405_v0 = vrot.slane %v3142_v56, %v6009_v51  ;;  %v6146_v50 = vmax.f32 %v3125_v59, %v3127_v53 }
 0x265   : > { %v3262_v8 = vcombine.high %v3134_v2, %v3134_v2  ;;  %v3269_v9 = vrot.slane %v3134_v2, %v6009_v51  ;;  %v3135_v10 = vmax.f32 %v3109_v3, %v3111_v1 }
 0x266   : > { %v3412_v4 = vrot.slane %v3398_v62, %v6009_v51  ;;  %v3413_v5 = vcombine.high %v3405_v0, %v3405_v0  ;;  %v4850_v6 = vrot.slane %v3405_v0, 9  ;;  %v3415_v7 = vcombine.high %v6146_v50, %v6146_v50 }
 0x267   : > { %v6154_v41 = vrot.slane %v6146_v50, %v6009_v51  ;;  %v3276_v17 = vrot.slane %v3262_v8, %v6009_v51  ;;  %v3277_v11 = vcombine.high %v3269_v9, %v3269_v9  ;;  %v4818_v18 = vrot.slane %v3269_v9, 9 }
 0x268   : > { %v3414_v12 = vcombine.high %v3412_v4, %v3412_v4  ;;  %v4851_v13 = vrot.slane %v3413_v5, 9  ;;  %v4852_v15 = vrot.slane %v3412_v4, 9  ;;  %v3744_v16 = vmax.f32 %v3405_v0, %v4850_v6 }
 0x269   : > { %v3279_v19 = vcombine.high %v3135_v10, %v3135_v10  ;;  %v3278_v24 = vcombine.high %v3276_v17, %v3276_v17  ;;  %v4819_v25 = vrot.slane %v3277_v11, 9  ;;  %v4820_v26 = vrot.slane %v3276_v17, 9 }
 0x26a   : > { %v4853_v20 = vrot.slane %v3414_v12, 9  ;;  %v3745_v55 = vmax.f32 %v3413_v5, %v4851_v13  ;;  %v3746_v21 = vmax.f32 %v3412_v4, %v4852_v15  ;;  %v4981_v23 = vpack.c.bf16 %v3744_v16, %v3744_v16 }
 0x26b   : > { %v3712_v27 = vmax.f32 %v3269_v9, %v4818_v18  ;;  %v4821_v30 = vrot.slane %v3278_v24, 9  ;;  %v3713_v63 = vmax.f32 %v3277_v11, %v4819_v25  ;;  %v3714_v32 = vmax.f32 %v3276_v17, %v4820_v26 }
 0x26c   : > { %v3747_v22 = vmax.f32 %v3414_v12, %v4853_v20  ;;  %v4982_v14 = vpack.c.bf16 %v3745_v55, %v3745_v55  ;;  %v4983_v28 = vpack.c.bf16 %v3746_v21, %v3746_v21  ;;  %v4064_v29 = vunpack.c.l.b16 %v4981_v23 }
 0x26d   : > { %v4949_v33 = vpack.c.bf16 %v3712_v27, %v3712_v27  ;;  %v3286_v37 = vrot.slane %v3135_v10, %v6009_v51  ;;  %v3715_v38 = vmax.f32 %v3278_v24, %v4821_v30  ;;  %v4950_v39 = vpack.c.bf16 %v3713_v63, %v3713_v63 }
 0x26e   : > { %v4984_v34 = vpack.c.bf16 %v3747_v22, %v3747_v22  ;;  %v4065_v35 = vunpack.c.l.b16 %v4982_v14  ;;  %v4066_v36 = vunpack.c.l.b16 %v4983_v28  ;;  %v4951_v40 = vpack.c.bf16 %v3714_v32, %v3714_v32 }
 0x26f   : > { %v4032_v42 = vunpack.c.l.b16 %v4949_v33  ;;  %v3293_v46 = vrot.slane %v3279_v19, %v6009_v51  ;;  %v4952_v31 = vpack.c.bf16 %v3715_v38, %v3715_v38  ;;  %v4033_v47 = vunpack.c.l.b16 %v4950_v39 }
 0x270   : > { %v4067_v43 = vunpack.c.l.b16 %v4984_v34  ;;  %v4177_v44 = vrot.slane %v4065_v35, 7  ;;  %v4179_v45 = vrot.slane %v4066_v36, 6  ;;  %v4034_v48 = vunpack.c.l.b16 %v4951_v40 }
 0x271   : > { %v3294_v49 = vcombine.high %v3286_v37, %v3286_v37  ;;  %v3295_v54 = vcombine.high %v3293_v46, %v3293_v46  ;;  %v4822_v56 = vrot.slane %v3286_v37, 9  ;;  %v4035_v57 = vunpack.c.l.b16 %v4952_v31 }
 0x272   : > { %v4178_v52 = vsel %vm4073_vm14, %v4177_v44, %v4064_v29  ;;  %v4181_v53 = vrot.slane %v4067_v43, 5  ;;  %v4121_v58 = vrot.slane %v4033_v47, 7  ;;  %v4123_v59 = vrot.slane %v4034_v48, 6 }
 0x273   : > { %v4180_v60 = vsel %vm4076_vm15, %v4179_v45, %v4178_v52  ;;  %v4823_v61 = vrot.slane %v3294_v49, 9  ;;  %v4824_v62 = vrot.slane %v3293_v46, 9  ;;  %v4825_v0 = vrot.slane %v3295_v54, 9 }
 0x274   : > { %v3716_v1 = vmax.f32 %v3286_v37, %v4822_v56  ;;  %v4122_v50 = vsel %vm4073_vm14, %v4121_v58, %v4032_v42  ;;  %v4125_v2 = vrot.slane %v4035_v57, 5  ;;  %v3429_v3 = vrot.slane %v3415_v7, %v6009_v51 }
 0x275   : > { %v3430_v4 = vcombine.high %v6154_v41, %v6154_v41  ;;  %v4124_v5 = vsel %vm4076_vm15, %v4123_v59, %v4122_v50  ;;  %v3717_v6 = vmax.f32 %v3294_v49, %v4823_v61  ;;  %v3718_v8 = vmax.f32 %v3293_v46, %v4824_v62 }
 0x276   : > { %v3719_v9 = vmax.f32 %v3295_v54, %v4825_v0  ;;  %v4953_v10 = vpack.c.bf16 %v3716_v1, %v3716_v1  ;;  %v4126_v12 = vsel %vm4079_vm0, %v4125_v2, %v4124_v5  ;;  %v3431_v13 = vcombine.high %v3429_v3, %v3429_v3 }
 0x277   : > { %v4854_v15 = vrot.slane %v6154_v41, 9  ;;  %v4954_v16 = vpack.c.bf16 %v3717_v6, %v3717_v6  ;;  %v4955_v17 = vpack.c.bf16 %v3718_v8, %v3718_v8  ;;  %v4855_v18 = vrot.slane %v3430_v4, 9 }
 0x278   : > { %v4956_v11 = vpack.c.bf16 %v3719_v9, %v3719_v9  ;;  %v4036_v19 = vunpack.c.l.b16 %v4953_v10  ;;  %v4856_v51 = vrot.slane %v3429_v3, 9  ;;  %v4857_v7 = vrot.slane %v3431_v13, 9 }
 0x279   : > { %v3748_v20 = vmax.f32 %v6154_v41, %v4854_v15  ;;  %v4037_v55 = vunpack.c.l.b16 %v4954_v16  ;;  %v4038_v21 = vunpack.c.l.b16 %v4955_v17  ;;  %v3749_v24 = vmax.f32 %v3430_v4, %v4855_v18 }
 0x27a   : > { %v4039_v23 = vunpack.c.l.b16 %v4956_v11  ;;  %v4127_v25 = vrot.slane %v4036_v19, 4  ;;  %v3750_v26 = vmax.f32 %v3429_v3, %v4856_v51  ;;  %v3751_v27 = vmax.f32 %v3431_v13, %v4857_v7 }
 0x27b   : > { %v4985_v22 = vpack.c.bf16 %v3748_v20, %v3748_v20  ;;  %v4129_v14 = vrot.slane %v4037_v55, 3  ;;  %v4131_v28 = vrot.slane %v4038_v21, 2  ;;  %v4986_v29 = vpack.c.bf16 %v3749_v24, %v3749_v24 }
 0x27c   : > { %v4128_v30 = vsel %vm4082_vm1, %v4127_v25, %v4126_v12  ;;  %v4987_v63 = vpack.c.bf16 %v3750_v26, %v3750_v26  ;;  %v4988_v32 = vpack.c.bf16 %v3751_v27, %v3751_v27  ;;  %v4133_v41 = vrot.slane %v4039_v23, 1 }
 0x27d   : > { %v4068_v33 = vunpack.c.l.b16 %v4985_v22  ;;  %v4130_v34 = vsel %vm4085_vm2, %v4129_v14, %v4128_v30  ;;  %v4069_v35 = vunpack.c.l.b16 %v4986_v29  ;;  %v4182_v36 = vsel %vm4079_vm0, %v4181_v53, %v4180_v60 }
 0x27e   : > { %v4132_v37 = vsel %vm4088_vm3, %v4131_v28, %v4130_v34  ;;  %v4070_v38 = vunpack.c.l.b16 %v4987_v63  ;;  %v4071_v39 = vunpack.c.l.b16 %v4988_v32 }
 0x27f   : > { %v4183_v40 = vrot.slane %v4068_v33, 4  ;;  %v4134_v42 = vsel %vm4091_vm4, %v4133_v41, %v4132_v37  ;;  %v4185_v43 = vrot.slane %v4069_v35, 3 }
 0x280   : > { %v4194_v44 = vpack.c.b16 %v4134_v42, %v4134_v42  ;;  %v4187_v46 = vrot.slane %v4070_v38, 2  ;;  %v4189_v47 = vrot.slane %v4071_v39, 1 }
 0x281   : > { %v4184_v45 = vsel %vm4082_vm1, %v4183_v40, %v4182_v36 }
 0x282   : > { %v4186_v31 = vsel %vm4085_vm2, %v4185_v43, %v4184_v45  ;;  %4211 = vst.msk [vmem:[%s6042_s8 + $0xc] sm:$0xf] %vm4207_vm5, %v4194_v44 }
 0x283   : > { %v4188_v48 = vsel %vm4088_vm3, %v4187_v46, %v4186_v31 }
 0x284   : > { %v4190_v49 = vsel %vm4091_vm4, %v4189_v47, %v4188_v48 }
 0x285   : > { %v4198_v52 = vpack.c.b16 %v4190_v49, %v4190_v49 }
 0x287   : > { %4215 = vst.msk [vmem:[%s6042_s8 + $0x1c] sm:$0xf] %vm4207_vm5, %v4198_v52 }
 0x288 PF: > { %s13_s12 = sadd.s32 1, %s5314_s12  }
 0x289   : > { %p10_p4 = scmp.ge.s32.totalorder %s13_s12, 4  }
 0x28b   :  { %12 = sbr.rel (!%p10_p4) target bundleno = 1 (0x1), region = 64 }

</bundles_post_ra>
